<compile_context>
chip_gen: v7x
topology: tpu7x:2x2x1
jax: 0.10.0
libtpu: 0.0.40
codegen_flags: <defaults>
</compile_context>

<pallas_src>
import functools

import jax
import jax.numpy as jnp
from jax.experimental import pallas as pl
from jax.experimental.pallas import tpu as pltpu


_LANES = 128


def _round_up(x, m):
    return (x + m - 1) // m * m


def _cdiv(a, b):
    return -(-a // b)


def _vmem_capacity_bytes():
    # Derive the VMEM budget from the actual chip (64 MiB/TC on v7x, 128 MiB on
    # v5e/v6e); fall back to the smallest (v7x) figure if the query fails.
    try:
        return int(pltpu.get_tpu_info().vmem_capacity_bytes)
    except Exception:
        return 64 * 1024 * 1024


# -----------------------------------------------------------------------------
# Fused kernel: phase 0 = conv matmul + batch stats (y resident in VMEM),
#               phase 1 = folded BatchNorm(train) affine + ReLU + store.
# -----------------------------------------------------------------------------
def _fused_conv_bn_relu_kernel(cols_ref, w_ref, g_ref, be_ref, out_ref,
                               y_sc, sum_sc, ssq_sc, scale_sc, shift_sc, *,
                               tile_m, m_valid, m_pad, eps):
    p = pl.program_id(0)                      # phase: 0 conv+stats, 1 BN+ReLU
    i = pl.program_id(1)                      # M tile
    off = pl.multiple_of(i * tile_m, 8)

    @pl.when(p == 0)
    def _conv_and_stats():
        @pl.when(i == 0)
        def _():
            sum_sc[...] = jnp.zeros_like(sum_sc)
            ssq_sc[...] = jnp.zeros_like(ssq_sc)

        acc = jnp.dot(cols_ref[...], w_ref[...],
                      preferred_element_type=jnp.float32)
        y_sc[pl.ds(off, tile_m), :] = acc     # conv output stays in VMEM

        if m_pad == m_valid:                  # M tile-aligned: never mask
            sum_sc[...] += jnp.sum(acc, axis=0, keepdims=True)
            ssq_sc[...] += jnp.sum(acc * acc, axis=0, keepdims=True)
        else:                                 # mask only boundary/pad tiles
            first_masked = m_valid // tile_m

            @pl.when(i < first_masked)
            def _():
                sum_sc[...] += jnp.sum(acc, axis=0, keepdims=True)
                ssq_sc[...] += jnp.sum(acc * acc, axis=0, keepdims=True)

            @pl.when(i >= first_masked)
            def _():
                row = jax.lax.broadcasted_iota(jnp.int32, acc.shape, 0) + off
                msk = jnp.where(row < m_valid, acc, 0.0)
                sum_sc[...] += jnp.sum(msk, axis=0, keepdims=True)
                ssq_sc[...] += jnp.sum(msk * msk, axis=0, keepdims=True)

    @pl.when(p == 1)
    def _bn_relu():
        @pl.when(i == 0)
        def _():
            # Fold training-mode BatchNorm into a single scale/shift.
            # NOTE: E[x^2]-mean^2 can cancel for large-mean channels; clamped.
            inv_m = jnp.float32(1.0 / m_valid)
            mean = sum_sc[...] * inv_m
            var = jnp.maximum(ssq_sc[...] * inv_m - mean * mean, 0.0)
            sc = g_ref[...] * jax.lax.rsqrt(var + eps)
            scale_sc[...] = sc
            shift_sc[...] = be_ref[...] - mean * sc

        y = y_sc[pl.ds(off, tile_m), :]
        out_ref[...] = jnp.maximum(y * scale_sc[...] + shift_sc[...],
                                   0.0).astype(out_ref.dtype)


# -----------------------------------------------------------------------------
# Fallback (y too large for VMEM): two-pass path, bf16 y through HBM.
# -----------------------------------------------------------------------------
def _conv_stats_kernel(cols_ref, w_ref, y_ref, sum_ref, ssq_ref, *,
                       tile_m, m_valid, m_pad, grid_inner):
    s = pl.program_id(0)                      # TensorCore split (parallel)
    i = pl.program_id(1)                      # M tile within the split
    g = s * grid_inner + i                    # global M tile

    acc = jnp.dot(cols_ref[...], w_ref[...], preferred_element_type=jnp.float32)
    y_ref[...] = acc.astype(y_ref.dtype)      # bf16 -> halved y HBM traffic

    @pl.when(i == 0)
    def _():
        sum_ref[...] = jnp.zeros_like(sum_ref)
        ssq_ref[...] = jnp.zeros_like(ssq_ref)

    if m_pad == m_valid:
        sum_ref[0:1, :] += jnp.sum(acc, axis=0, keepdims=True)
        ssq_ref[0:1, :] += jnp.sum(acc * acc, axis=0, keepdims=True)
    else:
        first_masked = m_valid // tile_m

        @pl.when(g < first_masked)
        def _():
            sum_ref[0:1, :] += jnp.sum(acc, axis=0, keepdims=True)
            ssq_ref[0:1, :] += jnp.sum(acc * acc, axis=0, keepdims=True)

        @pl.when(g >= first_masked)
        def _():
            row = jax.lax.broadcasted_iota(jnp.int32, acc.shape, 0) + g * tile_m
            msk = jnp.where(row < m_valid, acc, 0.0)
            sum_ref[0:1, :] += jnp.sum(msk, axis=0, keepdims=True)
            ssq_ref[0:1, :] += jnp.sum(msk * msk, axis=0, keepdims=True)


def _bn_relu_kernel(y_ref, scale_ref, shift_ref, o_ref):
    y = y_ref[...].astype(jnp.float32)
    o_ref[...] = jnp.maximum(y * scale_ref[...] + shift_ref[...],
                             0.0).astype(o_ref.dtype)


# -----------------------------------------------------------------------------
# ConvBlock2D wrapper
# -----------------------------------------------------------------------------
def conv_block_2d(x_nhwc, w, b, gamma, beta, *, stride, padding, eps=1e-5,
                  tile_m=2048, out_dtype=jnp.bfloat16):
    """One ConvBlock2D: Conv2d -> BatchNorm2d(train) -> ReLU.  x_nhwc: (N,H,W,Cin)."""
    # Conv bias is mathematically redundant before training-mode BatchNorm:
    # it shifts every element and the batch mean identically, so it is dropped.
    del b
    # TODO(synk): BatchNorm2d running_mean / running_var buffer updates
    # (training-time side effect only; forward output unaffected) are not
    # reproduced.
    N, H, W, Cin = x_nhwc.shape
    KH, KW, _, Cout = w.shape
    Ho = (H + 2 * padding - KH) // stride + 1
    Wo = (W + 2 * padding - KW) // stride + 1

    xp = jnp.pad(x_nhwc, ((0, 0), (padding, padding), (padding, padding), (0, 0)))

    # im2col in XLA (layout plumbing); (kh, kw, cin) ordering matches w.reshape.
    # TODO(synk): an in-kernel im2col (manual DMA over overlapping NHWC slabs)
    # would remove this KH*KW-times-expanded array from HBM entirely.
    patches = []
    for kh in range(KH):
        for kw in range(KW):
            patches.append(
                xp[:, kh:kh + stride * Ho:stride, kw:kw + stride * Wo:stride, :])
    cols = jnp.stack(patches, axis=3)                     # (N, Ho, Wo, KH*KW, Cin)
    K = KH * KW * Cin
    M = N * Ho * Wo
    cols = cols.reshape(M, K)

    # Lane-dense padding: contraction dim K and output channels up to 128 lanes.
    k_pad = _round_up(K, _LANES)
    c_pad = _round_up(Cout, _LANES)

    cap = _vmem_capacity_bytes()
    vmem_limit = max(32 << 20, min(int(cap * 0.75), cap - (8 << 20)))
    out_bytes = jnp.dtype(out_dtype).itemsize

    # Biggest M tile whose double-buffered working set fits comfortably.
    tile = min(tile_m, _round_up(M, 8))

    def _step_bytes(t):
        return (2 * t * k_pad * 2            # cols tile (bf16, double-buffered)
                + 2 * t * c_pad * 4          # y / out tile (worst-case f32)
                + 2 * k_pad * c_pad * 2)     # weights

    while tile > 256 and _step_bytes(tile) > int(vmem_limit * 0.5):
        tile = _round_up(tile // 2, 8)

    grid_m = _cdiv(M, tile)
    m_pad = grid_m * tile

    # Fused path: y resident in a VMEM scratch, BN+ReLU as phase 1 of the SAME
    # pallas_call -> y never touches HBM and there is only one kernel launch.
    fused_bytes = m_pad * c_pad * 4 + _step_bytes(tile) + 8 * c_pad * 4
    use_fused = fused_bytes <= int(vmem_limit * 0.85)

    split = 1
    grid_inner = grid_m
    if not use_fused and grid_m >= 2:
        # Two-pass fallback: leading size-2 parallel axis lets v7x shard the
        # conv matmul across its two TensorCores (neutral on v5e/v6e).
        split = 2
        grid_inner = _cdiv(grid_m, split)
        grid_m = split * grid_inner
        m_pad = grid_m * tile

    cols = jnp.pad(cols.astype(jnp.bfloat16), ((0, m_pad - M), (0, k_pad - K)))
    wmat = jnp.pad(w.reshape(K, Cout).astype(jnp.bfloat16),
                   ((0, k_pad - K), (0, c_pad - Cout)))
    g_p = jnp.pad(gamma.astype(jnp.float32), (0, c_pad - Cout)).reshape(1, c_pad)
    be_p = jnp.pad(beta.astype(jnp.float32), (0, c_pad - Cout)).reshape(1, c_pad)

    if use_fused:
        kernel = functools.partial(
            _fused_conv_bn_relu_kernel,
            tile_m=tile, m_valid=M, m_pad=m_pad, eps=eps)
        cost = pl.CostEstimate(
            flops=2 * m_pad * k_pad * c_pad,
            transcendentals=c_pad,
            bytes_accessed=(m_pad * k_pad * 2 + k_pad * c_pad * 2
                            + m_pad * c_pad * out_bytes + 2 * c_pad * 4))
        result = pl.pallas_call(
            kernel,
            grid=(2, grid_m),                 # (phase, M tile)
            in_specs=[
                # Phase 1 pins cols to the last block -> no extra DMA.
                pl.BlockSpec((tile, k_pad),
                             lambda p, i: (i * (1 - p) + (grid_m - 1) * p, 0)),
                pl.BlockSpec((k_pad, c_pad), lambda p, i: (0, 0)),
                pl.BlockSpec((1, c_pad), lambda p, i: (0, 0)),
                pl.BlockSpec((1, c_pad), lambda p, i: (0, 0)),
            ],
            out_specs=pl.BlockSpec((tile, c_pad), lambda p, i: (i * p, 0)),
            out_shape=jax.ShapeDtypeStruct((m_pad, c_pad), out_dtype),
            scratch_shapes=[
                pltpu.VMEM((m_pad, c_pad), jnp.float32),   # resident conv out
                pltpu.VMEM((1, c_pad), jnp.float32),       # sum
                pltpu.VMEM((1, c_pad), jnp.float32),       # sum of squares
                pltpu.VMEM((1, c_pad), jnp.float32),       # BN scale
                pltpu.VMEM((1, c_pad), jnp.float32),       # BN shift
            ],
            compiler_params=pltpu.CompilerParams(
                dimension_semantics=("arbitrary", "arbitrary"),
                vmem_limit_bytes=vmem_limit),
            cost_estimate=cost,
        )(cols, wmat, g_p, be_p)
    else:
        # ---- Pass 1: conv matmul (bf16 y) + per-split partial batch stats ----
        kernel1 = functools.partial(
            _conv_stats_kernel,
            tile_m=tile, m_valid=M, m_pad=m_pad, grid_inner=grid_inner)
        y, sums, ssq = pl.pallas_call(
            kernel1,
            grid=(split, grid_inner),
            in_specs=[
                pl.BlockSpec((tile, k_pad), lambda s, i: (s * grid_inner + i, 0)),
                pl.BlockSpec((k_pad, c_pad), lambda s, i: (0, 0)),
            ],
            out_specs=(
                pl.BlockSpec((tile, c_pad), lambda s, i: (s * grid_inner + i, 0)),
                pl.BlockSpec((8, c_pad), lambda s, i: (s, 0)),
                pl.BlockSpec((8, c_pad), lambda s, i: (s, 0)),
            ),
            out_shape=(
                jax.ShapeDtypeStruct((m_pad, c_pad), jnp.bfloat16),
                jax.ShapeDtypeStruct((split * 8, c_pad), jnp.float32),
                jax.ShapeDtypeStruct((split * 8, c_pad), jnp.float32),
            ),
            compiler_params=pltpu.CompilerParams(
                dimension_semantics=("parallel", "arbitrary"),
                vmem_limit_bytes=vmem_limit),
        )(cols, wmat)

        # ---- Fold BatchNorm (training-mode batch stats) into scale/shift -----
        inv_m = 1.0 / float(M)
        mean = jnp.sum(sums, axis=0, keepdims=True) * inv_m
        var = jnp.maximum(jnp.sum(ssq, axis=0, keepdims=True) * inv_m
                          - mean * mean, 0.0)
        scale = g_p * jax.lax.rsqrt(var + eps)
        shift = be_p - mean * scale

        # ---- Pass 2: BN affine + ReLU, written in place over y (aliased) -----
        out = pl.pallas_call(
            _bn_relu_kernel,
            grid=(grid_m,),
            in_specs=[
                pl.BlockSpec((tile, c_pad), lambda i: (i, 0)),
                pl.BlockSpec((1, c_pad), lambda i: (0, 0)),
                pl.BlockSpec((1, c_pad), lambda i: (0, 0)),
            ],
            out_specs=pl.BlockSpec((tile, c_pad), lambda i: (i, 0)),
            out_shape=jax.ShapeDtypeStruct((m_pad, c_pad), jnp.bfloat16),
            input_output_aliases={0: 0},
            compiler_params=pltpu.CompilerParams(
                dimension_semantics=("parallel",),
                vmem_limit_bytes=vmem_limit),
        )(y, scale, shift)
        result = out.astype(out_dtype)

    return result[:M, :Cout].reshape(N, Ho, Wo, Cout)


# -----------------------------------------------------------------------------
# ConvEncoder2D
# -----------------------------------------------------------------------------
def init_conv_encoder_2d_params(key, in_channels, kernel_size, embedding_size):
    """Deterministic synthetic parameters matching ConvEncoder2D.__init__ shapes."""
    params = []
    cin = in_channels
    for k in kernel_size:
        key, wk, bk = jax.random.split(key, 3)
        params.append(dict(
            w=jax.random.normal(wk, (k, k, cin, embedding_size), jnp.float32) * 0.1,
            b=jax.random.normal(bk, (embedding_size,), jnp.float32) * 0.1,
            gamma=jnp.ones((embedding_size,), jnp.float32),   # BatchNorm2d weight
            beta=jnp.zeros((embedding_size,), jnp.float32),   # BatchNorm2d bias
        ))
        cin = embedding_size
    return params


def conv_encoder_2d(x_nchw, params, *, stride, padding):
    """ConvEncoder2D.forward.  x_nchw: (N, Cin, H, W) -> (N, emb, Ho, Wo)."""
    x = jnp.transpose(x_nchw, (0, 2, 3, 1))                  # NCHW -> NHWC
    n_layers = len(params)
    for li, p in enumerate(params):
        last = (li == n_layers - 1)
        x = conv_block_2d(x, p["w"], p["b"], p["gamma"], p["beta"],
                          stride=stride, padding=padding,
                          out_dtype=jnp.float32 if last else jnp.bfloat16)
    return jnp.transpose(x, (0, 3, 1, 2))                    # NHWC -> NCHW


if __name__ == "__main__":
    # ConvEncoder2D(in_channels=4, kernel_size=[3, 3], embeding_size=32,
    #               stride=1, padding=1)
    in_channels = 4
    kernel_size = [3, 3]
    embedding_size = 32
    stride = 1
    padding = 1

    key = jax.random.PRNGKey(0)
    key, xkey = jax.random.split(key)
    x = jax.random.normal(xkey, (2, in_channels, 16, 16), jnp.float32)   # NCHW

    params = init_conv_encoder_2d_params(key, in_channels, kernel_size,
                                         embedding_size)

    encoder = jax.jit(functools.partial(conv_encoder_2d,
                                        stride=stride, padding=padding))
    out = jax.block_until_ready(encoder(x, params))

    assert out.shape == (2, embedding_size, 16, 16), out.shape
    assert bool(jnp.all(jnp.isfinite(out)))
    print("KERNEL_OK")
</pallas_src>

<mosaic_0001>
module attributes {stable_mosaic.version = 11 : i64} {
  func.func @_fused_conv_bn_relu_kernel(%arg0: i32, %arg1: i32, %arg2: memref<512x128xbf16, #tpu.memory_space<vmem>>, %arg3: memref<128x128xbf16, #tpu.memory_space<vmem>>, %arg4: memref<1x128xf32, #tpu.memory_space<vmem>>, %arg5: memref<1x128xf32, #tpu.memory_space<vmem>>, %arg6: memref<512x128xbf16, #tpu.memory_space<vmem>>, %arg7: memref<512x128xf32, #tpu.memory_space<vmem>>, %arg8: memref<1x128xf32, #tpu.memory_space<vmem>>, %arg9: memref<1x128xf32, #tpu.memory_space<vmem>>, %arg10: memref<1x128xf32, #tpu.memory_space<vmem>>, %arg11: memref<1x128xf32, #tpu.memory_space<vmem>>) attributes {dimension_semantics = [#tpu.dimension_semantics<arbitrary>, #tpu.dimension_semantics<arbitrary>], iteration_bounds = array<i64: 2, 1>, scalar_prefetch = 0 : i64, scratch_operands = 5 : i64, tpu.core_type = #tpu.core_type<tc>, window_params = [{transform_indices = @transform_0, window_bounds = array<i64: 512, 128>}, {pipeline_mode = #tpu.pipeline_mode<synchronous>, transform_indices = @transform_1, window_bounds = array<i64: 128, 128>}, {pipeline_mode = #tpu.pipeline_mode<synchronous>, transform_indices = @transform_2, window_bounds = array<i64: 1, 128>}, {pipeline_mode = #tpu.pipeline_mode<synchronous>, transform_indices = @transform_3, window_bounds = array<i64: 1, 128>}, {transform_indices = @transform_4, window_bounds = array<i64: 512, 128>}]} {
    %c512_i32 = arith.constant 512 : i32
    %0 = arith.muli %arg1, %c512_i32 : i32
    %1 = tpu.assume_multiple %0, 8 : i32
    %c0_i32 = arith.constant 0 : i32
    %2 = arith.cmpi eq, %arg0, %c0_i32 : i32
    %3 = arith.extui %2 : i1 to i32
    %c0_i32_0 = arith.constant 0 : i32
    %4 = arith.cmpi ne, %3, %c0_i32_0 : i32
    scf.if %4 {
      %c0_i32_2 = arith.constant 0 : i32
      %8 = arith.cmpi eq, %arg1, %c0_i32_2 : i32
      %9 = arith.extui %8 : i1 to i32
      %c0_i32_3 = arith.constant 0 : i32
      %10 = arith.cmpi ne, %9, %c0_i32_3 : i32
      scf.if %10 {
        %cst_18 = arith.constant 0.000000e+00 : f32
        %27 = vector.broadcast %cst_18 : f32 to vector<1x128xf32>
        %c0_19 = arith.constant 0 : index
        %c0_20 = arith.constant 0 : index
        %28 = vector.load %arg8[%c0_19, %c0_20] : memref<1x128xf32, #tpu.memory_space<vmem>>, vector<1x128xf32>
        tpu.vector_store %arg8[%c0_19, %c0_20], %27 {strides = array<i32>} : memref<1x128xf32, #tpu.memory_space<vmem>>, vector<1x128xf32>,
        %cst_21 = arith.constant 0.000000e+00 : f32
        %29 = vector.broadcast %cst_21 : f32 to vector<1x128xf32>
        %c0_22 = arith.constant 0 : index
        %c0_23 = arith.constant 0 : index
        %30 = vector.load %arg9[%c0_22, %c0_23] : memref<1x128xf32, #tpu.memory_space<vmem>>, vector<1x128xf32>
        tpu.vector_store %arg9[%c0_22, %c0_23], %29 {strides = array<i32>} : memref<1x128xf32, #tpu.memory_space<vmem>>, vector<1x128xf32>,
      } else {
      }
      %c0 = arith.constant 0 : index
      %c0_4 = arith.constant 0 : index
      %11 = vector.load %arg2[%c0, %c0_4] : memref<512x128xbf16, #tpu.memory_space<vmem>>, vector<512x128xbf16>
      %c0_5 = arith.constant 0 : index
      %c0_6 = arith.constant 0 : index
      %12 = vector.load %arg3[%c0_5, %c0_6] : memref<128x128xbf16, #tpu.memory_space<vmem>>, vector<128x128xbf16>
      %cst = arith.constant dense<0.000000e+00> : vector<512x128xf32>
      %13 = tpu.matmul %11, %12, %cst {dimension_numbers = #tpu.dot_dimension_numbers<[1], [0], [0], [1], [0, 0, 1, 1], [], []>} : vector<512x128xbf16>, vector<128x128xbf16>, vector<512x128xf32> -> vector<512x128xf32>
      %14 = arith.index_cast %1 : i32 to index
      %c0_7 = arith.constant 0 : index
      %15 = vector.load %arg7[%14, %c0_7] : memref<512x128xf32, #tpu.memory_space<vmem>>, vector<512x128xf32>
      tpu.vector_store %arg7[%14, %c0_7], %13 {strides = array<i32>} : memref<512x128xf32, #tpu.memory_space<vmem>>, vector<512x128xf32>,
      %c0_8 = arith.constant 0 : index
      %c0_9 = arith.constant 0 : index
      %16 = vector.load %arg8[%c0_8, %c0_9] : memref<1x128xf32, #tpu.memory_space<vmem>>, vector<1x128xf32>
      %cst_10 = arith.constant dense<0.000000e+00> : vector<128xf32>
      %17 = vector.multi_reduction <add>, %13, %cst_10 [0] : vector<512x128xf32> to vector<128xf32>
      %18 = vector.shape_cast %17 : vector<128xf32> to vector<1x128xf32>
      %19 = arith.addf %16, %18 : vector<1x128xf32>
      %c0_11 = arith.constant 0 : index
      %c0_12 = arith.constant 0 : index
      %20 = vector.load %arg8[%c0_11, %c0_12] : memref<1x128xf32, #tpu.memory_space<vmem>>, vector<1x128xf32>
      tpu.vector_store %arg8[%c0_11, %c0_12], %19 {strides = array<i32>} : memref<1x128xf32, #tpu.memory_space<vmem>>, vector<1x128xf32>,
      %c0_13 = arith.constant 0 : index
      %c0_14 = arith.constant 0 : index
      %21 = vector.load %arg9[%c0_13, %c0_14] : memref<1x128xf32, #tpu.memory_space<vmem>>, vector<1x128xf32>
      %22 = arith.mulf %13, %13 : vector<512x128xf32>
      %cst_15 = arith.constant dense<0.000000e+00> : vector<128xf32>
      %23 = vector.multi_reduction <add>, %22, %cst_15 [0] : vector<512x128xf32> to vector<128xf32>
      %24 = vector.shape_cast %23 : vector<128xf32> to vector<1x128xf32>
      %25 = arith.addf %21, %24 : vector<1x128xf32>
      %c0_16 = arith.constant 0 : index
      %c0_17 = arith.constant 0 : index
      %26 = vector.load %arg9[%c0_16, %c0_17] : memref<1x128xf32, #tpu.memory_space<vmem>>, vector<1x128xf32>
      tpu.vector_store %arg9[%c0_16, %c0_17], %25 {strides = array<i32>} : memref<1x128xf32, #tpu.memory_space<vmem>>, vector<1x128xf32>,
    } else {
    }
    %c1_i32 = arith.constant 1 : i32
    %5 = arith.cmpi eq, %arg0, %c1_i32 : i32
    %6 = arith.extui %5 : i1 to i32
    %c0_i32_1 = arith.constant 0 : i32
    %7 = arith.cmpi ne, %6, %c0_i32_1 : i32
    scf.if %7 {
      %c0_i32_2 = arith.constant 0 : i32
      %8 = arith.cmpi eq, %arg1, %c0_i32_2 : i32
      %9 = arith.extui %8 : i1 to i32
      %c0_i32_3 = arith.constant 0 : i32
      %10 = arith.cmpi ne, %9, %c0_i32_3 : i32
      scf.if %10 {
        %c0_10 = arith.constant 0 : index
        %c0_11 = arith.constant 0 : index
        %23 = vector.load %arg8[%c0_10, %c0_11] : memref<1x128xf32, #tpu.memory_space<vmem>>, vector<1x128xf32>
        %cst_12 = arith.constant 0.001953125 : f32
        %24 = vector.broadcast %cst_12 : f32 to vector<1x128xf32>
        %25 = arith.mulf %23, %24 : vector<1x128xf32>
        %c0_13 = arith.constant 0 : index
        %c0_14 = arith.constant 0 : index
        %26 = vector.load %arg9[%c0_13, %c0_14] : memref<1x128xf32, #tpu.memory_space<vmem>>, vector<1x128xf32>
        %cst_15 = arith.constant 0.001953125 : f32
        %27 = vector.broadcast %cst_15 : f32 to vector<1x128xf32>
        %28 = arith.mulf %26, %27 : vector<1x128xf32>
        %29 = arith.mulf %25, %25 : vector<1x128xf32>
        %30 = arith.subf %28, %29 : vector<1x128xf32>
        %cst_16 = arith.constant 0.000000e+00 : f32
        %31 = vector.broadcast %cst_16 : f32 to vector<1x128xf32>
        %32 = arith.maximumf %30, %31 : vector<1x128xf32>
        %c0_17 = arith.constant 0 : index
        %c0_18 = arith.constant 0 : index
        %33 = vector.load %arg4[%c0_17, %c0_18] : memref<1x128xf32, #tpu.memory_space<vmem>>, vector<1x128xf32>
        %cst_19 = arith.constant 9.99999974E-6 : f32
        %34 = vector.broadcast %cst_19 : f32 to vector<1x128xf32>
        %35 = arith.addf %32, %34 : vector<1x128xf32>
        %36 = math.rsqrt %35 : vector<1x128xf32>
        %37 = arith.mulf %33, %36 : vector<1x128xf32>
        %c0_20 = arith.constant 0 : index
        %c0_21 = arith.constant 0 : index
        %38 = vector.load %arg10[%c0_20, %c0_21] : memref<1x128xf32, #tpu.memory_space<vmem>>, vector<1x128xf32>
        tpu.vector_store %arg10[%c0_20, %c0_21], %37 {strides = array<i32>} : memref<1x128xf32, #tpu.memory_space<vmem>>, vector<1x128xf32>,
        %c0_22 = arith.constant 0 : index
        %c0_23 = arith.constant 0 : index
        %39 = vector.load %arg5[%c0_22, %c0_23] : memref<1x128xf32, #tpu.memory_space<vmem>>, vector<1x128xf32>
        %40 = arith.mulf %25, %37 : vector<1x128xf32>
        %41 = arith.subf %39, %40 : vector<1x128xf32>
        %c0_24 = arith.constant 0 : index
        %c0_25 = arith.constant 0 : index
        %42 = vector.load %arg11[%c0_24, %c0_25] : memref<1x128xf32, #tpu.memory_space<vmem>>, vector<1x128xf32>
        tpu.vector_store %arg11[%c0_24, %c0_25], %41 {strides = array<i32>} : memref<1x128xf32, #tpu.memory_space<vmem>>, vector<1x128xf32>,
      } else {
      }
      %11 = arith.index_cast %1 : i32 to index
      %c0 = arith.constant 0 : index
      %12 = vector.load %arg7[%11, %c0] : memref<512x128xf32, #tpu.memory_space<vmem>>, vector<512x128xf32>
      %c0_4 = arith.constant 0 : index
      %c0_5 = arith.constant 0 : index
      %13 = vector.load %arg10[%c0_4, %c0_5] : memref<1x128xf32, #tpu.memory_space<vmem>>, vector<1x128xf32>
      %14 = vector.broadcast %13 : vector<1x128xf32> to vector<512x128xf32>
      %15 = arith.mulf %12, %14 : vector<512x128xf32>
      %c0_6 = arith.constant 0 : index
      %c0_7 = arith.constant 0 : index
      %16 = vector.load %arg11[%c0_6, %c0_7] : memref<1x128xf32, #tpu.memory_space<vmem>>, vector<1x128xf32>
      %17 = vector.broadcast %16 : vector<1x128xf32> to vector<512x128xf32>
      %18 = arith.addf %15, %17 : vector<512x128xf32>
      %cst = arith.constant 0.000000e+00 : f32
      %19 = vector.broadcast %cst : f32 to vector<512x128xf32>
      %20 = arith.maximumf %18, %19 : vector<512x128xf32>
      %21 = arith.truncf %20 : vector<512x128xf32> to vector<512x128xbf16>
      %c0_8 = arith.constant 0 : index
      %c0_9 = arith.constant 0 : index
      %22 = vector.load %arg6[%c0_8, %c0_9] : memref<512x128xbf16, #tpu.memory_space<vmem>>, vector<512x128xbf16>
      tpu.vector_store %arg6[%c0_8, %c0_9], %21 {strides = array<i32>} : memref<512x128xbf16, #tpu.memory_space<vmem>>, vector<512x128xbf16>,
    } else {
    }
    return
  }
  func.func @transform_0(%arg0: i32, %arg1: i32) -> (i32, i32) {
    %c1_i32 = arith.constant 1 : i32
    %0 = arith.subi %c1_i32, %arg0 : i32
    %1 = arith.muli %arg1, %0 : i32
    %c0_i32 = arith.constant 0 : i32
    %2 = arith.muli %c0_i32, %arg0 : i32
    %3 = arith.addi %1, %2 : i32
    %c0_i32_0 = arith.constant 0 : i32
    %c0_i32_1 = arith.constant 0 : i32
    return %3, %c0_i32_0 : i32, i32
  }
  func.func @transform_1(%arg0: i32, %arg1: i32) -> (i32, i32) {
    %c0_i32 = arith.constant 0 : i32
    %c0_i32_0 = arith.constant 0 : i32
    %c0_i32_1 = arith.constant 0 : i32
    return %c0_i32, %c0_i32_0 : i32, i32
  }
  func.func @transform_2(%arg0: i32, %arg1: i32) -> (i32, i32) {
    %c0_i32 = arith.constant 0 : i32
    %c0_i32_0 = arith.constant 0 : i32
    %c0_i32_1 = arith.constant 0 : i32
    return %c0_i32, %c0_i32_0 : i32, i32
  }
  func.func @transform_3(%arg0: i32, %arg1: i32) -> (i32, i32) {
    %c0_i32 = arith.constant 0 : i32
    %c0_i32_0 = arith.constant 0 : i32
    %c0_i32_1 = arith.constant 0 : i32
    return %c0_i32, %c0_i32_0 : i32, i32
  }
  func.func @transform_4(%arg0: i32, %arg1: i32) -> (i32, i32) {
    %0 = arith.muli %arg1, %arg0 : i32
    %c0_i32 = arith.constant 0 : i32
    %c0_i32_0 = arith.constant 0 : i32
    return %0, %c0_i32 : i32, i32
  }
}

module attributes {stable_mosaic.version = 11 : i64} {
  func.func @_fused_conv_bn_relu_kernel(%arg0: i32, %arg1: i32, %arg2: memref<512x384xbf16, #tpu.memory_space<vmem>>, %arg3: memref<384x128xbf16, #tpu.memory_space<vmem>>, %arg4: memref<1x128xf32, #tpu.memory_space<vmem>>, %arg5: memref<1x128xf32, #tpu.memory_space<vmem>>, %arg6: memref<512x128xf32, #tpu.memory_space<vmem>>, %arg7: memref<512x128xf32, #tpu.memory_space<vmem>>, %arg8: memref<1x128xf32, #tpu.memory_space<vmem>>, %arg9: memref<1x128xf32, #tpu.memory_space<vmem>>, %arg10: memref<1x128xf32, #tpu.memory_space<vmem>>, %arg11: memref<1x128xf32, #tpu.memory_space<vmem>>) attributes {dimension_semantics = [#tpu.dimension_semantics<arbitrary>, #tpu.dimension_semantics<arbitrary>], iteration_bounds = array<i64: 2, 1>, scalar_prefetch = 0 : i64, scratch_operands = 5 : i64, tpu.core_type = #tpu.core_type<tc>, window_params = [{transform_indices = @transform_0, window_bounds = array<i64: 512, 384>}, {pipeline_mode = #tpu.pipeline_mode<synchronous>, transform_indices = @transform_1, window_bounds = array<i64: 384, 128>}, {pipeline_mode = #tpu.pipeline_mode<synchronous>, transform_indices = @transform_2, window_bounds = array<i64: 1, 128>}, {pipeline_mode = #tpu.pipeline_mode<synchronous>, transform_indices = @transform_3, window_bounds = array<i64: 1, 128>}, {transform_indices = @transform_4, window_bounds = array<i64: 512, 128>}]} {
    %c512_i32 = arith.constant 512 : i32
    %0 = arith.muli %arg1, %c512_i32 : i32
    %1 = tpu.assume_multiple %0, 8 : i32
    %c0_i32 = arith.constant 0 : i32
    %2 = arith.cmpi eq, %arg0, %c0_i32 : i32
    %3 = arith.extui %2 : i1 to i32
    %c0_i32_0 = arith.constant 0 : i32
    %4 = arith.cmpi ne, %3, %c0_i32_0 : i32
    scf.if %4 {
      %c0_i32_2 = arith.constant 0 : i32
      %8 = arith.cmpi eq, %arg1, %c0_i32_2 : i32
      %9 = arith.extui %8 : i1 to i32
      %c0_i32_3 = arith.constant 0 : i32
      %10 = arith.cmpi ne, %9, %c0_i32_3 : i32
      scf.if %10 {
        %cst_18 = arith.constant 0.000000e+00 : f32
        %27 = vector.broadcast %cst_18 : f32 to vector<1x128xf32>
        %c0_19 = arith.constant 0 : index
        %c0_20 = arith.constant 0 : index
        %28 = vector.load %arg8[%c0_19, %c0_20] : memref<1x128xf32, #tpu.memory_space<vmem>>, vector<1x128xf32>
        tpu.vector_store %arg8[%c0_19, %c0_20], %27 {strides = array<i32>} : memref<1x128xf32, #tpu.memory_space<vmem>>, vector<1x128xf32>,
        %cst_21 = arith.constant 0.000000e+00 : f32
        %29 = vector.broadcast %cst_21 : f32 to vector<1x128xf32>
        %c0_22 = arith.constant 0 : index
        %c0_23 = arith.constant 0 : index
        %30 = vector.load %arg9[%c0_22, %c0_23] : memref<1x128xf32, #tpu.memory_space<vmem>>, vector<1x128xf32>
        tpu.vector_store %arg9[%c0_22, %c0_23], %29 {strides = array<i32>} : memref<1x128xf32, #tpu.memory_space<vmem>>, vector<1x128xf32>,
      } else {
      }
      %c0 = arith.constant 0 : index
      %c0_4 = arith.constant 0 : index
      %11 = vector.load %arg2[%c0, %c0_4] : memref<512x384xbf16, #tpu.memory_space<vmem>>, vector<512x384xbf16>
      %c0_5 = arith.constant 0 : index
      %c0_6 = arith.constant 0 : index
      %12 = vector.load %arg3[%c0_5, %c0_6] : memref<384x128xbf16, #tpu.memory_space<vmem>>, vector<384x128xbf16>
      %cst = arith.constant dense<0.000000e+00> : vector<512x128xf32>
      %13 = tpu.matmul %11, %12, %cst {dimension_numbers = #tpu.dot_dimension_numbers<[1], [0], [0], [1], [0, 0, 1, 1], [], []>} : vector<512x384xbf16>, vector<384x128xbf16>, vector<512x128xf32> -> vector<512x128xf32>
      %14 = arith.index_cast %1 : i32 to index
      %c0_7 = arith.constant 0 : index
      %15 = vector.load %arg7[%14, %c0_7] : memref<512x128xf32, #tpu.memory_space<vmem>>, vector<512x128xf32>
      tpu.vector_store %arg7[%14, %c0_7], %13 {strides = array<i32>} : memref<512x128xf32, #tpu.memory_space<vmem>>, vector<512x128xf32>,
      %c0_8 = arith.constant 0 : index
      %c0_9 = arith.constant 0 : index
      %16 = vector.load %arg8[%c0_8, %c0_9] : memref<1x128xf32, #tpu.memory_space<vmem>>, vector<1x128xf32>
      %cst_10 = arith.constant dense<0.000000e+00> : vector<128xf32>
      %17 = vector.multi_reduction <add>, %13, %cst_10 [0] : vector<512x128xf32> to vector<128xf32>
      %18 = vector.shape_cast %17 : vector<128xf32> to vector<1x128xf32>
      %19 = arith.addf %16, %18 : vector<1x128xf32>
      %c0_11 = arith.constant 0 : index
      %c0_12 = arith.constant 0 : index
      %20 = vector.load %arg8[%c0_11, %c0_12] : memref<1x128xf32, #tpu.memory_space<vmem>>, vector<1x128xf32>
      tpu.vector_store %arg8[%c0_11, %c0_12], %19 {strides = array<i32>} : memref<1x128xf32, #tpu.memory_space<vmem>>, vector<1x128xf32>,
      %c0_13 = arith.constant 0 : index
      %c0_14 = arith.constant 0 : index
      %21 = vector.load %arg9[%c0_13, %c0_14] : memref<1x128xf32, #tpu.memory_space<vmem>>, vector<1x128xf32>
      %22 = arith.mulf %13, %13 : vector<512x128xf32>
      %cst_15 = arith.constant dense<0.000000e+00> : vector<128xf32>
      %23 = vector.multi_reduction <add>, %22, %cst_15 [0] : vector<512x128xf32> to vector<128xf32>
      %24 = vector.shape_cast %23 : vector<128xf32> to vector<1x128xf32>
      %25 = arith.addf %21, %24 : vector<1x128xf32>
      %c0_16 = arith.constant 0 : index
      %c0_17 = arith.constant 0 : index
      %26 = vector.load %arg9[%c0_16, %c0_17] : memref<1x128xf32, #tpu.memory_space<vmem>>, vector<1x128xf32>
      tpu.vector_store %arg9[%c0_16, %c0_17], %25 {strides = array<i32>} : memref<1x128xf32, #tpu.memory_space<vmem>>, vector<1x128xf32>,
    } else {
    }
    %c1_i32 = arith.constant 1 : i32
    %5 = arith.cmpi eq, %arg0, %c1_i32 : i32
    %6 = arith.extui %5 : i1 to i32
    %c0_i32_1 = arith.constant 0 : i32
    %7 = arith.cmpi ne, %6, %c0_i32_1 : i32
    scf.if %7 {
      %c0_i32_2 = arith.constant 0 : i32
      %8 = arith.cmpi eq, %arg1, %c0_i32_2 : i32
      %9 = arith.extui %8 : i1 to i32
      %c0_i32_3 = arith.constant 0 : i32
      %10 = arith.cmpi ne, %9, %c0_i32_3 : i32
      scf.if %10 {
        %c0_10 = arith.constant 0 : index
        %c0_11 = arith.constant 0 : index
        %22 = vector.load %arg8[%c0_10, %c0_11] : memref<1x128xf32, #tpu.memory_space<vmem>>, vector<1x128xf32>
        %cst_12 = arith.constant 0.001953125 : f32
        %23 = vector.broadcast %cst_12 : f32 to vector<1x128xf32>
        %24 = arith.mulf %22, %23 : vector<1x128xf32>
        %c0_13 = arith.constant 0 : index
        %c0_14 = arith.constant 0 : index
        %25 = vector.load %arg9[%c0_13, %c0_14] : memref<1x128xf32, #tpu.memory_space<vmem>>, vector<1x128xf32>
        %cst_15 = arith.constant 0.001953125 : f32
        %26 = vector.broadcast %cst_15 : f32 to vector<1x128xf32>
        %27 = arith.mulf %25, %26 : vector<1x128xf32>
        %28 = arith.mulf %24, %24 : vector<1x128xf32>
        %29 = arith.subf %27, %28 : vector<1x128xf32>
        %cst_16 = arith.constant 0.000000e+00 : f32
        %30 = vector.broadcast %cst_16 : f32 to vector<1x128xf32>
        %31 = arith.maximumf %29, %30 : vector<1x128xf32>
        %c0_17 = arith.constant 0 : index
        %c0_18 = arith.constant 0 : index
        %32 = vector.load %arg4[%c0_17, %c0_18] : memref<1x128xf32, #tpu.memory_space<vmem>>, vector<1x128xf32>
        %cst_19 = arith.constant 9.99999974E-6 : f32
        %33 = vector.broadcast %cst_19 : f32 to vector<1x128xf32>
        %34 = arith.addf %31, %33 : vector<1x128xf32>
        %35 = math.rsqrt %34 : vector<1x128xf32>
        %36 = arith.mulf %32, %35 : vector<1x128xf32>
        %c0_20 = arith.constant 0 : index
        %c0_21 = arith.constant 0 : index
        %37 = vector.load %arg10[%c0_20, %c0_21] : memref<1x128xf32, #tpu.memory_space<vmem>>, vector<1x128xf32>
        tpu.vector_store %arg10[%c0_20, %c0_21], %36 {strides = array<i32>} : memref<1x128xf32, #tpu.memory_space<vmem>>, vector<1x128xf32>,
        %c0_22 = arith.constant 0 : index
        %c0_23 = arith.constant 0 : index
        %38 = vector.load %arg5[%c0_22, %c0_23] : memref<1x128xf32, #tpu.memory_space<vmem>>, vector<1x128xf32>
        %39 = arith.mulf %24, %36 : vector<1x128xf32>
        %40 = arith.subf %38, %39 : vector<1x128xf32>
        %c0_24 = arith.constant 0 : index
        %c0_25 = arith.constant 0 : index
        %41 = vector.load %arg11[%c0_24, %c0_25] : memref<1x128xf32, #tpu.memory_space<vmem>>, vector<1x128xf32>
        tpu.vector_store %arg11[%c0_24, %c0_25], %40 {strides = array<i32>} : memref<1x128xf32, #tpu.memory_space<vmem>>, vector<1x128xf32>,
      } else {
      }
      %11 = arith.index_cast %1 : i32 to index
      %c0 = arith.constant 0 : index
      %12 = vector.load %arg7[%11, %c0] : memref<512x128xf32, #tpu.memory_space<vmem>>, vector<512x128xf32>
      %c0_4 = arith.constant 0 : index
      %c0_5 = arith.constant 0 : index
      %13 = vector.load %arg10[%c0_4, %c0_5] : memref<1x128xf32, #tpu.memory_space<vmem>>, vector<1x128xf32>
      %14 = vector.broadcast %13 : vector<1x128xf32> to vector<512x128xf32>
      %15 = arith.mulf %12, %14 : vector<512x128xf32>
      %c0_6 = arith.constant 0 : index
      %c0_7 = arith.constant 0 : index
      %16 = vector.load %arg11[%c0_6, %c0_7] : memref<1x128xf32, #tpu.memory_space<vmem>>, vector<1x128xf32>
      %17 = vector.broadcast %16 : vector<1x128xf32> to vector<512x128xf32>
      %18 = arith.addf %15, %17 : vector<512x128xf32>
      %cst = arith.constant 0.000000e+00 : f32
      %19 = vector.broadcast %cst : f32 to vector<512x128xf32>
      %20 = arith.maximumf %18, %19 : vector<512x128xf32>
      %c0_8 = arith.constant 0 : index
      %c0_9 = arith.constant 0 : index
      %21 = vector.load %arg6[%c0_8, %c0_9] : memref<512x128xf32, #tpu.memory_space<vmem>>, vector<512x128xf32>
      tpu.vector_store %arg6[%c0_8, %c0_9], %20 {strides = array<i32>} : memref<512x128xf32, #tpu.memory_space<vmem>>, vector<512x128xf32>,
    } else {
    }
    return
  }
  func.func @transform_0(%arg0: i32, %arg1: i32) -> (i32, i32) {
    %c1_i32 = arith.constant 1 : i32
    %0 = arith.subi %c1_i32, %arg0 : i32
    %1 = arith.muli %arg1, %0 : i32
    %c0_i32 = arith.constant 0 : i32
    %2 = arith.muli %c0_i32, %arg0 : i32
    %3 = arith.addi %1, %2 : i32
    %c0_i32_0 = arith.constant 0 : i32
    %c0_i32_1 = arith.constant 0 : i32
    return %3, %c0_i32_0 : i32, i32
  }
  func.func @transform_1(%arg0: i32, %arg1: i32) -> (i32, i32) {
    %c0_i32 = arith.constant 0 : i32
    %c0_i32_0 = arith.constant 0 : i32
    %c0_i32_1 = arith.constant 0 : i32
    return %c0_i32, %c0_i32_0 : i32, i32
  }
  func.func @transform_2(%arg0: i32, %arg1: i32) -> (i32, i32) {
    %c0_i32 = arith.constant 0 : i32
    %c0_i32_0 = arith.constant 0 : i32
    %c0_i32_1 = arith.constant 0 : i32
    return %c0_i32, %c0_i32_0 : i32, i32
  }
  func.func @transform_3(%arg0: i32, %arg1: i32) -> (i32, i32) {
    %c0_i32 = arith.constant 0 : i32
    %c0_i32_0 = arith.constant 0 : i32
    %c0_i32_1 = arith.constant 0 : i32
    return %c0_i32, %c0_i32_0 : i32, i32
  }
  func.func @transform_4(%arg0: i32, %arg1: i32) -> (i32, i32) {
    %0 = arith.muli %arg1, %arg0 : i32
    %c0_i32 = arith.constant 0 : i32
    %c0_i32_0 = arith.constant 0 : i32
    return %0, %c0_i32 : i32, i32
  }
}

</mosaic_0001>

<bundles_post_ra>
// kernel: conv_encoder_2d.2
= control target key start
LH: loop header
LB: loop body
LE: loop exit
PB: predicated region body
PF: predicated region fallthrough
CT: control target
= control target key end

     0   :  { %s2439_s15 = smov 0   ;;  %s2441_s16 = smov 0   ;;  %s3016_s0 = inlined_call_operand.vmem [shape: bf16[512,128], index: 0, kind: input, shape index: {}]   ;;  %s3017_s1 = inlined_call_operand.vmem [shape: bf16[128,128], index: 1, kind: input, shape index: {}]   ;;  %s3018_s2 = inlined_call_operand.vmem [shape: f32[1,128], index: 2, kind: input, shape index: {}]   ;;  %s3019_s3 = inlined_call_operand.vmem [shape: f32[1,128], index: 3, kind: input, shape index: {}]   ;;  %s3020_s4 = inlined_call_operand.vmem [shape: bf16[512,128], index: 4, kind: output, shape index: {}]  }
   0x1   :  { %s2443_s17 = smov 0  }
   0x2 LB: > { %s26_s18 = sadd.s32 1, %s2407_s16  ;;  %p1818_p0 = scmp.ge.s32.totalorder %s2411_s17, 1  ;;  %s2411_s17 = sphi %s2443_s17, %s14_s17   ;;  %s2407_s16 = sphi %s2441_s16, %s3022_s16   ;;  %s2403_s15 = sphi %s2439_s15, %s3021_s15  }
   0x3   : > { %p28_p1 = scmp.ge.s32.totalorder %s26_s18, 2  ;;  %p185_p2 = scmp.lt.s32.totalorder %s2411_s17, 3 }
   0x5   : > { %s3024_s18 = smov (%p28_p1, %s26_s18), 0  ;;  %p186_p3 = pnand %p1818_p0, %p185_p2 }
   0x6   : > { %p1819_p4 = scmp.ne.s32.totalorder (!%p186_p3), %s2403_s15, 0 }
   0x7   : > { %189 = sbr.rel (%p186_p3) target bundleno = 502 (0x1f6), region = 36 }
   0xe   : > { %237 = sbr.rel (%p1819_p4) target bundleno = 405 (0x195), region = 40  ;;  %v2347_v0 = vld [vmem:[%s3017_s1] sm:$0xff] (!%p1819_p4)   ;;  %v2348_v1 = vld [vmem:[%s3017_s1 + $0x8] sm:$0xff] (!%p1819_p4)   ;;  %v2349_v2 = vld [vmem:[%s3017_s1 + $0x10] sm:$0xff] (!%p1819_p4)   ;;  %v2413_v40 = vmov (!%p1819_p4), 0.0  }
   0xf   : > { %2226 = vmatprep.subr.bf16.mxu0 (!%p1819_p4), %v2347_v0  ;;  %2306 = vmatprep.subr.bf16.mxu1 (!%p1819_p4), %v2347_v0  ;;  %v2350_v3 = vld [vmem:[%s3017_s1 + $0x18] sm:$0xff] (!%p1819_p4)   ;;  %v2355_v4 = vld [vmem:[%s3016_s0] sm:$0xff] (!%p1819_p4)   ;;  %v2352_v6 = vld [vmem:[%s3017_s1 + $0x28] sm:$0xff] (!%p1819_p4)   ;;  %242 = vst [vmem:[#allocation3] sm:$0x1] (!%p1819_p4), %v2413_v40 }
  0x10   : > { %2227 = vmatpush3.bf16.msra.mxu0 (!%p1819_p4), %v2347_v0  ;;  %2314 = vmatpush3.bf16.msra.mxu1 (!%p1819_p4), %v2347_v0  ;;  %v2351_v5 = vld [vmem:[%s3017_s1 + $0x20] sm:$0xff] (!%p1819_p4)   ;;  %v2353_v7 = vld [vmem:[%s3017_s1 + $0x30] sm:$0xff] (!%p1819_p4)   ;;  %v2354_v8 = vld [vmem:[%s3017_s1 + $0x38] sm:$0xff] (!%p1819_p4)   ;;  %243 = vst [vmem:[#allocation4] sm:$0x1] (!%p1819_p4), %v2413_v40 }
  0x11   : > { %2228 = vmatprep.subr.bf16.mxu0 (!%p1819_p4), %v2348_v1  ;;  %2307 = vmatprep.subr.bf16.mxu1 (!%p1819_p4), %v2348_v1  ;;  %v2371_v9 = vld [vmem:[%s3016_s0 + $0x80] sm:$0xff] (!%p1819_p4)   ;;  %v2356_v10 = vld [vmem:[%s3016_s0 + $0x8] sm:$0xff] (!%p1819_p4)   ;;  %v2357_v11 = vld [vmem:[%s3016_s0 + $0x10] sm:$0xff] (!%p1819_p4)  }
  0x12   : > { %2242 = vmatprep.mubr.bf16.mxu0 (!%p1819_p4), %v2355_v4  ;;  %2274 = vmatprep.mubr.bf16.mxu1 (!%p1819_p4), %v2371_v9  ;;  %v2372_v12 = vld [vmem:[%s3016_s0 + $0x88] sm:$0xff] (!%p1819_p4)   ;;  %v2373_v13 = vld [vmem:[%s3016_s0 + $0x90] sm:$0xff] (!%p1819_p4)   ;;  %v2358_v14 = vld [vmem:[%s3016_s0 + $0x18] sm:$0xff] (!%p1819_p4)  }
  0x13   : > { %v2359_v15 = vld [vmem:[%s3016_s0 + $0x20] sm:$0xff] (!%p1819_p4)   ;;  %v2374_v16 = vld [vmem:[%s3016_s0 + $0x98] sm:$0xff] (!%p1819_p4)   ;;  %v2360_v18 = vld [vmem:[%s3016_s0 + $0x28] sm:$0xff] (!%p1819_p4)  }
  0x14   : > { %2229 = vmatpush3.bf16.msra.mxu0 (!%p1819_p4), %v2348_v1  ;;  %2315 = vmatpush3.bf16.msra.mxu1 (!%p1819_p4), %v2348_v1  ;;  %v2375_v17 = vld [vmem:[%s3016_s0 + $0xa0] sm:$0xff] (!%p1819_p4)   ;;  %v2376_v19 = vld [vmem:[%s3016_s0 + $0xa8] sm:$0xff] (!%p1819_p4)   ;;  %v2361_v20 = vld [vmem:[%s3016_s0 + $0x30] sm:$0xff] (!%p1819_p4)  }
  0x15   : > { %2230 = vmatprep.subr.bf16.mxu0 %v2349_v2  ;;  %2308 = vmatprep.subr.bf16.mxu1 %v2349_v2  ;;  %v2377_v21 = vld [vmem:[%s3016_s0 + $0xb0] sm:$0xff]   ;;  %v2362_v22 = vld [vmem:[%s3016_s0 + $0x38] sm:$0xff]   ;;  %v2363_v24 = vld [vmem:[%s3016_s0 + $0x40] sm:$0xff]  }
  0x16   : > { %v2378_v23 = vld [vmem:[%s3016_s0 + $0xb8] sm:$0xff]   ;;  %v2379_v25 = vld [vmem:[%s3016_s0 + $0xc0] sm:$0xff]   ;;  %v2364_v26 = vld [vmem:[%s3016_s0 + $0x48] sm:$0xff]  }
  0x17   : > { %v2380_v27 = vld [vmem:[%s3016_s0 + $0xc8] sm:$0xff]   ;;  %v2365_v28 = vld [vmem:[%s3016_s0 + $0x50] sm:$0xff]   ;;  %v2366_v30 = vld [vmem:[%s3016_s0 + $0x58] sm:$0xff]  }
  0x18   : > { %2231 = vmatpush3.bf16.msra.mxu0 %v2349_v2  ;;  %2316 = vmatpush3.bf16.msra.mxu1 %v2349_v2  ;;  %v2381_v29 = vld [vmem:[%s3016_s0 + $0xd0] sm:$0xff]   ;;  %v2382_v31 = vld [vmem:[%s3016_s0 + $0xd8] sm:$0xff]   ;;  %v2367_v32 = vld [vmem:[%s3016_s0 + $0x60] sm:$0xff]  }
  0x19   : > { %2232 = vmatprep.subr.bf16.mxu0 %v2350_v3  ;;  %2309 = vmatprep.subr.bf16.mxu1 %v2350_v3  ;;  %v2383_v33 = vld [vmem:[%s3016_s0 + $0xe0] sm:$0xff]   ;;  %v2368_v34 = vld [vmem:[%s3016_s0 + $0x68] sm:$0xff]   ;;  %v2369_v36 = vld [vmem:[%s3016_s0 + $0x70] sm:$0xff]  }
  0x1a   : > { %v2384_v35 = vld [vmem:[%s3016_s0 + $0xe8] sm:$0xff]   ;;  %v2385_v37 = vld [vmem:[%s3016_s0 + $0xf0] sm:$0xff]   ;;  %v2370_v38 = vld [vmem:[%s3016_s0 + $0x78] sm:$0xff]  }
  0x1b   : > { %v2386_v39 = vld [vmem:[%s3016_s0 + $0xf8] sm:$0xff]  }
  0x1c   : > { %2233 = vmatpush3.bf16.msra.mxu0 %v2350_v3  ;;  %2317 = vmatpush3.bf16.msra.mxu1 %v2350_v3 }
  0x1d   : > { %2234 = vmatprep.subr.bf16.mxu0 %v2351_v5  ;;  %2310 = vmatprep.subr.bf16.mxu1 %v2351_v5 }
  0x20   : > { %2235 = vmatpush3.bf16.msra.mxu0 %v2351_v5  ;;  %2318 = vmatpush3.bf16.msra.mxu1 %v2351_v5 }
  0x21   : > { %2236 = vmatprep.subr.bf16.mxu0 %v2352_v6  ;;  %2311 = vmatprep.subr.bf16.mxu1 %v2352_v6 }
  0x24   : > { %2237 = vmatpush3.bf16.msra.mxu0 %v2352_v6  ;;  %2319 = vmatpush3.bf16.msra.mxu1 %v2352_v6 }
  0x25   : > { %2238 = vmatprep.subr.bf16.mxu0 %v2353_v7  ;;  %2312 = vmatprep.subr.bf16.mxu1 %v2353_v7 }
  0x28   : > { %2239 = vmatpush3.bf16.msra.mxu0 %v2353_v7  ;;  %2320 = vmatpush3.bf16.msra.mxu1 %v2353_v7 }
  0x29   : > { %2240 = vmatprep.subr.bf16.mxu0 %v2354_v8  ;;  %2313 = vmatprep.subr.bf16.mxu1 %v2354_v8 }
  0x2c   : > { %2241 = vmatpush3.bf16.msra.mxu0 %v2354_v8  ;;  %2321 = vmatpush3.bf16.msra.mxu1 %v2354_v8 }
  0x2f   : > { %2243 = vmatmul.mubr.bf16.vlgmr.msra.gmra.mrb[0].mxu0 %v2356_v10  ;;  %2275 = vmatmul.mubr.bf16.vlgmr.msra.gmra.mrb[0].mxu1 %v2372_v12 }
  0x30   : > { %2246 = vmatprep.mubr.bf16.mxu0 %v2357_v11  ;;  %2278 = vmatprep.mubr.bf16.mxu1 %v2373_v13 }
  0x37   : > { %2247 = vmatmul.mubr.bf16.gmra.mrb[4].mxu0 %v2358_v14  ;;  %2279 = vmatmul.mubr.bf16.gmra.mrb[4].mxu1 %v2374_v16 }
  0x38   : > { %2250 = vmatprep.mubr.bf16.mxu0 %v2359_v15  ;;  %2282 = vmatprep.mubr.bf16.mxu1 %v2375_v17 }
  0x3f   : > { %2251 = vmatmul.mubr.bf16.gmra.mrb[8].mxu0 %v2360_v18  ;;  %2283 = vmatmul.mubr.bf16.gmra.mrb[8].mxu1 %v2376_v19 }
  0x40   : > { %2254 = vmatprep.mubr.bf16.mxu0 %v2361_v20  ;;  %2286 = vmatprep.mubr.bf16.mxu1 %v2377_v21 }
  0x47   : > { %2255 = vmatmul.mubr.bf16.gmra.mrb[12].mxu0 %v2362_v22  ;;  %2287 = vmatmul.mubr.bf16.gmra.mrb[12].mxu1 %v2378_v23 }
  0x48   : > { %2258 = vmatprep.mubr.bf16.mxu0 %v2363_v24  ;;  %2290 = vmatprep.mubr.bf16.mxu1 %v2379_v25 }
  0x4f   : > { %2259 = vmatmul.mubr.bf16.gmra.mrb[16].mxu0 %v2364_v26  ;;  %2291 = vmatmul.mubr.bf16.gmra.mrb[16].mxu1 %v2380_v27 }
  0x50   : > { %2262 = vmatprep.mubr.bf16.mxu0 %v2365_v28  ;;  %2294 = vmatprep.mubr.bf16.mxu1 %v2381_v29 }
  0x57   : > { %2263 = vmatmul.mubr.bf16.gmra.mrb[20].mxu0 %v2366_v30  ;;  %2295 = vmatmul.mubr.bf16.gmra.mrb[20].mxu1 %v2382_v31 }
  0x58   : > { %2266 = vmatprep.mubr.bf16.mxu0 %v2367_v32  ;;  %2298 = vmatprep.mubr.bf16.mxu1 %v2383_v33 }
  0x5f   : > { %2267 = vmatmul.mubr.bf16.gmra.mrb[24].mxu0 %v2368_v34  ;;  %2299 = vmatmul.mubr.bf16.gmra.mrb[24].mxu1 %v2384_v35 }
  0x60   : > { %2270 = vmatprep.mubr.bf16.mxu0 %v2369_v36  ;;  %2302 = vmatprep.mubr.bf16.mxu1 %v2385_v37 }
  0x67   : > { %2271 = vmatmul.mubr.bf16.gmra.mrb[28].mxu0 %v2370_v38  ;;  %2303 = vmatmul.mubr.bf16.gmra.mrb[28].mxu1 %v2386_v39 }
 0x102   : > { %v2244_v41 = vpop.f32.mrb[0].mxu0  ;;  %v2580_v42 = vpop.f32.mrb[0].mxu1 }
 0x103   : > { %856 = vst [vmem:[#allocation2 + $0x10] sm:$0xff] %v2244_v41  ;;  %v598_v43 = vpop.f32.mrb[1].mxu0  ;;  %888 = vst [vmem:[#allocation2 + $0x110] sm:$0xff] %v2580_v42  ;;  %v2583_v44 = vpop.f32.mrb[1].mxu1  ;;  %v993_v52 = vmul.f32 %v2244_v41, %v2244_v41 }
 0x104   : > { %854 = vst [vmem:[#allocation2] sm:$0xff] %v598_v43  ;;  %v2245_v45 = vpop.f32.mrb[2].mxu0  ;;  %886 = vst [vmem:[#allocation2 + $0x100] sm:$0xff] %v2583_v44  ;;  %v2586_v46 = vpop.f32.mrb[2].mxu1  ;;  %v991_v49 = vmul.f32 %v598_v43, %v598_v43 }
 0x105   : > { %857 = vst [vmem:[#allocation2 + $0x18] sm:$0xff] %v2245_v45  ;;  %v601_v47 = vpop.f32.mrb[3].mxu0  ;;  %889 = vst [vmem:[#allocation2 + $0x118] sm:$0xff] %v2586_v46  ;;  %v2589_v48 = vpop.f32.mrb[3].mxu1  ;;  %v994_v55 = vmul.f32 %v2245_v45, %v2245_v45 }
 0x106   : > { %855 = vst [vmem:[#allocation2 + $0x8] sm:$0xff] %v601_v47  ;;  %v919_v50 = vadd.f32 %v601_v47, %v598_v43  ;;  %v992_v51 = vmul.f32 %v601_v47, %v601_v47  ;;  %887 = vst [vmem:[#allocation2 + $0x108] sm:$0xff] %v2589_v48 }
 0x108   : > { %v920_v53 = vadd.f32 %v2244_v41, %v919_v50  ;;  %v1055_v54 = vadd.f32 %v992_v51, %v991_v49 }
 0x10a   : > { %v1056_v56 = vadd.f32 %v1055_v54, %v993_v52  ;;  %v2248_v57 = vpop.f32.mrb[4].mxu0  ;;  %v921_v58 = vadd.f32 %v2245_v45, %v920_v53  ;;  %v2592_v59 = vpop.f32.mrb[4].mxu1 }
 0x10b   : > { %860 = vst [vmem:[#allocation2 + $0x30] sm:$0xff] %v2248_v57  ;;  %v614_v60 = vpop.f32.mrb[5].mxu0  ;;  %892 = vst [vmem:[#allocation2 + $0x130] sm:$0xff] %v2592_v59  ;;  %v2595_v61 = vpop.f32.mrb[5].mxu1  ;;  %v997_v8 = vmul.f32 %v2248_v57, %v2248_v57 }
 0x10c   : > { %858 = vst [vmem:[#allocation2 + $0x20] sm:$0xff] %v614_v60  ;;  %v922_v62 = vadd.f32 %v921_v58, %v614_v60  ;;  %v995_v63 = vmul.f32 %v614_v60, %v614_v60  ;;  %v1057_v0 = vadd.f32 %v1056_v56, %v994_v55  ;;  %v2249_v1 = vpop.f32.mrb[6].mxu0  ;;  %890 = vst [vmem:[#allocation2 + $0x120] sm:$0xff] %v2595_v61  ;;  %v2598_v2 = vpop.f32.mrb[6].mxu1 }
 0x10d   : > { %861 = vst [vmem:[#allocation2 + $0x38] sm:$0xff] %v2249_v1  ;;  %v617_v3 = vpop.f32.mrb[7].mxu0  ;;  %893 = vst [vmem:[#allocation2 + $0x138] sm:$0xff] %v2598_v2  ;;  %v2601_v4 = vpop.f32.mrb[7].mxu1  ;;  %v998_v11 = vmul.f32 %v2249_v1, %v2249_v1 }
 0x10e   : > { %v1058_v5 = vadd.f32 %v1057_v0, %v995_v63  ;;  %859 = vst [vmem:[#allocation2 + $0x28] sm:$0xff] %v617_v3  ;;  %v923_v6 = vadd.f32 %v922_v62, %v617_v3  ;;  %v996_v7 = vmul.f32 %v617_v3, %v617_v3  ;;  %891 = vst [vmem:[#allocation2 + $0x128] sm:$0xff] %v2601_v4 }
 0x110   : > { %v924_v9 = vadd.f32 %v2248_v57, %v923_v6  ;;  %v1059_v10 = vadd.f32 %v1058_v5, %v996_v7 }
 0x112   : > { %v1060_v12 = vadd.f32 %v1059_v10, %v997_v8  ;;  %v2252_v13 = vpop.f32.mrb[8].mxu0  ;;  %v925_v14 = vadd.f32 %v2249_v1, %v924_v9  ;;  %v2604_v15 = vpop.f32.mrb[8].mxu1 }
 0x113   : > { %864 = vst [vmem:[#allocation2 + $0x50] sm:$0xff] %v2252_v13  ;;  %v630_v16 = vpop.f32.mrb[9].mxu0  ;;  %896 = vst [vmem:[#allocation2 + $0x150] sm:$0xff] %v2604_v15  ;;  %v2607_v17 = vpop.f32.mrb[9].mxu1  ;;  %v1001_v28 = vmul.f32 %v2252_v13, %v2252_v13 }
 0x114   : > { %862 = vst [vmem:[#allocation2 + $0x40] sm:$0xff] %v630_v16  ;;  %v926_v18 = vadd.f32 %v925_v14, %v630_v16  ;;  %v999_v19 = vmul.f32 %v630_v16, %v630_v16  ;;  %v1061_v20 = vadd.f32 %v1060_v12, %v998_v11  ;;  %v2253_v21 = vpop.f32.mrb[10].mxu0  ;;  %894 = vst [vmem:[#allocation2 + $0x140] sm:$0xff] %v2607_v17  ;;  %v2610_v22 = vpop.f32.mrb[10].mxu1 }
 0x115   : > { %865 = vst [vmem:[#allocation2 + $0x58] sm:$0xff] %v2253_v21  ;;  %v633_v23 = vpop.f32.mrb[11].mxu0  ;;  %897 = vst [vmem:[#allocation2 + $0x158] sm:$0xff] %v2610_v22  ;;  %v2613_v24 = vpop.f32.mrb[11].mxu1  ;;  %v1002_v31 = vmul.f32 %v2253_v21, %v2253_v21 }
 0x116   : > { %v1062_v25 = vadd.f32 %v1061_v20, %v999_v19  ;;  %863 = vst [vmem:[#allocation2 + $0x48] sm:$0xff] %v633_v23  ;;  %v927_v26 = vadd.f32 %v926_v18, %v633_v23  ;;  %v1000_v27 = vmul.f32 %v633_v23, %v633_v23  ;;  %895 = vst [vmem:[#allocation2 + $0x148] sm:$0xff] %v2613_v24 }
 0x118   : > { %v928_v29 = vadd.f32 %v2252_v13, %v927_v26  ;;  %v1063_v30 = vadd.f32 %v1062_v25, %v1000_v27 }
 0x11a   : > { %v1064_v32 = vadd.f32 %v1063_v30, %v1001_v28  ;;  %v2256_v33 = vpop.f32.mrb[12].mxu0  ;;  %v929_v34 = vadd.f32 %v2253_v21, %v928_v29  ;;  %v2616_v35 = vpop.f32.mrb[12].mxu1 }
 0x11b   : > { %868 = vst [vmem:[#allocation2 + $0x70] sm:$0xff] %v2256_v33  ;;  %v646_v36 = vpop.f32.mrb[13].mxu0  ;;  %900 = vst [vmem:[#allocation2 + $0x170] sm:$0xff] %v2616_v35  ;;  %v2619_v37 = vpop.f32.mrb[13].mxu1  ;;  %v1005_v52 = vmul.f32 %v2256_v33, %v2256_v33 }
 0x11c   : > { %866 = vst [vmem:[#allocation2 + $0x60] sm:$0xff] %v646_v36  ;;  %v930_v38 = vadd.f32 %v929_v34, %v646_v36  ;;  %v1003_v39 = vmul.f32 %v646_v36, %v646_v36  ;;  %v1065_v40 = vadd.f32 %v1064_v32, %v1002_v31  ;;  %v2257_v41 = vpop.f32.mrb[14].mxu0  ;;  %898 = vst [vmem:[#allocation2 + $0x160] sm:$0xff] %v2619_v37  ;;  %v2622_v43 = vpop.f32.mrb[14].mxu1 }
 0x11d   : > { %869 = vst [vmem:[#allocation2 + $0x78] sm:$0xff] %v2257_v41  ;;  %v649_v45 = vpop.f32.mrb[15].mxu0  ;;  %901 = vst [vmem:[#allocation2 + $0x178] sm:$0xff] %v2622_v43  ;;  %v2625_v47 = vpop.f32.mrb[15].mxu1  ;;  %v1006_v55 = vmul.f32 %v2257_v41, %v2257_v41 }
 0x11e   : > { %v1066_v49 = vadd.f32 %v1065_v40, %v1003_v39  ;;  %867 = vst [vmem:[#allocation2 + $0x68] sm:$0xff] %v649_v45  ;;  %v931_v50 = vadd.f32 %v930_v38, %v649_v45  ;;  %v1004_v51 = vmul.f32 %v649_v45, %v649_v45  ;;  %899 = vst [vmem:[#allocation2 + $0x168] sm:$0xff] %v2625_v47 }
 0x120   : > { %v932_v53 = vadd.f32 %v2256_v33, %v931_v50  ;;  %v1067_v54 = vadd.f32 %v1066_v49, %v1004_v51 }
 0x122   : > { %v1068_v56 = vadd.f32 %v1067_v54, %v1005_v52  ;;  %v2260_v57 = vpop.f32.mrb[16].mxu0  ;;  %v933_v58 = vadd.f32 %v2257_v41, %v932_v53  ;;  %v2628_v60 = vpop.f32.mrb[16].mxu1 }
 0x123   : > { %872 = vst [vmem:[#allocation2 + $0x90] sm:$0xff] %v2260_v57  ;;  %v662_v62 = vpop.f32.mrb[17].mxu0  ;;  %904 = vst [vmem:[#allocation2 + $0x190] sm:$0xff] %v2628_v60  ;;  %v2631_v63 = vpop.f32.mrb[17].mxu1  ;;  %v1009_v12 = vmul.f32 %v2260_v57, %v2260_v57 }
 0x124   : > { %870 = vst [vmem:[#allocation2 + $0x80] sm:$0xff] %v662_v62  ;;  %v934_v0 = vadd.f32 %v933_v58, %v662_v62  ;;  %v1007_v1 = vmul.f32 %v662_v62, %v662_v62  ;;  %v1069_v3 = vadd.f32 %v1068_v56, %v1006_v55  ;;  %v2261_v5 = vpop.f32.mrb[18].mxu0  ;;  %902 = vst [vmem:[#allocation2 + $0x180] sm:$0xff] %v2631_v63  ;;  %v2634_v6 = vpop.f32.mrb[18].mxu1 }
 0x125   : > { %873 = vst [vmem:[#allocation2 + $0x98] sm:$0xff] %v2261_v5  ;;  %v665_v7 = vpop.f32.mrb[19].mxu0  ;;  %905 = vst [vmem:[#allocation2 + $0x198] sm:$0xff] %v2634_v6  ;;  %v2637_v8 = vpop.f32.mrb[19].mxu1  ;;  %v1010_v16 = vmul.f32 %v2261_v5, %v2261_v5 }
 0x126   : > { %v1070_v9 = vadd.f32 %v1069_v3, %v1007_v1  ;;  %871 = vst [vmem:[#allocation2 + $0x88] sm:$0xff] %v665_v7  ;;  %v935_v10 = vadd.f32 %v934_v0, %v665_v7  ;;  %v1008_v11 = vmul.f32 %v665_v7, %v665_v7  ;;  %903 = vst [vmem:[#allocation2 + $0x188] sm:$0xff] %v2637_v8 }
 0x128   : > { %v936_v13 = vadd.f32 %v2260_v57, %v935_v10  ;;  %v1071_v14 = vadd.f32 %v1070_v9, %v1008_v11 }
 0x12a   : > { %v1072_v18 = vadd.f32 %v1071_v14, %v1009_v12  ;;  %v2264_v19 = vpop.f32.mrb[20].mxu0  ;;  %v937_v20 = vadd.f32 %v2261_v5, %v936_v13  ;;  %v2640_v21 = vpop.f32.mrb[20].mxu1 }
 0x12b   : > { %876 = vst [vmem:[#allocation2 + $0xb0] sm:$0xff] %v2264_v19  ;;  %v678_v23 = vpop.f32.mrb[21].mxu0  ;;  %908 = vst [vmem:[#allocation2 + $0x1b0] sm:$0xff] %v2640_v21  ;;  %v2643_v25 = vpop.f32.mrb[21].mxu1  ;;  %v1013_v38 = vmul.f32 %v2264_v19, %v2264_v19 }
 0x12c   : > { %874 = vst [vmem:[#allocation2 + $0xa0] sm:$0xff] %v678_v23  ;;  %v938_v26 = vadd.f32 %v937_v20, %v678_v23  ;;  %v1011_v27 = vmul.f32 %v678_v23, %v678_v23  ;;  %v1073_v28 = vadd.f32 %v1072_v18, %v1010_v16  ;;  %v2265_v29 = vpop.f32.mrb[22].mxu0  ;;  %906 = vst [vmem:[#allocation2 + $0x1a0] sm:$0xff] %v2643_v25  ;;  %v2646_v30 = vpop.f32.mrb[22].mxu1 }
 0x12d   : > { %877 = vst [vmem:[#allocation2 + $0xb8] sm:$0xff] %v2265_v29  ;;  %v681_v31 = vpop.f32.mrb[23].mxu0  ;;  %909 = vst [vmem:[#allocation2 + $0x1b8] sm:$0xff] %v2646_v30  ;;  %v2649_v32 = vpop.f32.mrb[23].mxu1  ;;  %v1014_v41 = vmul.f32 %v2265_v29, %v2265_v29 }
 0x12e   : > { %v1074_v33 = vadd.f32 %v1073_v28, %v1011_v27  ;;  %875 = vst [vmem:[#allocation2 + $0xa8] sm:$0xff] %v681_v31  ;;  %v939_v34 = vadd.f32 %v938_v26, %v681_v31  ;;  %v1012_v36 = vmul.f32 %v681_v31, %v681_v31  ;;  %907 = vst [vmem:[#allocation2 + $0x1a8] sm:$0xff] %v2649_v32 }
 0x130   : > { %v940_v39 = vadd.f32 %v2264_v19, %v939_v34  ;;  %v1075_v40 = vadd.f32 %v1074_v33, %v1012_v36 }
 0x132   : > { %v1076_v45 = vadd.f32 %v1075_v40, %v1013_v38  ;;  %v2268_v49 = vpop.f32.mrb[24].mxu0  ;;  %v941_v50 = vadd.f32 %v2265_v29, %v940_v39  ;;  %v2652_v51 = vpop.f32.mrb[24].mxu1 }
 0x133   : > { %880 = vst [vmem:[#allocation2 + $0xd0] sm:$0xff] %v2268_v49  ;;  %v694_v52 = vpop.f32.mrb[25].mxu0  ;;  %912 = vst [vmem:[#allocation2 + $0x1d0] sm:$0xff] %v2652_v51  ;;  %v2655_v53 = vpop.f32.mrb[25].mxu1  ;;  %v1017_v7 = vmul.f32 %v2268_v49, %v2268_v49 }
 0x134   : > { %878 = vst [vmem:[#allocation2 + $0xc0] sm:$0xff] %v694_v52  ;;  %v942_v54 = vadd.f32 %v941_v50, %v694_v52  ;;  %v1015_v55 = vmul.f32 %v694_v52, %v694_v52  ;;  %v1077_v56 = vadd.f32 %v1076_v45, %v1014_v41  ;;  %v2269_v57 = vpop.f32.mrb[26].mxu0  ;;  %910 = vst [vmem:[#allocation2 + $0x1c0] sm:$0xff] %v2655_v53  ;;  %v2658_v58 = vpop.f32.mrb[26].mxu1 }
 0x135   : > { %881 = vst [vmem:[#allocation2 + $0xd8] sm:$0xff] %v2269_v57  ;;  %v697_v62 = vpop.f32.mrb[27].mxu0  ;;  %913 = vst [vmem:[#allocation2 + $0x1d8] sm:$0xff] %v2658_v58  ;;  %v2661_v0 = vpop.f32.mrb[27].mxu1  ;;  %v1018_v11 = vmul.f32 %v2269_v57, %v2269_v57  ;;  %v1023_v50 = vmul.f32 %v2583_v44, %v2583_v44 }
 0x136   : > { %v1078_v1 = vadd.f32 %v1077_v56, %v1015_v55  ;;  %879 = vst [vmem:[#allocation2 + $0xc8] sm:$0xff] %v697_v62  ;;  %v943_v3 = vadd.f32 %v942_v54, %v697_v62  ;;  %v1016_v5 = vmul.f32 %v697_v62, %v697_v62  ;;  %911 = vst [vmem:[#allocation2 + $0x1c8] sm:$0xff] %v2661_v0 }
 0x137   : > { %v1025_v62 = vmul.f32 %v2580_v42, %v2580_v42 }
 0x138   : > { %v944_v9 = vadd.f32 %v2268_v49, %v943_v3  ;;  %v1079_v10 = vadd.f32 %v1078_v1, %v1016_v5  ;;  %v1026_v5 = vmul.f32 %v2586_v46, %v2586_v46 }
 0x13a   : > { %v1080_v12 = vadd.f32 %v1079_v10, %v1017_v7  ;;  %v2272_v13 = vpop.f32.mrb[28].mxu0  ;;  %v945_v14 = vadd.f32 %v2269_v57, %v944_v9  ;;  %v2664_v16 = vpop.f32.mrb[28].mxu1  ;;  %v1024_v57 = vmul.f32 %v2589_v48, %v2589_v48 }
 0x13b   : > { %884 = vst [vmem:[#allocation2 + $0xf0] sm:$0xff] %v2272_v13  ;;  %v710_v18 = vpop.f32.mrb[29].mxu0  ;;  %916 = vst [vmem:[#allocation2 + $0x1f0] sm:$0xff] %v2664_v16  ;;  %v2667_v19 = vpop.f32.mrb[29].mxu1  ;;  %v1021_v38 = vmul.f32 %v2272_v13, %v2272_v13 }
 0x13c   : > { %882 = vst [vmem:[#allocation2 + $0xe0] sm:$0xff] %v710_v18  ;;  %v946_v20 = vadd.f32 %v945_v14, %v710_v18  ;;  %v1019_v23 = vmul.f32 %v710_v18, %v710_v18  ;;  %v1081_v26 = vadd.f32 %v1080_v12, %v1018_v11  ;;  %v2273_v27 = vpop.f32.mrb[30].mxu0  ;;  %914 = vst [vmem:[#allocation2 + $0x1e0] sm:$0xff] %v2667_v19  ;;  %v2670_v28 = vpop.f32.mrb[30].mxu1 }
 0x13d   : > { %885 = vst [vmem:[#allocation2 + $0xf8] sm:$0xff] %v2273_v27  ;;  %v713_v29 = vpop.f32.mrb[31].mxu0  ;;  %917 = vst [vmem:[#allocation2 + $0x1f8] sm:$0xff] %v2670_v28  ;;  %v2673_v31 = vpop.f32.mrb[31].mxu1  ;;  %v1022_v41 = vmul.f32 %v2273_v27, %v2273_v27 }
 0x13e   : > { %v1082_v33 = vadd.f32 %v1081_v26, %v1019_v23  ;;  %883 = vst [vmem:[#allocation2 + $0xe8] sm:$0xff] %v713_v29  ;;  %v947_v34 = vadd.f32 %v946_v20, %v713_v29  ;;  %v1020_v36 = vmul.f32 %v713_v29, %v713_v29  ;;  %915 = vst [vmem:[#allocation2 + $0x1e8] sm:$0xff] %v2673_v31 }
 0x140   : > { %v948_v39 = vadd.f32 %v2272_v13, %v947_v34  ;;  %v1083_v40 = vadd.f32 %v1082_v33, %v1020_v36  ;;  %v1028_v13 = vmul.f32 %v2601_v4, %v2601_v4  ;;  %v1032_v33 = vmul.f32 %v2613_v24, %v2613_v24 }
 0x142   : > { %v1084_v45 = vadd.f32 %v1083_v40, %v1021_v38  ;;  %v949_v49 = vadd.f32 %v2273_v27, %v948_v39 }
 0x144   : > { %v950_v52 = vadd.f32 %v949_v49, %v2583_v44  ;;  %v1085_v54 = vadd.f32 %v1084_v45, %v1022_v41  ;;  %v1027_v44 = vmul.f32 %v2595_v61, %v2595_v61  ;;  %v1036_v49 = vmul.f32 %v2625_v47, %v2625_v47 }
 0x146   : > { %v1086_v55 = vadd.f32 %v1085_v54, %v1023_v50  ;;  %v951_v56 = vadd.f32 %v950_v52, %v2589_v48 }
 0x148   : > { %v952_v1 = vadd.f32 %v2580_v42, %v951_v56  ;;  %v1087_v3 = vadd.f32 %v1086_v55, %v1024_v57  ;;  %v1029_v42 = vmul.f32 %v2592_v59, %v2592_v59 }
 0x14a   : > { %v1088_v7 = vadd.f32 %v1087_v3, %v1025_v62  ;;  %v953_v9 = vadd.f32 %v2586_v46, %v952_v1  ;;  %v1030_v46 = vmul.f32 %v2598_v2, %v2598_v2  ;;  %v1040_v1 = vmul.f32 %v2637_v8, %v2637_v8 }
 0x14c   : > { %v954_v10 = vadd.f32 %v953_v9, %v2595_v61  ;;  %v1089_v11 = vadd.f32 %v1088_v7, %v1026_v5  ;;  %v1031_v61 = vmul.f32 %v2607_v17, %v2607_v17 }
 0x14e   : > { %v1090_v12 = vadd.f32 %v1089_v11, %v1027_v44  ;;  %v955_v48 = vadd.f32 %v954_v10, %v2601_v4 }
 0x150   : > { %v956_v14 = vadd.f32 %v2592_v59, %v955_v48  ;;  %v1091_v18 = vadd.f32 %v1090_v12, %v1028_v13  ;;  %v1033_v59 = vmul.f32 %v2604_v15, %v2604_v15  ;;  %v1044_v12 = vmul.f32 %v2649_v32, %v2649_v32 }
 0x152   : > { %v1092_v20 = vadd.f32 %v1091_v18, %v1029_v42  ;;  %v957_v23 = vadd.f32 %v2598_v2, %v956_v14  ;;  %v1034_v2 = vmul.f32 %v2610_v22, %v2610_v22 }
 0x154   : > { %v958_v26 = vadd.f32 %v957_v23, %v2607_v17  ;;  %v1093_v27 = vadd.f32 %v1092_v20, %v1030_v46  ;;  %v1035_v17 = vmul.f32 %v2619_v37, %v2619_v37  ;;  %v1048_v23 = vmul.f32 %v2661_v0, %v2661_v0 }
 0x156   : > { %v1094_v29 = vadd.f32 %v1093_v27, %v1031_v61  ;;  %v959_v4 = vadd.f32 %v958_v26, %v2613_v24 }
 0x158   : > { %v960_v34 = vadd.f32 %v2604_v15, %v959_v4  ;;  %v1095_v36 = vadd.f32 %v1094_v29, %v1032_v33  ;;  %v1037_v15 = vmul.f32 %v2616_v35, %v2616_v35 }
 0x15a   : > { %v1096_v38 = vadd.f32 %v1095_v36, %v1033_v59  ;;  %v961_v39 = vadd.f32 %v2610_v22, %v960_v34  ;;  %v1038_v22 = vmul.f32 %v2622_v43, %v2622_v43  ;;  %v1052_v34 = vmul.f32 %v2673_v31, %v2673_v31 }
 0x15c   : > { %v962_v40 = vadd.f32 %v961_v39, %v2619_v37  ;;  %v1097_v41 = vadd.f32 %v1096_v38, %v1034_v2  ;;  %v1039_v37 = vmul.f32 %v2631_v63, %v2631_v63 }
 0x15e   : > { %v1098_v45 = vadd.f32 %v1097_v41, %v1035_v17  ;;  %v963_v24 = vadd.f32 %v962_v40, %v2625_v47 }
 0x160   : > { %v964_v50 = vadd.f32 %v2616_v35, %v963_v24  ;;  %v1099_v52 = vadd.f32 %v1098_v45, %v1036_v49  ;;  %v1041_v35 = vmul.f32 %v2628_v60, %v2628_v60 }
 0x162   : > { %v1100_v54 = vadd.f32 %v1099_v52, %v1037_v15  ;;  %v965_v55 = vadd.f32 %v2622_v43, %v964_v50  ;;  %v1042_v43 = vmul.f32 %v2634_v6, %v2634_v6  ;;  %v918_v52 = vld [vmem:[#allocation3] sm:$0x1] }
 0x164   : > { %v966_v56 = vadd.f32 %v965_v55, %v2631_v63  ;;  %v1101_v57 = vadd.f32 %v1100_v54, %v1038_v22  ;;  %v1043_v63 = vmul.f32 %v2643_v25, %v2643_v25  ;;  %v990_v54 = vld [vmem:[#allocation4] sm:$0x1] }
 0x166   : > { %v1102_v62 = vadd.f32 %v1101_v57, %v1039_v37  ;;  %v967_v47 = vadd.f32 %v966_v56, %v2637_v8 }
 0x168   : > { %v968_v3 = vadd.f32 %v2628_v60, %v967_v47  ;;  %v1103_v5 = vadd.f32 %v1102_v62, %v1040_v1  ;;  %v1045_v60 = vmul.f32 %v2640_v21, %v2640_v21 }
 0x16a   : > { %v1104_v7 = vadd.f32 %v1103_v5, %v1041_v35  ;;  %v969_v9 = vadd.f32 %v2634_v6, %v968_v3  ;;  %v1046_v6 = vmul.f32 %v2646_v30, %v2646_v30 }
 0x16c   : > { %v970_v44 = vadd.f32 %v969_v9, %v2643_v25  ;;  %v1105_v10 = vadd.f32 %v1104_v7, %v1042_v43  ;;  %v1047_v25 = vmul.f32 %v2655_v53, %v2655_v53 }
 0x16e   : > { %v1106_v11 = vadd.f32 %v1105_v10, %v1043_v63  ;;  %v971_v8 = vadd.f32 %v970_v44, %v2649_v32 }
 0x170   : > { %v972_v48 = vadd.f32 %v2640_v21, %v971_v8  ;;  %v1107_v13 = vadd.f32 %v1106_v11, %v1044_v12  ;;  %v1049_v21 = vmul.f32 %v2652_v51, %v2652_v51 }
 0x172   : > { %v1108_v42 = vadd.f32 %v1107_v13, %v1045_v60  ;;  %v973_v14 = vadd.f32 %v2646_v30, %v972_v48  ;;  %v1050_v30 = vmul.f32 %v2658_v58, %v2658_v58 }
 0x174   : > { %v974_v18 = vadd.f32 %v973_v14, %v2655_v53  ;;  %v1109_v46 = vadd.f32 %v1108_v42, %v1046_v6  ;;  %v1051_v53 = vmul.f32 %v2667_v19, %v2667_v19 }
 0x176   : > { %v1110_v20 = vadd.f32 %v1109_v46, %v1047_v25  ;;  %v975_v32 = vadd.f32 %v974_v18, %v2661_v0 }
 0x178   : > { %v976_v61 = vadd.f32 %v2652_v51, %v975_v32  ;;  %v1111_v26 = vadd.f32 %v1110_v20, %v1048_v23  ;;  %v1053_v51 = vmul.f32 %v2664_v16, %v2664_v16 }
 0x17a   : > { %v1112_v27 = vadd.f32 %v1111_v26, %v1049_v21  ;;  %v977_v29 = vadd.f32 %v2658_v58, %v976_v61  ;;  %v1054_v58 = vmul.f32 %v2670_v28, %v2670_v28 }
 0x17c   : > { %v978_v4 = vadd.f32 %v977_v29, %v2667_v19  ;;  %v1113_v33 = vadd.f32 %v1112_v27, %v1050_v30 }
 0x17e   : > { %v1114_v59 = vadd.f32 %v1113_v33, %v1051_v53  ;;  %v979_v0 = vadd.f32 %v978_v4, %v2673_v31 }
 0x180   : > { %v980_v36 = vadd.f32 %v2664_v16, %v979_v0  ;;  %v1115_v2 = vadd.f32 %v1114_v59, %v1052_v34 }
 0x182   : > { %v981_v38 = vadd.f32 %v2670_v28, %v980_v36  ;;  %v1116_v39 = vadd.f32 %v1115_v2, %v1053_v51 }
 0x184   : > { %v982_v19 = vrot.slane %v981_v38, 4  ;;  %v1117_v17 = vadd.f32 %v1116_v39, %v1054_v58 }
 0x186   : > { %v983_v40 = vadd.f32 %v982_v19, %v981_v38  ;;  %v1118_v41 = vrot.slane %v1117_v17, 4 }
 0x188   : > { %v984_v45 = vrot.slane %v983_v40, 2  ;;  %v1119_v24 = vadd.f32 %v1118_v41, %v1117_v17 }
 0x18a   : > { %v985_v49 = vadd.f32 %v984_v45, %v983_v40  ;;  %v1120_v31 = vrot.slane %v1119_v24, 2 }
 0x18c   : > { %v986_v15 = vrot.slane %v985_v49, 1  ;;  %v1121_v50 = vadd.f32 %v1120_v31, %v1119_v24 }
 0x18e   : > { %v987_v22 = vadd.f32 %v986_v15, %v985_v49  ;;  %v1122_v16 = vrot.slane %v1121_v50, 1 }
 0x190   : > { %v988_v55 = vadd.f32 %v987_v22, %v918_v52  ;;  %v1123_v37 = vadd.f32 %v1122_v16, %v1121_v50 }
 0x192   : > { %989 = vst [vmem:[#allocation3] sm:$0x1] %v988_v55  ;;  %v1124_v56 = vadd.f32 %v1123_v37, %v990_v54 }
 0x194   : > { %1125 = vst [vmem:[#allocation4] sm:$0x1] %v1124_v56 }
 0x195 PF: > { %p1860_p5 = scmp.ne.s32.totalorder %s2403_s15, 1 }
 0x196   : > { %v1141_v43 = vld [vmem:[%s3018_s2] sm:$0x1] (!%p1860_p5)  ;;  %v1152_v8 = vld [vmem:[#allocation2 + $0x8] sm:$0xff] (!%p1860_p5)  ;;  %v1153_v12 = vld [vmem:[#allocation2 + $0x10] sm:$0xff] (!%p1860_p5) }
 0x197   : > { %1129 = sbr.rel (%p1860_p5) target bundleno = 502 (0x1f6), region = 48  ;;  %v1146_v63 = vld [vmem:[%s3019_s3] sm:$0x1] (!%p1860_p5)  ;;  %v1154_v60 = vld [vmem:[#allocation2 + $0x18] sm:$0xff] (!%p1860_p5)  ;;  %v1156_v13 = vld [vmem:[#allocation2 + $0x28] sm:$0xff] (!%p1860_p5) }
 0x198   : > { %v1151_v11 = vld [vmem:[#allocation2] sm:$0xff] (!%p1860_p5)  ;;  %v1157_v6 = vld [vmem:[#allocation2 + $0x30] sm:$0xff] (!%p1860_p5)  ;;  %v1158_v42 = vld [vmem:[#allocation2 + $0x38] sm:$0xff] (!%p1860_p5) }
 0x199   : > { %v1134_v28 = vld [vmem:[#allocation3] sm:$0x1] (!%p1860_p5)  ;;  %v1160_v25 = vld [vmem:[#allocation2 + $0x48] sm:$0xff] (!%p1860_p5)  ;;  %v1161_v18 = vld [vmem:[#allocation2 + $0x50] sm:$0xff] (!%p1860_p5) }
 0x19a   : > { %v1135_v62 = vmul.f32 (!%p1860_p5), 0.001953125, %v1134_v28  ;;  %v1155_v48 = vld [vmem:[#allocation2 + $0x20] sm:$0xff] (!%p1860_p5)  ;;  %v1162_v20 = vld [vmem:[#allocation2 + $0x58] sm:$0xff] (!%p1860_p5)  ;;  %v1164_v30 = vld [vmem:[#allocation2 + $0x68] sm:$0xff] (!%p1860_p5) }
 0x19b   : > { %v1136_v57 = vld [vmem:[#allocation4] sm:$0x1] (!%p1860_p5)  ;;  %v1165_v27 = vld [vmem:[#allocation2 + $0x70] sm:$0xff] (!%p1860_p5)  ;;  %v1166_v29 = vld [vmem:[#allocation2 + $0x78] sm:$0xff] (!%p1860_p5) }
 0x19c   : > { %v1137_v47 = vmul.f32 (!%p1860_p5), 0.001953125, %v1136_v57  ;;  %v1138_v1 = vmul.f32 (!%p1860_p5), %v1135_v62, %v1135_v62  ;;  %v1159_v14 = vld [vmem:[#allocation2 + $0x40] sm:$0xff] (!%p1860_p5) }
 0x19d   : > { %v1163_v32 = vld [vmem:[#allocation2 + $0x60] sm:$0xff] (!%p1860_p5) }
 0x19e   : > { %v1139_v35 = vsub.f32 %v1137_v47, %v1138_v1 }
 0x1a0   : > { %v1140_v3 = vmax.f32 %v1139_v35, 0.0 }
 0x1a2   : > { %v1142_v5 = vadd.f32 1e-05, %v1140_v3 }
 0x1a4   : > { %2387 = vrsqrt.f32 %v1142_v5 }
 0x1ae   : > { %v2388_v7 = vpop.eup %2387 }
 0x1af   : > { %v1144_v9 = vmul.f32 %v2388_v7, %v1141_v43  ;;  %v1167_v43 = vld [vmem:[#allocation2 + $0x80] sm:$0xff] }
 0x1b1   : > { %1145 = vst [vmem:[#allocation5] sm:$0x1] %v1144_v9  ;;  %v1147_v44 = vmul.f32 %v1144_v9, %v1135_v62 }
 0x1b3   : > { %v1148_v10 = vsub.f32 %v1146_v63, %v1147_v44 }
 0x1b5   : > { %1149 = vst [vmem:[#allocation6] sm:$0x1] %v1148_v10  ;;  %v1168_v10 = vld [vmem:[#allocation2 + $0x88] sm:$0xff] }
 0x1b8   : > { %v2779_v46 = vld [vmem:[#allocation5] ss:$0 sm:$0xff] }
 0x1b9   : > { %v1222_v23 = vmul.f32 %v2779_v46, %v1151_v11  ;;  %v1223_v21 = vmul.f32 %v2779_v46, %v1152_v8  ;;  %v1224_v61 = vmul.f32 %v2779_v46, %v1153_v12  ;;  %v1225_v26 = vmul.f32 %v2779_v46, %v1154_v60 }
 0x1ba   : > { %v1226_v53 = vmul.f32 %v2779_v46, %v1155_v48  ;;  %v1227_v4 = vmul.f32 %v2779_v46, %v1156_v13  ;;  %v1228_v33 = vmul.f32 %v2779_v46, %v1157_v6  ;;  %v1229_v59 = vmul.f32 %v2779_v46, %v1158_v42  ;;  %v1169_v48 = vld [vmem:[#allocation2 + $0x90] sm:$0xff]  ;;  %v1170_v13 = vld [vmem:[#allocation2 + $0x98] sm:$0xff] }
 0x1bb   : > { %v1230_v0 = vmul.f32 %v2779_v46, %v1159_v14  ;;  %v1231_v34 = vmul.f32 %v2779_v46, %v1160_v25  ;;  %v1232_v51 = vmul.f32 %v2779_v46, %v1161_v18  ;;  %v1233_v36 = vmul.f32 %v2779_v46, %v1162_v20  ;;  %v1171_v18 = vld [vmem:[#allocation2 + $0xa0] sm:$0xff]  ;;  %v1172_v20 = vld [vmem:[#allocation2 + $0xa8] sm:$0xff] }
 0x1bc   : > { %v2793_v2 = vld [vmem:[#allocation6] ss:$0 sm:$0xff]  ;;  %v1234_v58 = vmul.f32 %v2779_v46, %v1163_v32  ;;  %v1235_v38 = vmul.f32 %v2779_v46, %v1164_v30  ;;  %v1236_v39 = vmul.f32 %v2779_v46, %v1165_v27  ;;  %v1237_v19 = vmul.f32 %v2779_v46, %v1166_v29 }
 0x1bd   : > { %v1293_v17 = vadd.f32 %v2793_v2, %v1222_v23  ;;  %v1294_v40 = vadd.f32 %v2793_v2, %v1223_v21  ;;  %v1295_v41 = vadd.f32 %v2793_v2, %v1224_v61  ;;  %v1296_v45 = vadd.f32 %v2793_v2, %v1225_v26  ;;  %v1173_v26 = vld [vmem:[#allocation2 + $0xb0] sm:$0xff] }
 0x1be   : > { %v1297_v24 = vadd.f32 %v2793_v2, %v1226_v53  ;;  %v1298_v49 = vadd.f32 %v2793_v2, %v1227_v4  ;;  %v1299_v31 = vadd.f32 %v2793_v2, %v1228_v33  ;;  %v1300_v15 = vadd.f32 %v2793_v2, %v1229_v59  ;;  %v1174_v4 = vld [vmem:[#allocation2 + $0xb8] sm:$0xff] }
 0x1bf   : > { %v1357_v50 = vmax.f32 %v1293_v17, 0.0  ;;  %v1358_v52 = vmax.f32 %v1294_v40, 0.0  ;;  %v1359_v22 = vmax.f32 %v1295_v41, 0.0  ;;  %v1360_v16 = vmax.f32 %v1296_v45, 0.0  ;;  %v1176_v45 = vld [vmem:[#allocation2 + $0xc8] sm:$0xff] }
 0x1c0   : > { %v1361_v54 = vmax.f32 %v1297_v24, 0.0  ;;  %v1362_v55 = vmax.f32 %v1298_v49, 0.0  ;;  %v1363_v37 = vmax.f32 %v1299_v31, 0.0  ;;  %v1364_v56 = vmax.f32 %v1300_v15, 0.0 }
 0x1c1   : > { %v1998_v28 = vpack.c.bf16 %v1358_v52, %v1357_v50  ;;  %v2003_v57 = vpack.c.bf16 %v1360_v16, %v1359_v22  ;;  %v1301_v62 = vadd.f32 %v2793_v2, %v1230_v0  ;;  %v1302_v47 = vadd.f32 %v2793_v2, %v1231_v34  ;;  %v1177_v50 = vld [vmem:[#allocation2 + $0xd0] sm:$0xff]  ;;  %v1178_v52 = vld [vmem:[#allocation2 + $0xd8] sm:$0xff] }
 0x1c2   : > { %v2008_v1 = vpack.c.bf16 %v1362_v55, %v1361_v54  ;;  %v2013_v35 = vpack.c.bf16 %v1364_v56, %v1363_v37  ;;  %v1303_v3 = vadd.f32 %v2793_v2, %v1232_v51  ;;  %v1304_v5 = vadd.f32 %v2793_v2, %v1233_v36  ;;  %v1175_v51 = vld [vmem:[#allocation2 + $0xc0] sm:$0xff]  ;;  %v1180_v56 = vld [vmem:[#allocation2 + $0xe8] sm:$0xff] }
 0x1c3   : > { %1999 = vst [vmem:[%s3020_s4] sm:$0xff] %v1998_v28   ;;  %2155 = vst [vmem:[%s3020_s4 + $0x8] sm:$0xff] %v2003_v57   ;;  %v1365_v7 = vmax.f32 %v1301_v62, 0.0  ;;  %v1366_v9 = vmax.f32 %v1302_v47, 0.0  ;;  %v1305_v63 = vadd.f32 %v2793_v2, %v1234_v58  ;;  %v1306_v44 = vadd.f32 %v2793_v2, %v1235_v38  ;;  %v1179_v37 = vld [vmem:[#allocation2 + $0xe0] sm:$0xff] }
 0x1c4   : > { %2156 = vst [vmem:[%s3020_s4 + $0x10] sm:$0xff] %v2008_v1   ;;  %2157 = vst [vmem:[%s3020_s4 + $0x18] sm:$0xff] %v2013_v35   ;;  %v1367_v11 = vmax.f32 %v1303_v3, 0.0  ;;  %v1368_v8 = vmax.f32 %v1304_v5, 0.0  ;;  %v1307_v12 = vadd.f32 %v2793_v2, %v1236_v39  ;;  %v1308_v60 = vadd.f32 %v2793_v2, %v1237_v19  ;;  %v1181_v1 = vld [vmem:[#allocation2 + $0xf0] sm:$0xff] }
 0x1c5   : > { %v2018_v6 = vpack.c.bf16 %v1366_v9, %v1365_v7  ;;  %v1369_v42 = vmax.f32 %v1305_v63, 0.0  ;;  %v1370_v14 = vmax.f32 %v1306_v44, 0.0  ;;  %v1238_v25 = vmul.f32 %v2779_v46, %v1167_v43  ;;  %v1182_v7 = vld [vmem:[#allocation2 + $0xf8] sm:$0xff] }
 0x1c6   : > { %v2023_v32 = vpack.c.bf16 %v1368_v8, %v1367_v11  ;;  %v1371_v23 = vmax.f32 %v1307_v12, 0.0  ;;  %v1372_v21 = vmax.f32 %v1308_v60, 0.0  ;;  %v1239_v61 = vmul.f32 %v2779_v46, %v1168_v10  ;;  %v1183_v11 = vld [vmem:[#allocation2 + $0x100] sm:$0xff] }
 0x1c7   : > { %2158 = vst [vmem:[%s3020_s4 + $0x20] sm:$0xff] %v2018_v6   ;;  %v2028_v30 = vpack.c.bf16 %v1370_v14, %v1369_v42  ;;  %v1309_v27 = vadd.f32 %v2793_v2, %v1238_v25  ;;  %v1240_v29 = vmul.f32 %v2779_v46, %v1169_v48  ;;  %v1241_v53 = vmul.f32 %v2779_v46, %v1170_v13  ;;  %v1184_v25 = vld [vmem:[#allocation2 + $0x108] sm:$0xff] }
 0x1c8   : > { %2159 = vst [vmem:[%s3020_s4 + $0x28] sm:$0xff] %v2023_v32   ;;  %v2033_v33 = vpack.c.bf16 %v1372_v21, %v1371_v23  ;;  %v1310_v59 = vadd.f32 %v2793_v2, %v1239_v61  ;;  %v1242_v0 = vmul.f32 %v2779_v46, %v1171_v18  ;;  %v1243_v34 = vmul.f32 %v2779_v46, %v1172_v20  ;;  %v1185_v21 = vld [vmem:[#allocation2 + $0x110] sm:$0xff]  ;;  %v1186_v61 = vld [vmem:[#allocation2 + $0x118] sm:$0xff] }
 0x1c9   : > { %2160 = vst [vmem:[%s3020_s4 + $0x30] sm:$0xff] %v2028_v30   ;;  %v1373_v36 = vmax.f32 %v1309_v27, 0.0  ;;  %v1311_v58 = vadd.f32 %v2793_v2, %v1240_v29  ;;  %v1312_v38 = vadd.f32 %v2793_v2, %v1241_v53  ;;  %v1244_v39 = vmul.f32 %v2779_v46, %v1173_v26  ;;  %v1187_v53 = vld [vmem:[#allocation2 + $0x120] sm:$0xff] }
 0x1ca   : > { %2161 = vst [vmem:[%s3020_s4 + $0x38] sm:$0xff] %v2033_v33   ;;  %v1374_v19 = vmax.f32 %v1310_v59, 0.0  ;;  %v1313_v17 = vadd.f32 %v2793_v2, %v1242_v0  ;;  %v1314_v40 = vadd.f32 %v2793_v2, %v1243_v34  ;;  %v1245_v41 = vmul.f32 %v2779_v46, %v1174_v4  ;;  %v1188_v4 = vld [vmem:[#allocation2 + $0x128] sm:$0xff] }
 0x1cb   : > { %v1375_v24 = vmax.f32 %v1311_v58, 0.0  ;;  %v1376_v49 = vmax.f32 %v1312_v38, 0.0  ;;  %v1315_v31 = vadd.f32 %v2793_v2, %v1244_v39  ;;  %v1246_v15 = vmul.f32 %v2779_v46, %v1175_v51  ;;  %v1189_v51 = vld [vmem:[#allocation2 + $0x130] sm:$0xff] }
 0x1cc   : > { %v2038_v22 = vpack.c.bf16 %v1374_v19, %v1373_v36  ;;  %v1377_v16 = vmax.f32 %v1313_v17, 0.0  ;;  %v1378_v54 = vmax.f32 %v1314_v40, 0.0  ;;  %v1316_v55 = vadd.f32 %v2793_v2, %v1245_v41  ;;  %v1190_v19 = vld [vmem:[#allocation2 + $0x138] sm:$0xff] }
 0x1cd   : > { %v2043_v28 = vpack.c.bf16 %v1376_v49, %v1375_v24  ;;  %v1379_v57 = vmax.f32 %v1315_v31, 0.0  ;;  %v1247_v62 = vmul.f32 %v2779_v46, %v1176_v45  ;;  %v1317_v47 = vadd.f32 %v2793_v2, %v1246_v15  ;;  %v1191_v24 = vld [vmem:[#allocation2 + $0x140] sm:$0xff] }
 0x1ce   : > { %2162 = vst [vmem:[%s3020_s4 + $0x40] sm:$0xff] %v2038_v22   ;;  %v2048_v35 = vpack.c.bf16 %v1378_v54, %v1377_v16  ;;  %v1380_v3 = vmax.f32 %v1316_v55, 0.0  ;;  %v1248_v5 = vmul.f32 %v2779_v46, %v1177_v50  ;;  %v1249_v43 = vmul.f32 %v2779_v46, %v1178_v52  ;;  %v1192_v55 = vld [vmem:[#allocation2 + $0x148] sm:$0xff] }
 0x1cf   : > { %2163 = vst [vmem:[%s3020_s4 + $0x48] sm:$0xff] %v2043_v28   ;;  %v1318_v9 = vadd.f32 %v2793_v2, %v1247_v62  ;;  %v1381_v63 = vmax.f32 %v1317_v47, 0.0  ;;  %v1250_v44 = vmul.f32 %v2779_v46, %v1179_v37  ;;  %v1251_v10 = vmul.f32 %v2779_v46, %v1180_v56  ;;  %v1193_v62 = vld [vmem:[#allocation2 + $0x150] sm:$0xff]  ;;  %v1194_v47 = vld [vmem:[#allocation2 + $0x158] sm:$0xff] }
 0x1d0   : > { %2164 = vst [vmem:[%s3020_s4 + $0x50] sm:$0xff] %v2048_v35   ;;  %v2053_v8 = vpack.c.bf16 %v1380_v3, %v1379_v57  ;;  %v1319_v12 = vadd.f32 %v2793_v2, %v1248_v5  ;;  %v1320_v60 = vadd.f32 %v2793_v2, %v1249_v43  ;;  %v1252_v48 = vmul.f32 %v2779_v46, %v1181_v1  ;;  %v1195_v43 = vld [vmem:[#allocation2 + $0x160] sm:$0xff] }
 0x1d1   : > { %v1382_v13 = vmax.f32 %v1318_v9, 0.0  ;;  %v1321_v6 = vadd.f32 %v2793_v2, %v1250_v44  ;;  %v1322_v42 = vadd.f32 %v2793_v2, %v1251_v10  ;;  %v1253_v14 = vmul.f32 %v2779_v46, %v1182_v7  ;;  %v1196_v7 = vld [vmem:[#allocation2 + $0x168] sm:$0xff] }
 0x1d2   : > { %2165 = vst [vmem:[%s3020_s4 + $0x58] sm:$0xff] %v2053_v8   ;;  %v1383_v18 = vmax.f32 %v1319_v12, 0.0  ;;  %v1384_v20 = vmax.f32 %v1320_v60, 0.0  ;;  %v1323_v32 = vadd.f32 %v2793_v2, %v1252_v48  ;;  %v1254_v23 = vmul.f32 %v2779_v46, %v1183_v11  ;;  %v1197_v11 = vld [vmem:[#allocation2 + $0x170] sm:$0xff] }
 0x1d3   : > { %v2058_v26 = vpack.c.bf16 %v1382_v13, %v1381_v63  ;;  %v1385_v30 = vmax.f32 %v1321_v6, 0.0  ;;  %v1386_v27 = vmax.f32 %v1322_v42, 0.0  ;;  %v1324_v29 = vadd.f32 %v2793_v2, %v1253_v14  ;;  %v1198_v13 = vld [vmem:[#allocation2 + $0x178] sm:$0xff] }
 0x1d4   : > { %v2063_v33 = vpack.c.bf16 %v1384_v20, %v1383_v18  ;;  %v1387_v59 = vmax.f32 %v1323_v32, 0.0  ;;  %v1255_v0 = vmul.f32 %v2779_v46, %v1184_v25  ;;  %v1325_v34 = vadd.f32 %v2793_v2, %v1254_v23  ;;  %v1199_v18 = vld [vmem:[#allocation2 + $0x180] sm:$0xff] }
 0x1d5   : > { %2166 = vst [vmem:[%s3020_s4 + $0x60] sm:$0xff] %v2058_v26   ;;  %v2068_v36 = vpack.c.bf16 %v1386_v27, %v1385_v30  ;;  %v1388_v58 = vmax.f32 %v1324_v29, 0.0  ;;  %v1256_v38 = vmul.f32 %v2779_v46, %v1185_v21  ;;  %v1257_v39 = vmul.f32 %v2779_v46, %v1186_v61  ;;  %v1200_v29 = vld [vmem:[#allocation2 + $0x188] sm:$0xff] }
 0x1d6   : > { %2167 = vst [vmem:[%s3020_s4 + $0x68] sm:$0xff] %v2063_v33   ;;  %v1326_v17 = vadd.f32 %v2793_v2, %v1255_v0  ;;  %v1389_v40 = vmax.f32 %v1325_v34, 0.0  ;;  %v1258_v41 = vmul.f32 %v2779_v46, %v1187_v53  ;;  %v1259_v45 = vmul.f32 %v2779_v46, %v1188_v4  ;;  %v1201_v0 = vld [vmem:[#allocation2 + $0x190] sm:$0xff]  ;;  %v1202_v34 = vld [vmem:[#allocation2 + $0x198] sm:$0xff] }
 0x1d7   : > { %2168 = vst [vmem:[%s3020_s4 + $0x70] sm:$0xff] %v2068_v36   ;;  %v2073_v49 = vpack.c.bf16 %v1388_v58, %v1387_v59  ;;  %v1327_v31 = vadd.f32 %v2793_v2, %v1256_v38  ;;  %v1328_v15 = vadd.f32 %v2793_v2, %v1257_v39  ;;  %v1260_v50 = vmul.f32 %v2779_v46, %v1189_v51  ;;  %v1203_v39 = vld [vmem:[#allocation2 + $0x1a0] sm:$0xff] }
 0x1d8   : > { %v1390_v52 = vmax.f32 %v1326_v17, 0.0  ;;  %v1329_v22 = vadd.f32 %v2793_v2, %v1258_v41  ;;  %v1330_v16 = vadd.f32 %v2793_v2, %v1259_v45  ;;  %v1261_v54 = vmul.f32 %v2779_v46, %v1190_v19  ;;  %v1204_v19 = vld [vmem:[#allocation2 + $0x1a8] sm:$0xff] }
 0x1d9   : > { %2169 = vst [vmem:[%s3020_s4 + $0x78] sm:$0xff] %v2073_v49   ;;  %v1391_v37 = vmax.f32 %v1327_v31, 0.0  ;;  %v1392_v56 = vmax.f32 %v1328_v15, 0.0  ;;  %v1331_v28 = vadd.f32 %v2793_v2, %v1260_v50  ;;  %v1262_v57 = vmul.f32 %v2779_v46, %v1191_v24  ;;  %v1205_v24 = vld [vmem:[#allocation2 + $0x1b0] sm:$0xff] }
 0x1da   : > { %v2078_v1 = vpack.c.bf16 %v1390_v52, %v1389_v40  ;;  %v1393_v35 = vmax.f32 %v1329_v22, 0.0  ;;  %v1394_v3 = vmax.f32 %v1330_v16, 0.0  ;;  %v1332_v5 = vadd.f32 %v2793_v2, %v1261_v54  ;;  %v1206_v52 = vld [vmem:[#allocation2 + $0x1b8] sm:$0xff] }
 0x1db   : > { %v2083_v9 = vpack.c.bf16 %v1392_v56, %v1391_v37  ;;  %v1395_v63 = vmax.f32 %v1331_v28, 0.0  ;;  %v1263_v44 = vmul.f32 %v2779_v46, %v1192_v55  ;;  %v1333_v10 = vadd.f32 %v2793_v2, %v1262_v57  ;;  %v1207_v37 = vld [vmem:[#allocation2 + $0x1c0] sm:$0xff] }
 0x1dc   : > { %2170 = vst [vmem:[%s3020_s4 + $0x80] sm:$0xff] %v2078_v1   ;;  %v2088_v8 = vpack.c.bf16 %v1394_v3, %v1393_v35  ;;  %v1396_v12 = vmax.f32 %v1332_v5, 0.0  ;;  %v1264_v60 = vmul.f32 %v2779_v46, %v1193_v62  ;;  %v1265_v48 = vmul.f32 %v2779_v46, %v1194_v47  ;;  %v1208_v5 = vld [vmem:[#allocation2 + $0x1c8] sm:$0xff] }
 0x1dd   : > { %2171 = vst [vmem:[%s3020_s4 + $0x88] sm:$0xff] %v2083_v9   ;;  %v1334_v6 = vadd.f32 %v2793_v2, %v1263_v44  ;;  %v1397_v42 = vmax.f32 %v1333_v10, 0.0  ;;  %v1266_v14 = vmul.f32 %v2779_v46, %v1195_v43  ;;  %v1267_v25 = vmul.f32 %v2779_v46, %v1196_v7  ;;  %v1209_v44 = vld [vmem:[#allocation2 + $0x1d0] sm:$0xff]  ;;  %v1210_v10 = vld [vmem:[#allocation2 + $0x1d8] sm:$0xff] }
 0x1de   : > { %2172 = vst [vmem:[%s3020_s4 + $0x90] sm:$0xff] %v2088_v8   ;;  %v2093_v20 = vpack.c.bf16 %v1396_v12, %v1395_v63  ;;  %v1335_v32 = vadd.f32 %v2793_v2, %v1264_v60  ;;  %v1336_v23 = vadd.f32 %v2793_v2, %v1265_v48  ;;  %v1268_v21 = vmul.f32 %v2779_v46, %v1197_v11  ;;  %v1211_v48 = vld [vmem:[#allocation2 + $0x1e0] sm:$0xff] }
 0x1df   : > { %v1398_v61 = vmax.f32 %v1334_v6, 0.0  ;;  %v1337_v26 = vadd.f32 %v2793_v2, %v1266_v14  ;;  %v1338_v30 = vadd.f32 %v2793_v2, %v1267_v25  ;;  %v1269_v27 = vmul.f32 %v2779_v46, %v1198_v13  ;;  %v1212_v13 = vld [vmem:[#allocation2 + $0x1e8] sm:$0xff] }
 0x1e0   : > { %2173 = vst [vmem:[%s3020_s4 + $0x98] sm:$0xff] %v2093_v20   ;;  %v1399_v53 = vmax.f32 %v1335_v32, 0.0  ;;  %v1400_v4 = vmax.f32 %v1336_v23, 0.0  ;;  %v1339_v33 = vadd.f32 %v2793_v2, %v1268_v21  ;;  %v1270_v59 = vmul.f32 %v2779_v46, %v1199_v18  ;;  %v1213_v18 = vld [vmem:[#allocation2 + $0x1f0] sm:$0xff] }
 0x1e1   : > { %v2098_v51 = vpack.c.bf16 %v1398_v61, %v1397_v42  ;;  %v1401_v36 = vmax.f32 %v1337_v26, 0.0  ;;  %v1402_v58 = vmax.f32 %v1338_v30, 0.0  ;;  %v1340_v38 = vadd.f32 %v2793_v2, %v1269_v27  ;;  %v1214_v61 = vld [vmem:[#allocation2 + $0x1f8] sm:$0xff] }
 0x1e2   : > { %v2103_v17 = vpack.c.bf16 %v1400_v4, %v1399_v53  ;;  %v1403_v40 = vmax.f32 %v1339_v33, 0.0  ;;  %v1271_v41 = vmul.f32 %v2779_v46, %v1200_v29  ;;  %v1341_v45 = vadd.f32 %v2793_v2, %v1270_v59 }
 0x1e3   : > { %2174 = vst [vmem:[%s3020_s4 + $0xa0] sm:$0xff] %v2098_v51   ;;  %v2108_v49 = vpack.c.bf16 %v1402_v58, %v1401_v36  ;;  %v1404_v31 = vmax.f32 %v1340_v38, 0.0  ;;  %v1272_v15 = vmul.f32 %v2779_v46, %v1201_v0  ;;  %v1273_v50 = vmul.f32 %v2779_v46, %v1202_v34 }
 0x1e4   : > { %2175 = vst [vmem:[%s3020_s4 + $0xa8] sm:$0xff] %v2103_v17   ;;  %v1342_v22 = vadd.f32 %v2793_v2, %v1271_v41  ;;  %v1405_v16 = vmax.f32 %v1341_v45, 0.0  ;;  %v1274_v54 = vmul.f32 %v2779_v46, %v1203_v39  ;;  %v1275_v55 = vmul.f32 %v2779_v46, %v1204_v19 }
 0x1e5   : > { %2176 = vst [vmem:[%s3020_s4 + $0xb0] sm:$0xff] %v2108_v49   ;;  %v2113_v56 = vpack.c.bf16 %v1404_v31, %v1403_v40  ;;  %v1343_v28 = vadd.f32 %v2793_v2, %v1272_v15  ;;  %v1344_v57 = vadd.f32 %v2793_v2, %v1273_v50  ;;  %v1276_v62 = vmul.f32 %v2779_v46, %v1205_v24 }
 0x1e6   : > { %v1406_v47 = vmax.f32 %v1342_v22, 0.0  ;;  %v1345_v1 = vadd.f32 %v2793_v2, %v1274_v54  ;;  %v1346_v35 = vadd.f32 %v2793_v2, %v1275_v55  ;;  %v1277_v3 = vmul.f32 %v2779_v46, %v1206_v52 }
 0x1e7   : > { %2177 = vst [vmem:[%s3020_s4 + $0xb8] sm:$0xff] %v2113_v56   ;;  %v1407_v43 = vmax.f32 %v1343_v28, 0.0  ;;  %v1408_v7 = vmax.f32 %v1344_v57, 0.0  ;;  %v1347_v9 = vadd.f32 %v2793_v2, %v1276_v62  ;;  %v1278_v63 = vmul.f32 %v2779_v46, %v1207_v37 }
 0x1e8   : > { %v2118_v11 = vpack.c.bf16 %v1406_v47, %v1405_v16  ;;  %v1409_v8 = vmax.f32 %v1345_v1, 0.0  ;;  %v1410_v12 = vmax.f32 %v1346_v35, 0.0  ;;  %v1348_v60 = vadd.f32 %v2793_v2, %v1277_v3 }
 0x1e9   : > { %v2123_v6 = vpack.c.bf16 %v1408_v7, %v1407_v43  ;;  %v1411_v42 = vmax.f32 %v1347_v9, 0.0  ;;  %v1279_v14 = vmul.f32 %v2779_v46, %v1208_v5  ;;  %v1349_v25 = vadd.f32 %v2793_v2, %v1278_v63 }
 0x1ea   : > { %2178 = vst [vmem:[%s3020_s4 + $0xc0] sm:$0xff] %v2118_v11   ;;  %v2128_v20 = vpack.c.bf16 %v1410_v12, %v1409_v8  ;;  %v1412_v32 = vmax.f32 %v1348_v60, 0.0  ;;  %v1280_v23 = vmul.f32 %v2779_v46, %v1209_v44  ;;  %v1281_v21 = vmul.f32 %v2779_v46, %v1210_v10 }
 0x1eb   : > { %2179 = vst [vmem:[%s3020_s4 + $0xc8] sm:$0xff] %v2123_v6   ;;  %v1350_v26 = vadd.f32 %v2793_v2, %v1279_v14  ;;  %v1413_v30 = vmax.f32 %v1349_v25, 0.0  ;;  %v1282_v27 = vmul.f32 %v2779_v46, %v1211_v48  ;;  %v1283_v29 = vmul.f32 %v2779_v46, %v1212_v13 }
 0x1ec   : > { %2180 = vst [vmem:[%s3020_s4 + $0xd0] sm:$0xff] %v2128_v20   ;;  %v2133_v53 = vpack.c.bf16 %v1412_v32, %v1411_v42  ;;  %v1351_v4 = vadd.f32 %v2793_v2, %v1280_v23  ;;  %v1352_v33 = vadd.f32 %v2793_v2, %v1281_v21  ;;  %v1284_v59 = vmul.f32 %v2779_v46, %v1213_v18 }
 0x1ed   : > { %v1414_v0 = vmax.f32 %v1350_v26, 0.0  ;;  %v1353_v34 = vadd.f32 %v2793_v2, %v1282_v27  ;;  %v1354_v51 = vadd.f32 %v2793_v2, %v1283_v29  ;;  %v1285_v36 = vmul.f32 %v2779_v46, %v1214_v61 }
 0x1ee   : > { %2181 = vst [vmem:[%s3020_s4 + $0xd8] sm:$0xff] %v2133_v53   ;;  %v1415_v58 = vmax.f32 %v1351_v4, 0.0  ;;  %v1416_v38 = vmax.f32 %v1352_v33, 0.0  ;;  %v1355_v39 = vadd.f32 %v2793_v2, %v1284_v59 }
 0x1ef   : > { %v2138_v19 = vpack.c.bf16 %v1414_v0, %v1413_v30  ;;  %v1417_v17 = vmax.f32 %v1353_v34, 0.0  ;;  %v1418_v40 = vmax.f32 %v1354_v51, 0.0  ;;  %v1356_v41 = vadd.f32 %v2793_v2, %v1285_v36 }
 0x1f0   : > { %v2143_v45 = vpack.c.bf16 %v1416_v38, %v1415_v58  ;;  %v1419_v24 = vmax.f32 %v1355_v39, 0.0 }
 0x1f1   : > { %2182 = vst [vmem:[%s3020_s4 + $0xe0] sm:$0xff] %v2138_v19   ;;  %v2148_v46 = vpack.c.bf16 %v1418_v40, %v1417_v17  ;;  %v1420_v49 = vmax.f32 %v1356_v41, 0.0 }
 0x1f2   : > { %2183 = vst [vmem:[%s3020_s4 + $0xe8] sm:$0xff] %v2143_v45  }
 0x1f3   : > { %2184 = vst [vmem:[%s3020_s4 + $0xf0] sm:$0xff] %v2148_v46   ;;  %v2153_v31 = vpack.c.bf16 %v1420_v49, %v1419_v24 }
 0x1f5   : > { %2185 = vst [vmem:[%s3020_s4 + $0xf8] sm:$0xff] %v2153_v31  }
 0x1f6 PF: > { %s14_s17 = sadd.s32 1, %s2411_s17   ;;  %s3021_s15 = smov %s2407_s16 }
 0x1f7   : > { %p11_p6 = scmp.ge.s32.totalorder %s14_s17, 4   ;;  %s3022_s16 = smov %s3024_s18 }
 0x1f9   :  { %13 = sbr.rel (!%p11_p6) target bundleno = 2 (0x2), region = 84 }

// kernel: conv_encoder_2d.3
= control target key start
LH: loop header
LB: loop body
LE: loop exit
PB: predicated region body
PF: predicated region fallthrough
CT: control target
= control target key end

     0   :  { %9 = vsyncpa [#allocation8], 0  ;;  %s3732_s0 = inlined_call_operand.vmem [shape: bf16[512,384], index: 0, kind: input, shape index: {}]   ;;  %s3733_s1 = inlined_call_operand.vmem [shape: bf16[384,128], index: 1, kind: input, shape index: {}]   ;;  %s3734_s2 = inlined_call_operand.vmem [shape: f32[1,128], index: 2, kind: input, shape index: {}]   ;;  %s3735_s3 = inlined_call_operand.vmem [shape: f32[1,128], index: 3, kind: input, shape index: {}]   ;;  %s3736_s4 = inlined_call_operand.hbm [shape: f32[512,128], index: 4, kind: output, shape index: {}]  }
   0x1   :  { %11 = vsyncpa [#allocation8 + $0x1], 0  ;;  %s2938_s15 = smov 0   ;;  %s2940_s16 = smov 0  }
   0x2   :  { %s2942_s17 = smov 0  }
   0x3 LB: > { %s2374_s18 = sadd.s32 4294967295, %s2906_s17   ;;  %s2375_s19 = sadd.s32 4294967294, %s2906_s17   ;;  %s2906_s17 = sphi %s2942_s17, %s17_s17   ;;  %s2902_s16 = sphi %s2940_s16, %s3739_s16   ;;  %s2898_s15 = sphi %s2938_s15, %s3738_s15  }
   0x4   : > { %s29_s20 = sadd.s32 1, %s2902_s16  ;;  %p2379_p0 = scmp.ge.s32.totalorder %s2906_s17, 1 }
   0x5   : > { %p31_p1 = scmp.ge.s32.totalorder %s29_s20, 2  ;;  %p189_p2 = scmp.lt.s32.totalorder %s2906_s17, 3 }
   0x7   : > { %s3741_s20 = smov (%p31_p1, %s29_s20), 0  ;;  %p190_p3 = pnand %p2379_p0, %p189_p2 }
   0x8   : > { %p2380_p4 = scmp.ne.s32.totalorder (!%p190_p3), %s2898_s15, 0 }
   0x9   : > { %193 = sbr.rel (%p190_p3) target bundleno = 650 (0x28a), region = 36 }
  0x10   : > { %236 = sbr.rel (%p2380_p4) target bundleno = 532 (0x214), region = 40  ;;  %v2700_v0 = vld [vmem:[%s3733_s1] sm:$0xff] (!%p2380_p4)   ;;  %v2908_v1 = vmov (!%p2380_p4), 0   ;;  %v2701_v2 = vld [vmem:[%s3733_s1 + $0x8] sm:$0xff] (!%p2380_p4)   ;;  %v2702_v3 = vld [vmem:[%s3733_s1 + $0x10] sm:$0xff] (!%p2380_p4)  }
  0x11   : > { %1075 = vmatprep.subr.bf16.mxu0 (!%p2380_p4), %v2908_v1  ;;  %2628 = vmatprep.subr.bf16.mxu1 (!%p2380_p4), %v2908_v1  ;;  %v2703_v4 = vld [vmem:[%s3733_s1 + $0x18] sm:$0xff] (!%p2380_p4)   ;;  %v2704_v5 = vld [vmem:[%s3733_s1 + $0x20] sm:$0xff] (!%p2380_p4)   ;;  %v2705_v7 = vld [vmem:[%s3733_s1 + $0x28] sm:$0xff] (!%p2380_p4)  }
  0x12   : > { %1076 = vmatpush1.bf16.msra.mxu0 (!%p2380_p4), %v2700_v0  ;;  %2644 = vmatpush1.bf16.msra.mxu1 (!%p2380_p4), %v2700_v0  ;;  %v2718_v6 = vld [vmem:[%s3732_s0 + $0x4] ss:$12 sps:$4 sm:$0xff] (!%p2380_p4)   ;;  %v2707_v10 = vld [vmem:[%s3733_s1 + $0x38] sm:$0xff] (!%p2380_p4)   ;;  %v2709_v12 = vld [vmem:[%s3733_s1 + $0x48] sm:$0xff] (!%p2380_p4)  }
  0x13   : > { %1077 = vmatprep.subr.bf16.mxu0 (!%p2380_p4), %v2908_v1  ;;  %2629 = vmatprep.subr.bf16.mxu1 (!%p2380_p4), %v2908_v1  ;;  %v2721_v8 = vld [vmem:[%s3732_s0 + $0x244] ss:$12 sps:$4 sm:$0xff] (!%p2380_p4)   ;;  %v2711_v14 = vld [vmem:[%s3733_s1 + $0x58] sm:$0xff] (!%p2380_p4)   ;;  %v2713_v16 = vld [vmem:[%s3733_s1 + $0x68] sm:$0xff] (!%p2380_p4)  }
  0x14   : > { %1107 = vmatprep.mubr.bf16.mxu0 (!%p2380_p4), %v2718_v6  ;;  %1299 = vmatprep.mubr.bf16.mxu1 (!%p2380_p4), %v2721_v8  ;;  %v2706_v9 = vld [vmem:[%s3733_s1 + $0x30] sm:$0xff] (!%p2380_p4)   ;;  %v2708_v11 = vld [vmem:[%s3733_s1 + $0x40] sm:$0xff] (!%p2380_p4)   ;;  %v2715_v18 = vld [vmem:[%s3733_s1 + $0x78] sm:$0xff] (!%p2380_p4)  }
  0x15   : > { %v2710_v13 = vld [vmem:[%s3733_s1 + $0x50] sm:$0xff] (!%p2380_p4)   ;;  %v2712_v15 = vld [vmem:[%s3733_s1 + $0x60] sm:$0xff] (!%p2380_p4)   ;;  %v2722_v22 = vld [vmem:[%s3732_s0 + $0x1c] ss:$12 sps:$4 sm:$0xff] (!%p2380_p4)  }
  0x16   : > { %1078 = vmatpush1.bf16.msra.mxu0 (!%p2380_p4), %v2701_v2  ;;  %2645 = vmatpush1.bf16.msra.mxu1 (!%p2380_p4), %v2701_v2  ;;  %v2714_v17 = vld [vmem:[%s3733_s1 + $0x70] sm:$0xff] (!%p2380_p4)   ;;  %v2740_v19 = vld [vmem:[%s3733_s1 + $0x80] sm:$0xff] (!%p2380_p4)   ;;  %v2724_v23 = vld [vmem:[%s3732_s0 + $0x25c] ss:$12 sps:$4 sm:$0xff] (!%p2380_p4)  }
  0x17   : > { %1079 = vmatprep.subr.bf16.mxu0 %v2908_v1  ;;  %2630 = vmatprep.subr.bf16.mxu1 %v2908_v1  ;;  %v2716_v20 = vld [vmem:[%s3732_s0] ss:$12 sps:$4 sm:$0xff]   ;;  %v2726_v25 = vld [vmem:[%s3732_s0 + $0x18] ss:$12 sps:$4 sm:$0xff]   ;;  %v2754_v26 = vld [vmem:[%s3733_s1 + $0x90] sm:$0xff]  }
  0x18   : > { %v2719_v21 = vld [vmem:[%s3732_s0 + $0x240] ss:$12 sps:$4 sm:$0xff]   ;;  %v2727_v27 = vld [vmem:[%s3732_s0 + $0x258] ss:$12 sps:$4 sm:$0xff]   ;;  %v2732_v31 = vld [vmem:[%s3732_s0 + $0x30] ss:$12 sps:$4 sm:$0xff]  }
  0x19   : > { %v2747_v24 = vld [vmem:[%s3733_s1 + $0x88] sm:$0xff]   ;;  %v2728_v28 = vld [vmem:[%s3732_s0 + $0x34] ss:$12 sps:$4 sm:$0xff]   ;;  %v2755_v30 = vld [vmem:[%s3733_s1 + $0x98] sm:$0xff]  }
  0x1a   : > { %1080 = vmatpush1.bf16.msra.mxu0 %v2702_v3  ;;  %2646 = vmatpush1.bf16.msra.mxu1 %v2702_v3  ;;  %v2730_v29 = vld [vmem:[%s3732_s0 + $0x274] ss:$12 sps:$4 sm:$0xff]   ;;  %v2733_v33 = vld [vmem:[%s3732_s0 + $0x270] ss:$12 sps:$4 sm:$0xff]   ;;  %v2734_v34 = vld [vmem:[%s3732_s0 + $0x4c] ss:$12 sps:$4 sm:$0xff]  }
  0x1b   : > { %1081 = vmatprep.subr.bf16.mxu0 %v2908_v1  ;;  %2631 = vmatprep.subr.bf16.mxu1 %v2908_v1  ;;  %v2762_v32 = vld [vmem:[%s3733_s1 + $0xa0] sm:$0xff]   ;;  %v2736_v35 = vld [vmem:[%s3732_s0 + $0x28c] ss:$12 sps:$4 sm:$0xff]   ;;  %v2738_v37 = vld [vmem:[%s3732_s0 + $0x48] ss:$12 sps:$4 sm:$0xff]  }
  0x1c   : > { %v2763_v36 = vld [vmem:[%s3733_s1 + $0xa8] sm:$0xff]   ;;  %v2741_v39 = vld [vmem:[%s3732_s0 + $0x64] ss:$12 sps:$4 sm:$0xff]   ;;  %v2771_v42 = vld [vmem:[%s3733_s1 + $0xb8] sm:$0xff]  }
  0x1d   : > { %v2739_v38 = vld [vmem:[%s3732_s0 + $0x288] ss:$12 sps:$4 sm:$0xff]   ;;  %v2743_v40 = vld [vmem:[%s3732_s0 + $0x2a4] ss:$12 sps:$4 sm:$0xff]   ;;  %v2745_v43 = vld [vmem:[%s3732_s0 + $0x60] ss:$12 sps:$4 sm:$0xff]  }
  0x1e   : > { %1082 = vmatpush1.bf16.msra.mxu0 %v2703_v4  ;;  %2647 = vmatpush1.bf16.msra.mxu1 %v2703_v4  ;;  %v2770_v41 = vld [vmem:[%s3733_s1 + $0xb0] sm:$0xff]   ;;  %v2746_v44 = vld [vmem:[%s3732_s0 + $0x2a0] ss:$12 sps:$4 sm:$0xff]   ;;  %v2748_v45 = vld [vmem:[%s3732_s0 + $0x7c] ss:$12 sps:$4 sm:$0xff]  }
  0x1f   : > { %1083 = vmatprep.subr.bf16.mxu0 %v2908_v1  ;;  %2632 = vmatprep.subr.bf16.mxu1 %v2908_v1  ;;  %v2750_v46 = vld [vmem:[%s3732_s0 + $0x2bc] ss:$12 sps:$4 sm:$0xff]   ;;  %v2752_v47 = vld [vmem:[%s3732_s0 + $0x78] ss:$12 sps:$4 sm:$0xff]   ;;  %v2756_v49 = vld [vmem:[%s3732_s0 + $0x94] ss:$12 sps:$4 sm:$0xff]  }
  0x20   : > { %v2753_v48 = vld [vmem:[%s3732_s0 + $0x2b8] ss:$12 sps:$4 sm:$0xff]   ;;  %v2758_v50 = vld [vmem:[%s3732_s0 + $0x2d4] ss:$12 sps:$4 sm:$0xff]   ;;  %v2760_v51 = vld [vmem:[%s3732_s0 + $0x90] ss:$12 sps:$4 sm:$0xff]  }
  0x21   : > { %v2761_v52 = vld [vmem:[%s3732_s0 + $0x2d0] ss:$12 sps:$4 sm:$0xff]   ;;  %v2764_v53 = vld [vmem:[%s3732_s0 + $0xac] ss:$12 sps:$4 sm:$0xff]   ;;  %v2768_v55 = vld [vmem:[%s3732_s0 + $0xa8] ss:$12 sps:$4 sm:$0xff]  }
  0x22   : > { %1084 = vmatpush1.bf16.msra.mxu0 %v2704_v5  ;;  %2648 = vmatpush1.bf16.msra.mxu1 %v2704_v5  ;;  %v2766_v54 = vld [vmem:[%s3732_s0 + $0x2ec] ss:$12 sps:$4 sm:$0xff]   ;;  %v2769_v56 = vld [vmem:[%s3732_s0 + $0x2e8] ss:$12 sps:$4 sm:$0xff]   ;;  %v2772_v57 = vld [vmem:[%s3732_s0 + $0xc4] ss:$12 sps:$4 sm:$0xff]  }
  0x23   : > { %1085 = vmatprep.subr.bf16.mxu0 %v2908_v1  ;;  %2633 = vmatprep.subr.bf16.mxu1 %v2908_v1  ;;  %v2774_v58 = vld [vmem:[%s3732_s0 + $0x8] ss:$12 sps:$4 sm:$0xff]   ;;  %v2775_v59 = vld [vmem:[%s3732_s0 + $0xc0] ss:$12 sps:$4 sm:$0xff]   ;;  %v2779_v62 = vld [vmem:[%s3732_s0 + $0x38] ss:$12 sps:$4 sm:$0xff]  }
  0x24   : > { %v2776_v60 = vld [vmem:[%s3732_s0 + $0x20] ss:$12 sps:$4 sm:$0xff]   ;;  %v2777_v61 = vld [vmem:[%s3732_s0 + $0xdc] ss:$12 sps:$4 sm:$0xff]   ;;  %v2780_v63 = vld [vmem:[%s3732_s0 + $0xd8] ss:$12 sps:$4 sm:$0xff]  }
  0x25   : > { %v2781_v0 = vld [vmem:[%s3732_s0 + $0x50] ss:$12 sps:$4 sm:$0xff]   ;;  %v2784_v2 = vld [vmem:[%s3732_s0 + $0x68] ss:$12 sps:$4 sm:$0xff]   ;;  %v2786_v4 = vld [vmem:[%s3732_s0 + $0x80] ss:$12 sps:$4 sm:$0xff]  }
  0x26   : > { %1086 = vmatpush1.bf16.msra.mxu0 %v2705_v7  ;;  %2649 = vmatpush1.bf16.msra.mxu1 %v2705_v7  ;;  %v2785_v3 = vld [vmem:[%s3732_s0 + $0xf0] ss:$12 sps:$4 sm:$0xff]   ;;  %v2787_v5 = vld [vmem:[%s3732_s0 + $0x10c] ss:$12 sps:$4 sm:$0xff]   ;;  %v2790_v7 = vld [vmem:[%s3732_s0 + $0x108] ss:$12 sps:$4 sm:$0xff]  }
  0x27   : > { %1087 = vmatprep.subr.bf16.mxu0 %v2908_v1  ;;  %2634 = vmatprep.subr.bf16.mxu1 %v2908_v1  ;;  %v2789_v6 = vld [vmem:[%s3732_s0 + $0x98] ss:$12 sps:$4 sm:$0xff]   ;;  %v2791_v8 = vld [vmem:[%s3732_s0 + $0xb0] ss:$12 sps:$4 sm:$0xff]  }
  0x2a   : > { %1088 = vmatpush1.bf16.msra.mxu0 %v2706_v9  ;;  %2650 = vmatpush1.bf16.msra.mxu1 %v2706_v9  ;;  %v2792_v9 = vld [vmem:[%s3732_s0 + $0x124] ss:$12 sps:$4 sm:$0xff]  }
  0x2b   : > { %1089 = vmatprep.subr.bf16.mxu0 %v2908_v1  ;;  %2635 = vmatprep.subr.bf16.mxu1 %v2908_v1 }
  0x2e   : > { %1090 = vmatpush1.bf16.msra.mxu0 %v2707_v10  ;;  %2651 = vmatpush1.bf16.msra.mxu1 %v2707_v10  ;;  %v2794_v10 = vld [vmem:[%s3732_s0 + $0xc8] ss:$12 sps:$4 sm:$0xff]  }
  0x2f   : > { %1091 = vmatprep.subr.bf16.mxu0 %v2908_v1  ;;  %2636 = vmatprep.subr.bf16.mxu1 %v2908_v1 }
  0x32   : > { %1092 = vmatpush1.bf16.msra.mxu0 %v2708_v11  ;;  %2652 = vmatpush1.bf16.msra.mxu1 %v2708_v11  ;;  %v2795_v11 = vld [vmem:[%s3732_s0 + $0x120] ss:$12 sps:$4 sm:$0xff]  }
  0x33   : > { %1093 = vmatprep.subr.bf16.mxu0 %v2908_v1  ;;  %2637 = vmatprep.subr.bf16.mxu1 %v2908_v1 }
  0x36   : > { %1094 = vmatpush1.bf16.msra.mxu0 %v2709_v12  ;;  %2653 = vmatpush1.bf16.msra.mxu1 %v2709_v12  ;;  %v2796_v12 = vld [vmem:[%s3732_s0 + $0xe0] ss:$12 sps:$4 sm:$0xff]  }
  0x37   : > { %1095 = vmatprep.subr.bf16.mxu0 %v2908_v1  ;;  %2638 = vmatprep.subr.bf16.mxu1 %v2908_v1 }
  0x3a   : > { %1096 = vmatpush1.bf16.msra.mxu0 %v2710_v13  ;;  %2654 = vmatpush1.bf16.msra.mxu1 %v2710_v13  ;;  %v2797_v13 = vld [vmem:[%s3732_s0 + $0x13c] ss:$12 sps:$4 sm:$0xff]  }
  0x3b   : > { %1097 = vmatprep.subr.bf16.mxu0 %v2908_v1  ;;  %2639 = vmatprep.subr.bf16.mxu1 %v2908_v1 }
  0x3e   : > { %1098 = vmatpush1.bf16.msra.mxu0 %v2711_v14  ;;  %2655 = vmatpush1.bf16.msra.mxu1 %v2711_v14  ;;  %v2799_v14 = vld [vmem:[%s3732_s0 + $0xf8] ss:$12 sps:$4 sm:$0xff]  }
  0x3f   : > { %1099 = vmatprep.subr.bf16.mxu0 %v2908_v1  ;;  %2640 = vmatprep.subr.bf16.mxu1 %v2908_v1 }
  0x42   : > { %1100 = vmatpush1.bf16.msra.mxu0 %v2712_v15  ;;  %2656 = vmatpush1.bf16.msra.mxu1 %v2712_v15  ;;  %v2800_v15 = vld [vmem:[%s3732_s0 + $0x138] ss:$12 sps:$4 sm:$0xff]  }
  0x43   : > { %1101 = vmatprep.subr.bf16.mxu0 %v2908_v1  ;;  %2641 = vmatprep.subr.bf16.mxu1 %v2908_v1 }
  0x46   : > { %1102 = vmatpush1.bf16.msra.mxu0 %v2713_v16  ;;  %2657 = vmatpush1.bf16.msra.mxu1 %v2713_v16  ;;  %v2801_v16 = vld [vmem:[%s3732_s0 + $0x110] ss:$12 sps:$4 sm:$0xff]  }
  0x47   : > { %1103 = vmatprep.subr.bf16.mxu0 %v2908_v1  ;;  %2642 = vmatprep.subr.bf16.mxu1 %v2908_v1 }
  0x4a   : > { %1104 = vmatpush1.bf16.msra.mxu0 %v2714_v17  ;;  %2658 = vmatpush1.bf16.msra.mxu1 %v2714_v17  ;;  %v2802_v17 = vld [vmem:[%s3732_s0 + $0x154] ss:$12 sps:$4 sm:$0xff]  }
  0x4b   : > { %1105 = vmatprep.subr.bf16.mxu0 %v2908_v1  ;;  %2643 = vmatprep.subr.bf16.mxu1 %v2908_v1  ;;  %v2782_v1 = vld [vmem:[%s3732_s0 + $0xf4] ss:$12 sps:$4 sm:$0xff]  }
  0x4e   : > { %1106 = vmatpush1.bf16.msra.mxu0 %v2715_v18  ;;  %2659 = vmatpush1.bf16.msra.mxu1 %v2715_v18  ;;  %v2804_v18 = vld [vmem:[%s3732_s0 + $0x128] ss:$12 sps:$4 sm:$0xff]  }
  0x4f   : > { %2548 = vmatprep.subr.bf16.mxu1 %v2740_v19 }
  0x51   : > { %1108 = vmatmul.mubr.bf16.vlgmr.msra.gmra.mrb[0].mxu0 %v2716_v20  ;;  %1300 = vmatmul.mubr.bf16.vlgmr.msra.gmra.mrb[0].mxu1 %v2719_v21  ;;  %v2806_v20 = vld [vmem:[%s3732_s0 + $0x140] ss:$12 sps:$4 sm:$0xff]  }
  0x52   : > { %1115 = vmatprep.mubr.bf16.mxu0 %v2722_v22  ;;  %1307 = vmatprep.mubr.bf16.mxu1 %v2724_v23  ;;  %v2807_v21 = vld [vmem:[%s3732_s0 + $0x16c] ss:$12 sps:$4 sm:$0xff]   ;;  %v2810_v23 = vld [vmem:[%s3732_s0 + $0x168] ss:$12 sps:$4 sm:$0xff]  }
  0x53   : > { %2549 = vmatpush3.bf16.msra.mxu1 %v2740_v19  ;;  %v2805_v19 = vld [vmem:[%s3732_s0 + $0x150] ss:$12 sps:$4 sm:$0xff]   ;;  %v2809_v22 = vld [vmem:[%s3732_s0 + $0x158] ss:$12 sps:$4 sm:$0xff]  }
  0x54   : > { %2550 = vmatprep.subr.bf16.mxu1 %v2747_v24 }
  0x57   : > { %2551 = vmatpush3.bf16.msra.mxu1 %v2747_v24  ;;  %v2811_v24 = vld [vmem:[%s3732_s0 + $0x170] ss:$12 sps:$4 sm:$0xff]  }
  0x58   : > { %2552 = vmatprep.subr.bf16.mxu1 %v2754_v26 }
  0x59   : > { %1116 = vmatmul.mubr.bf16.gmra.mrb[4].mxu0 %v2726_v25  ;;  %1308 = vmatmul.mubr.bf16.gmra.mrb[4].mxu1 %v2727_v27  ;;  %v2812_v25 = vld [vmem:[%s3732_s0 + $0x184] ss:$12 sps:$4 sm:$0xff]   ;;  %v2815_v27 = vld [vmem:[%s3732_s0 + $0x180] ss:$12 sps:$4 sm:$0xff]  }
  0x5a   : > { %1123 = vmatprep.mubr.bf16.mxu0 %v2728_v28  ;;  %1315 = vmatprep.mubr.bf16.mxu1 %v2730_v29  ;;  %v2816_v28 = vld [vmem:[%s3732_s0 + $0x1a0] ss:$12 sps:$4 sm:$0xff]   ;;  %v2817_v29 = vld [vmem:[%s3732_s0 + $0x19c] ss:$12 sps:$4 sm:$0xff]  }
  0x5b   : > { %2553 = vmatpush3.bf16.msra.mxu1 %v2754_v26  ;;  %v2814_v26 = vld [vmem:[%s3732_s0 + $0x188] ss:$12 sps:$4 sm:$0xff]  }
  0x5c   : > { %2554 = vmatprep.subr.bf16.mxu1 %v2755_v30 }
  0x5f   : > { %2555 = vmatpush3.bf16.msra.mxu1 %v2755_v30  ;;  %v2819_v30 = vld [vmem:[%s3732_s0 + $0x1b8] ss:$12 sps:$4 sm:$0xff]  }
  0x60   : > { %2556 = vmatprep.subr.bf16.mxu1 %v2762_v32 }
  0x61   : > { %1124 = vmatmul.mubr.bf16.gmra.mrb[8].mxu0 %v2732_v31  ;;  %1316 = vmatmul.mubr.bf16.gmra.mrb[8].mxu1 %v2733_v33  ;;  %v2820_v31 = vld [vmem:[%s3732_s0 + $0x198] ss:$12 sps:$4 sm:$0xff]   ;;  %v2822_v33 = vld [vmem:[%s3732_s0 + $0x1b4] ss:$12 sps:$4 sm:$0xff]  }
  0x62   : > { %1131 = vmatprep.mubr.bf16.mxu0 %v2734_v34  ;;  %1323 = vmatprep.mubr.bf16.mxu1 %v2736_v35  ;;  %v2824_v34 = vld [vmem:[%s3732_s0 + $0x1e8] ss:$12 sps:$4 sm:$0xff]   ;;  %v2825_v35 = vld [vmem:[%s3732_s0 + $0x1b0] ss:$12 sps:$4 sm:$0xff]  }
  0x63   : > { %2557 = vmatpush3.bf16.msra.mxu1 %v2762_v32  ;;  %v2821_v32 = vld [vmem:[%s3732_s0 + $0x1d0] ss:$12 sps:$4 sm:$0xff]  }
  0x64   : > { %2558 = vmatprep.subr.bf16.mxu1 %v2763_v36 }
  0x67   : > { %2559 = vmatpush3.bf16.msra.mxu1 %v2763_v36  ;;  %v2826_v36 = vld [vmem:[%s3732_s0 + $0x200] ss:$12 sps:$4 sm:$0xff]  }
  0x68   : > { %2560 = vmatprep.subr.bf16.mxu1 %v2770_v41 }
  0x69   : > { %1132 = vmatmul.mubr.bf16.gmra.mrb[12].mxu0 %v2738_v37  ;;  %1324 = vmatmul.mubr.bf16.gmra.mrb[12].mxu1 %v2739_v38  ;;  %v2827_v37 = vld [vmem:[%s3732_s0 + $0x1cc] ss:$12 sps:$4 sm:$0xff]  }
  0x6a   : > { %1139 = vmatprep.mubr.bf16.mxu0 %v2741_v39  ;;  %1331 = vmatprep.mubr.bf16.mxu1 %v2743_v40  ;;  %v2829_v38 = vld [vmem:[%s3732_s0 + $0x218] ss:$12 sps:$4 sm:$0xff]   ;;  %v2830_v39 = vld [vmem:[%s3732_s0 + $0x1c8] ss:$12 sps:$4 sm:$0xff]   ;;  %v2831_v40 = vld [vmem:[%s3732_s0 + $0x230] ss:$12 sps:$4 sm:$0xff]  }
  0x6b   : > { %2561 = vmatpush3.bf16.msra.mxu1 %v2770_v41  ;;  %v2832_v41 = vld [vmem:[%s3732_s0 + $0x1e4] ss:$12 sps:$4 sm:$0xff]  }
  0x6c   : > { %2562 = vmatprep.subr.bf16.mxu1 %v2771_v42 }
  0x6f   : > { %2563 = vmatpush3.bf16.msra.mxu1 %v2771_v42  ;;  %v2834_v42 = vld [vmem:[%s3732_s0 + $0x248] ss:$12 sps:$4 sm:$0xff]  }
  0x71   : > { %1140 = vmatmul.mubr.bf16.gmra.mrb[16].mxu0 %v2745_v43  ;;  %1332 = vmatmul.mubr.bf16.gmra.mrb[16].mxu1 %v2746_v44  ;;  %v2835_v43 = vld [vmem:[%s3732_s0 + $0x1e0] ss:$12 sps:$4 sm:$0xff]  }
  0x72   : > { %1147 = vmatprep.mubr.bf16.mxu0 %v2748_v45  ;;  %1339 = vmatprep.mubr.bf16.mxu1 %v2750_v46  ;;  %v2836_v44 = vld [vmem:[%s3732_s0 + $0x260] ss:$12 sps:$4 sm:$0xff]   ;;  %v2837_v45 = vld [vmem:[%s3732_s0 + $0x1fc] ss:$12 sps:$4 sm:$0xff]   ;;  %v2839_v46 = vld [vmem:[%s3732_s0 + $0x278] ss:$12 sps:$4 sm:$0xff]  }
  0x79   : > { %1148 = vmatmul.mubr.bf16.gmra.mrb[20].mxu0 %v2752_v47  ;;  %1340 = vmatmul.mubr.bf16.gmra.mrb[20].mxu1 %v2753_v48  ;;  %v2840_v47 = vld [vmem:[%s3732_s0 + $0x1f8] ss:$12 sps:$4 sm:$0xff]   ;;  %v2841_v48 = vld [vmem:[%s3732_s0 + $0x290] ss:$12 sps:$4 sm:$0xff]  }
  0x7a   : > { %1155 = vmatprep.mubr.bf16.mxu0 %v2756_v49  ;;  %1347 = vmatprep.mubr.bf16.mxu1 %v2758_v50  ;;  %v2842_v49 = vld [vmem:[%s3732_s0 + $0x214] ss:$12 sps:$4 sm:$0xff]  }
  0x7b   : > { %v2844_v50 = vld [vmem:[%s3732_s0 + $0x2a8] ss:$12 sps:$4 sm:$0xff]  }
  0x81   : > { %1156 = vmatmul.mubr.bf16.gmra.mrb[24].mxu0 %v2760_v51  ;;  %1348 = vmatmul.mubr.bf16.gmra.mrb[24].mxu1 %v2761_v52  ;;  %v2845_v51 = vld [vmem:[%s3732_s0 + $0x210] ss:$12 sps:$4 sm:$0xff]   ;;  %v2846_v52 = vld [vmem:[%s3732_s0 + $0x2c0] ss:$12 sps:$4 sm:$0xff]  }
  0x82   : > { %1163 = vmatprep.mubr.bf16.mxu0 %v2764_v53  ;;  %1355 = vmatprep.mubr.bf16.mxu1 %v2766_v54  ;;  %v2847_v53 = vld [vmem:[%s3732_s0 + $0x22c] ss:$12 sps:$4 sm:$0xff]  }
  0x83   : > { %v2849_v54 = vld [vmem:[%s3732_s0 + $0x2d8] ss:$12 sps:$4 sm:$0xff]  }
  0x89   : > { %1164 = vmatmul.mubr.bf16.gmra.mrb[28].mxu0 %v2768_v55  ;;  %1356 = vmatmul.mubr.bf16.gmra.mrb[28].mxu1 %v2769_v56  ;;  %v2850_v55 = vld [vmem:[%s3732_s0 + $0x228] ss:$12 sps:$4 sm:$0xff]   ;;  %v2851_v56 = vld [vmem:[%s3732_s0 + $0x2f0] ss:$12 sps:$4 sm:$0xff]  }
  0x8a   : > { %1171 = vmatprep.mubr.bf16.mxu0 %v2772_v57  ;;  %2564 = vmatprep.mubr.bf16.mxu1 %v2774_v58 }
  0x91   : > { %1172 = vmatmul.mubr.bf16.gmra.mrb[32].mxu0 %v2775_v59  ;;  %2565 = vmatmul.mubr.bf16.vlgmr.msra.gmra.mrb[32].mxu1 %v2776_v60 }
  0x92   : > { %1179 = vmatprep.mubr.bf16.mxu0 %v2777_v61  ;;  %2568 = vmatprep.mubr.bf16.mxu1 %v2779_v62 }
  0x99   : > { %1180 = vmatmul.mubr.bf16.gmra.mrb[36].mxu0 %v2780_v63  ;;  %2569 = vmatmul.mubr.bf16.gmra.mrb[36].mxu1 %v2781_v0 }
  0x9a   : > { %1187 = vmatprep.mubr.bf16.mxu0 %v2782_v1  ;;  %2572 = vmatprep.mubr.bf16.mxu1 %v2784_v2 }
  0xa1   : > { %1188 = vmatmul.mubr.bf16.gmra.mrb[40].mxu0 %v2785_v3  ;;  %2573 = vmatmul.mubr.bf16.gmra.mrb[40].mxu1 %v2786_v4 }
  0xa2   : > { %1195 = vmatprep.mubr.bf16.mxu0 %v2787_v5  ;;  %2576 = vmatprep.mubr.bf16.mxu1 %v2789_v6 }
  0xa9   : > { %1196 = vmatmul.mubr.bf16.gmra.mrb[44].mxu0 %v2790_v7  ;;  %2577 = vmatmul.mubr.bf16.gmra.mrb[44].mxu1 %v2791_v8 }
  0xaa   : > { %1203 = vmatprep.mubr.bf16.mxu0 %v2792_v9  ;;  %2580 = vmatprep.mubr.bf16.mxu1 %v2794_v10 }
  0xb1   : > { %1204 = vmatmul.mubr.bf16.gmra.mrb[48].mxu0 %v2795_v11  ;;  %2581 = vmatmul.mubr.bf16.gmra.mrb[48].mxu1 %v2796_v12 }
  0xb2   : > { %1211 = vmatprep.mubr.bf16.mxu0 %v2797_v13  ;;  %2584 = vmatprep.mubr.bf16.mxu1 %v2799_v14 }
  0xb9   : > { %1212 = vmatmul.mubr.bf16.gmra.mrb[52].mxu0 %v2800_v15  ;;  %2585 = vmatmul.mubr.bf16.gmra.mrb[52].mxu1 %v2801_v16 }
  0xba   : > { %1219 = vmatprep.mubr.bf16.mxu0 %v2802_v17  ;;  %2588 = vmatprep.mubr.bf16.mxu1 %v2804_v18 }
  0xc1   : > { %1220 = vmatmul.mubr.bf16.gmra.mrb[56].mxu0 %v2805_v19  ;;  %2589 = vmatmul.mubr.bf16.gmra.mrb[56].mxu1 %v2806_v20 }
  0xc2   : > { %1227 = vmatprep.mubr.bf16.mxu0 %v2807_v21  ;;  %2592 = vmatprep.mubr.bf16.mxu1 %v2809_v22 }
  0xc9   : > { %1228 = vmatmul.mubr.bf16.gmra.mrb[60].mxu0 %v2810_v23  ;;  %2593 = vmatmul.mubr.bf16.gmra.mrb[60].mxu1 %v2811_v24 }
  0xca   : > { %1235 = vmatprep.mubr.bf16.mxu0 %v2812_v25  ;;  %2596 = vmatprep.mubr.bf16.mxu1 %v2814_v26 }
  0xd1   : > { %1236 = vmatmul.mubr.bf16.gmra.mrb[64].mxu0 %v2815_v27  ;;  %2597 = vmatmul.mubr.bf16.gmra.mrb[64].mxu1 %v2816_v28 }
  0xd2   : > { %1243 = vmatprep.mubr.bf16.mxu0 %v2817_v29  ;;  %2600 = vmatprep.mubr.bf16.mxu1 %v2819_v30 }
  0xd9   : > { %1244 = vmatmul.mubr.bf16.gmra.mrb[68].mxu0 %v2820_v31  ;;  %2601 = vmatmul.mubr.bf16.gmra.mrb[68].mxu1 %v2821_v32 }
  0xda   : > { %1251 = vmatprep.mubr.bf16.mxu0 %v2822_v33  ;;  %2604 = vmatprep.mubr.bf16.mxu1 %v2824_v34 }
  0xe1   : > { %1252 = vmatmul.mubr.bf16.gmra.mrb[72].mxu0 %v2825_v35  ;;  %2605 = vmatmul.mubr.bf16.gmra.mrb[72].mxu1 %v2826_v36 }
  0xe2   : > { %1259 = vmatprep.mubr.bf16.mxu0 %v2827_v37  ;;  %2608 = vmatprep.mubr.bf16.mxu1 %v2829_v38 }
  0xe9   : > { %1260 = vmatmul.mubr.bf16.gmra.mrb[76].mxu0 %v2830_v39  ;;  %2609 = vmatmul.mubr.bf16.gmra.mrb[76].mxu1 %v2831_v40 }
  0xea   : > { %1267 = vmatprep.mubr.bf16.mxu0 %v2832_v41  ;;  %2612 = vmatprep.mubr.bf16.mxu1 %v2834_v42 }
  0xf1   : > { %1268 = vmatmul.mubr.bf16.gmra.mrb[80].mxu0 %v2835_v43  ;;  %2613 = vmatmul.mubr.bf16.gmra.mrb[80].mxu1 %v2836_v44 }
  0xf2   : > { %1275 = vmatprep.mubr.bf16.mxu0 %v2837_v45  ;;  %2616 = vmatprep.mubr.bf16.mxu1 %v2839_v46 }
  0xf9   : > { %1276 = vmatmul.mubr.bf16.gmra.mrb[84].mxu0 %v2840_v47  ;;  %2617 = vmatmul.mubr.bf16.gmra.mrb[84].mxu1 %v2841_v48 }
  0xfa   : > { %1283 = vmatprep.mubr.bf16.mxu0 %v2842_v49  ;;  %2620 = vmatprep.mubr.bf16.mxu1 %v2844_v50 }
 0x101   : > { %1284 = vmatmul.mubr.bf16.gmra.mrb[88].mxu0 %v2845_v51  ;;  %2621 = vmatmul.mubr.bf16.gmra.mrb[88].mxu1 %v2846_v52 }
 0x102   : > { %1291 = vmatprep.mubr.bf16.mxu0 %v2847_v53  ;;  %2624 = vmatprep.mubr.bf16.mxu1 %v2849_v54 }
 0x109   : > { %1292 = vmatmul.mubr.bf16.gmra.mrb[92].mxu0 %v2850_v55  ;;  %2625 = vmatmul.mubr.bf16.gmra.mrb[92].mxu1 %v2851_v56 }
 0x124   : > { %v3353_v57 = vpop.f32.mrb[0].mxu0  ;;  %v3355_v58 = vpop.f32.mrb[0].mxu1 }
 0x125   : > { %v1111_v59 = vpop.f32.mrb[1].mxu0  ;;  %v1303_v60 = vpop.f32.mrb[1].mxu1 }
 0x126   : > { %v3357_v61 = vpop.f32.mrb[2].mxu0  ;;  %v3359_v62 = vpop.f32.mrb[2].mxu1 }
 0x127   : > { %v1114_v63 = vpop.f32.mrb[3].mxu0  ;;  %v1306_v0 = vpop.f32.mrb[3].mxu1 }
 0x12c   : > { %v1117_v1 = vpop.f32.mrb[4].mxu0  ;;  %v3361_v2 = vpop.f32.mrb[4].mxu1 }
 0x12d   : > { %v1119_v3 = vpop.f32.mrb[5].mxu0  ;;  %v1311_v4 = vpop.f32.mrb[5].mxu1 }
 0x12e   : > { %v1120_v5 = vpop.f32.mrb[6].mxu0  ;;  %v3363_v6 = vpop.f32.mrb[6].mxu1 }
 0x12f   : > { %v1122_v7 = vpop.f32.mrb[7].mxu0  ;;  %v1314_v8 = vpop.f32.mrb[7].mxu1 }
 0x134   : > { %v3365_v9 = vpop.f32.mrb[8].mxu0  ;;  %v3367_v10 = vpop.f32.mrb[8].mxu1 }
 0x135   : > { %v1127_v11 = vpop.f32.mrb[9].mxu0  ;;  %v1319_v12 = vpop.f32.mrb[9].mxu1 }
 0x136   : > { %v3369_v13 = vpop.f32.mrb[10].mxu0  ;;  %v3371_v14 = vpop.f32.mrb[10].mxu1 }
 0x137   : > { %v1130_v15 = vpop.f32.mrb[11].mxu0  ;;  %v1322_v16 = vpop.f32.mrb[11].mxu1 }
 0x13c   : > { %v3373_v17 = vpop.f32.mrb[12].mxu0  ;;  %v3375_v18 = vpop.f32.mrb[12].mxu1 }
 0x13d   : > { %v1135_v19 = vpop.f32.mrb[13].mxu0  ;;  %v1327_v20 = vpop.f32.mrb[13].mxu1 }
 0x13e   : > { %v3377_v21 = vpop.f32.mrb[14].mxu0  ;;  %v3379_v22 = vpop.f32.mrb[14].mxu1 }
 0x13f   : > { %v1138_v23 = vpop.f32.mrb[15].mxu0  ;;  %v1330_v24 = vpop.f32.mrb[15].mxu1 }
 0x144   : > { %v3381_v25 = vpop.f32.mrb[16].mxu0  ;;  %v3383_v26 = vpop.f32.mrb[16].mxu1 }
 0x145   : > { %v1143_v27 = vpop.f32.mrb[17].mxu0  ;;  %v1335_v28 = vpop.f32.mrb[17].mxu1 }
 0x146   : > { %v3385_v29 = vpop.f32.mrb[18].mxu0  ;;  %v3387_v30 = vpop.f32.mrb[18].mxu1 }
 0x147   : > { %v1146_v31 = vpop.f32.mrb[19].mxu0  ;;  %v1338_v32 = vpop.f32.mrb[19].mxu1 }
 0x14c   : > { %v3389_v33 = vpop.f32.mrb[20].mxu0  ;;  %v3391_v34 = vpop.f32.mrb[20].mxu1 }
 0x14d   : > { %v1151_v35 = vpop.f32.mrb[21].mxu0  ;;  %v1343_v36 = vpop.f32.mrb[21].mxu1 }
 0x14e   : > { %v3393_v37 = vpop.f32.mrb[22].mxu0  ;;  %v3395_v38 = vpop.f32.mrb[22].mxu1 }
 0x14f   : > { %v1154_v39 = vpop.f32.mrb[23].mxu0  ;;  %v1346_v40 = vpop.f32.mrb[23].mxu1 }
 0x154   : > { %v3397_v41 = vpop.f32.mrb[24].mxu0  ;;  %v3399_v42 = vpop.f32.mrb[24].mxu1 }
 0x155   : > { %v1159_v43 = vpop.f32.mrb[25].mxu0  ;;  %v1351_v44 = vpop.f32.mrb[25].mxu1 }
 0x156   : > { %v3401_v45 = vpop.f32.mrb[26].mxu0  ;;  %v3403_v46 = vpop.f32.mrb[26].mxu1 }
 0x157   : > { %v1162_v47 = vpop.f32.mrb[27].mxu0  ;;  %v1354_v48 = vpop.f32.mrb[27].mxu1 }
 0x15c   : > { %v3405_v49 = vpop.f32.mrb[28].mxu0  ;;  %v3407_v50 = vpop.f32.mrb[28].mxu1 }
 0x15d   : > { %v1167_v51 = vpop.f32.mrb[29].mxu0  ;;  %v1359_v52 = vpop.f32.mrb[29].mxu1 }
 0x15e   : > { %v3409_v53 = vpop.f32.mrb[30].mxu0  ;;  %v3411_v54 = vpop.f32.mrb[30].mxu1 }
 0x15f   : > { %v1170_v55 = vpop.f32.mrb[31].mxu0  ;;  %v1362_v56 = vpop.f32.mrb[31].mxu1 }
 0x160   : > { %v2909_v56 = vmov 0.0  }
 0x161   : > { %241 = vst [vmem:[#allocation3] sm:$0x1] %v2909_v56  ;;  %242 = vst [vmem:[#allocation4] sm:$0x1] %v2909_v56 }
 0x164   : > { %v3413_v59 = vpop.f32.mrb[32].mxu0  ;;  %v2566_v60 = vpop.f32.mrb[32].mxu1 }
 0x165   : > { %v1407_v63 = vadd.f32 %v2566_v60, %v1117_v1  ;;  %v1175_v0 = vpop.f32.mrb[33].mxu0  ;;  %v1398_v3 = vpop.f32.mrb[33].mxu1 }
 0x166   : > { %v1399_v4 = vadd.f32 %v1398_v3, %v3353_v57  ;;  %v3416_v7 = vpop.f32.mrb[34].mxu0  ;;  %v2567_v8 = vpop.f32.mrb[34].mxu1 }
 0x167   : > { %1656 = vst [vmem:[#allocation2 + $0x10] sm:$0xff] %v1407_v63  ;;  %v1410_v11 = vadd.f32 %v2567_v8, %v1120_v5  ;;  %v1178_v12 = vpop.f32.mrb[35].mxu0  ;;  %v1401_v15 = vpop.f32.mrb[35].mxu1  ;;  %v1793_v1 = vmul.f32 %v1407_v63, %v1407_v63 }
 0x168   : > { %1654 = vst [vmem:[#allocation2] sm:$0xff] %v1399_v4  ;;  %v1402_v16 = vadd.f32 %v1401_v15, %v3357_v61  ;;  %v1791_v19 = vmul.f32 %v1399_v4, %v1399_v4 }
 0x169   : > { %1657 = vst [vmem:[#allocation2 + $0x18] sm:$0xff] %v1410_v11  ;;  %v1794_v35 = vmul.f32 %v1410_v11, %v1410_v11 }
 0x16a   : > { %1655 = vst [vmem:[#allocation2 + $0x8] sm:$0xff] %v1402_v16  ;;  %v1719_v20 = vadd.f32 %v1402_v16, %v1399_v4  ;;  %v1792_v23 = vmul.f32 %v1402_v16, %v1402_v16 }
 0x16c   : > { %v1720_v24 = vadd.f32 %v1719_v20, %v1407_v63  ;;  %v1855_v27 = vadd.f32 %v1792_v23, %v1791_v19  ;;  %v3419_v28 = vpop.f32.mrb[36].mxu0  ;;  %v2570_v57 = vpop.f32.mrb[36].mxu1 }
 0x16d   : > { %v1423_v31 = vadd.f32 %v2570_v57, %v3373_v17  ;;  %v1183_v32 = vpop.f32.mrb[37].mxu0  ;;  %v1414_v5 = vpop.f32.mrb[37].mxu1 }
 0x16e   : > { %v1856_v36 = vadd.f32 %v1855_v27, %v1793_v1  ;;  %v1415_v39 = vadd.f32 %v1414_v5, %v3365_v9  ;;  %v1721_v61 = vadd.f32 %v1720_v24, %v1410_v11  ;;  %v3423_v40 = vpop.f32.mrb[38].mxu0  ;;  %v2571_v43 = vpop.f32.mrb[38].mxu1 }
 0x16f   : > { %1660 = vst [vmem:[#allocation2 + $0x30] sm:$0xff] %v1423_v31  ;;  %v1426_v44 = vadd.f32 %v2571_v43, %v3377_v21  ;;  %v1186_v47 = vpop.f32.mrb[39].mxu0  ;;  %v1417_v48 = vpop.f32.mrb[39].mxu1  ;;  %v1797_v0 = vmul.f32 %v1423_v31, %v1423_v31 }
 0x170   : > { %1658 = vst [vmem:[#allocation2 + $0x20] sm:$0xff] %v1415_v39  ;;  %v1722_v51 = vadd.f32 %v1721_v61, %v1415_v39  ;;  %v1795_v52 = vmul.f32 %v1415_v39, %v1415_v39  ;;  %v1857_v55 = vadd.f32 %v1856_v36, %v1794_v35  ;;  %v1418_v17 = vadd.f32 %v1417_v48, %v3369_v13 }
 0x171   : > { %1661 = vst [vmem:[#allocation2 + $0x38] sm:$0xff] %v1426_v44  ;;  %v1798_v16 = vmul.f32 %v1426_v44, %v1426_v44 }
 0x172   : > { %v1858_v9 = vadd.f32 %v1857_v55, %v1795_v52  ;;  %1659 = vst [vmem:[#allocation2 + $0x28] sm:$0xff] %v1418_v17  ;;  %v1723_v60 = vadd.f32 %v1722_v51, %v1418_v17  ;;  %v1796_v63 = vmul.f32 %v1418_v17, %v1418_v17 }
 0x174   : > { %v1724_v3 = vadd.f32 %v1723_v60, %v1423_v31  ;;  %v1859_v4 = vadd.f32 %v1858_v9, %v1796_v63  ;;  %v3427_v21 = vpop.f32.mrb[40].mxu0  ;;  %v2574_v8 = vpop.f32.mrb[40].mxu1 }
 0x175   : > { %v1439_v11 = vadd.f32 %v2574_v8, %v3389_v33  ;;  %v1191_v12 = vpop.f32.mrb[41].mxu0  ;;  %v1430_v15 = vpop.f32.mrb[41].mxu1 }
 0x176   : > { %v1860_v13 = vadd.f32 %v1859_v4, %v1797_v0  ;;  %v1431_v19 = vadd.f32 %v1430_v15, %v3381_v25  ;;  %v1725_v20 = vadd.f32 %v1724_v3, %v1426_v44  ;;  %v3431_v23 = vpop.f32.mrb[42].mxu0  ;;  %v2575_v1 = vpop.f32.mrb[42].mxu1 }
 0x177   : > { %1664 = vst [vmem:[#allocation2 + $0x50] sm:$0xff] %v1439_v11  ;;  %v1442_v24 = vadd.f32 %v2575_v1, %v3393_v37  ;;  %v1194_v27 = vpop.f32.mrb[43].mxu0  ;;  %v1433_v57 = vpop.f32.mrb[43].mxu1  ;;  %v1801_v39 = vmul.f32 %v1439_v11, %v1439_v11 }
 0x178   : > { %1662 = vst [vmem:[#allocation2 + $0x40] sm:$0xff] %v1431_v19  ;;  %v1726_v31 = vadd.f32 %v1725_v20, %v1431_v19  ;;  %v1799_v32 = vmul.f32 %v1431_v19, %v1431_v19  ;;  %v1861_v5 = vadd.f32 %v1860_v13, %v1798_v16  ;;  %v1434_v33 = vadd.f32 %v1433_v57, %v3385_v29 }
 0x179   : > { %1665 = vst [vmem:[#allocation2 + $0x58] sm:$0xff] %v1442_v24  ;;  %v1802_v52 = vmul.f32 %v1442_v24, %v1442_v24 }
 0x17a   : > { %v1862_v35 = vadd.f32 %v1861_v5, %v1799_v32  ;;  %1663 = vst [vmem:[#allocation2 + $0x48] sm:$0xff] %v1434_v33  ;;  %v1727_v36 = vadd.f32 %v1726_v31, %v1434_v33  ;;  %v1800_v25 = vmul.f32 %v1434_v33, %v1434_v33 }
 0x17c   : > { %v1728_v61 = vadd.f32 %v1727_v36, %v1439_v11  ;;  %v1863_v43 = vadd.f32 %v1862_v35, %v1800_v25  ;;  %v1197_v44 = vpop.f32.mrb[44].mxu0  ;;  %v2578_v47 = vpop.f32.mrb[44].mxu1 }
 0x17d   : > { %v1455_v37 = vadd.f32 %v2578_v47, %v3405_v49  ;;  %v1199_v48 = vpop.f32.mrb[45].mxu0  ;;  %v1446_v51 = vpop.f32.mrb[45].mxu1 }
 0x17e   : > { %v1864_v55 = vadd.f32 %v1863_v43, %v1801_v39  ;;  %v1447_v17 = vadd.f32 %v1446_v51, %v3397_v41  ;;  %v1729_v56 = vadd.f32 %v1728_v61, %v1442_v24  ;;  %v1200_v29 = vpop.f32.mrb[46].mxu0  ;;  %v2579_v9 = vpop.f32.mrb[46].mxu1 }
 0x17f   : > { %1668 = vst [vmem:[#allocation2 + $0x70] sm:$0xff] %v1455_v37  ;;  %v1458_v60 = vadd.f32 %v2579_v9, %v3409_v53  ;;  %v1202_v63 = vpop.f32.mrb[47].mxu0  ;;  %v1449_v0 = vpop.f32.mrb[47].mxu1  ;;  %v1805_v41 = vmul.f32 %v1455_v37, %v1455_v37 }
 0x180   : > { %1666 = vst [vmem:[#allocation2 + $0x60] sm:$0xff] %v1447_v17  ;;  %v1730_v3 = vadd.f32 %v1729_v56, %v1447_v17  ;;  %v1803_v4 = vmul.f32 %v1447_v17, %v1447_v17  ;;  %v1865_v8 = vadd.f32 %v1864_v55, %v1802_v52  ;;  %v1450_v49 = vadd.f32 %v1449_v0, %v3401_v45 }
 0x181   : > { %1669 = vst [vmem:[#allocation2 + $0x78] sm:$0xff] %v1458_v60  ;;  %v1806_v27 = vmul.f32 %v1458_v60, %v1458_v60 }
 0x182   : > { %v1866_v11 = vadd.f32 %v1865_v8, %v1803_v4  ;;  %1667 = vst [vmem:[#allocation2 + $0x68] sm:$0xff] %v1450_v49  ;;  %v1731_v12 = vadd.f32 %v1730_v3, %v1450_v49  ;;  %v1804_v15 = vmul.f32 %v1450_v49, %v1450_v49 }
 0x184   : > { %v1732_v16 = vadd.f32 %v1731_v12, %v1455_v37  ;;  %v1867_v13 = vadd.f32 %v1866_v11, %v1804_v15  ;;  %v3439_v19 = vpop.f32.mrb[48].mxu0  ;;  %v2582_v20 = vpop.f32.mrb[48].mxu1 }
 0x185   : > { %v1471_v53 = vadd.f32 %v2582_v20, %v3419_v28  ;;  %v1207_v1 = vpop.f32.mrb[49].mxu0  ;;  %v1462_v24 = vpop.f32.mrb[49].mxu1 }
 0x186   : > { %v1868_v57 = vadd.f32 %v1867_v13, %v1805_v41  ;;  %v1463_v31 = vadd.f32 %v1462_v24, %v3413_v59  ;;  %v1733_v45 = vadd.f32 %v1732_v16, %v1458_v60  ;;  %v3443_v32 = vpop.f32.mrb[50].mxu0  ;;  %v2583_v5 = vpop.f32.mrb[50].mxu1 }
 0x187   : > { %1672 = vst [vmem:[#allocation2 + $0x90] sm:$0xff] %v1471_v53  ;;  %v1474_v33 = vadd.f32 %v2583_v5, %v3423_v40  ;;  %v1210_v35 = vpop.f32.mrb[51].mxu0  ;;  %v1465_v36 = vpop.f32.mrb[51].mxu1  ;;  %v1809_v37 = vmul.f32 %v1471_v53, %v1471_v53 }
 0x188   : > { %1670 = vst [vmem:[#allocation2 + $0x80] sm:$0xff] %v1463_v31  ;;  %v1734_v25 = vadd.f32 %v1733_v45, %v1463_v31  ;;  %v1807_v39 = vmul.f32 %v1463_v31, %v1463_v31  ;;  %v1869_v61 = vadd.f32 %v1868_v57, %v1806_v27  ;;  %v1466_v28 = vadd.f32 %v1465_v36, %v3416_v7 }
 0x189   : > { %1673 = vst [vmem:[#allocation2 + $0x98] sm:$0xff] %v1474_v33  ;;  %v1810_v9 = vmul.f32 %v1474_v33, %v1474_v33 }
 0x18a   : > { %v1870_v43 = vadd.f32 %v1869_v61, %v1807_v39  ;;  %1671 = vst [vmem:[#allocation2 + $0x88] sm:$0xff] %v1466_v28  ;;  %v1735_v47 = vadd.f32 %v1734_v25, %v1466_v28  ;;  %v1808_v59 = vmul.f32 %v1466_v28, %v1466_v28 }
 0x18c   : > { %v1736_v48 = vadd.f32 %v1735_v47, %v1471_v53  ;;  %v1871_v51 = vadd.f32 %v1870_v43, %v1808_v59  ;;  %v1213_v52 = vpop.f32.mrb[52].mxu0  ;;  %v2586_v55 = vpop.f32.mrb[52].mxu1 }
 0x18d   : > { %v1487_v17 = vadd.f32 %v2586_v55, %v1197_v44  ;;  %v1215_v40 = vpop.f32.mrb[53].mxu0  ;;  %v1478_v56 = vpop.f32.mrb[53].mxu1 }
 0x18e   : > { %v1872_v60 = vadd.f32 %v1871_v51, %v1809_v37  ;;  %v1479_v63 = vadd.f32 %v1478_v56, %v3427_v21  ;;  %v1737_v0 = vadd.f32 %v1736_v48, %v1474_v33  ;;  %v1216_v3 = vpop.f32.mrb[54].mxu0  ;;  %v2587_v7 = vpop.f32.mrb[54].mxu1 }
 0x18f   : > { %1676 = vst [vmem:[#allocation2 + $0xb0] sm:$0xff] %v1487_v17  ;;  %v1490_v4 = vadd.f32 %v2587_v7, %v1200_v29  ;;  %v1218_v8 = vpop.f32.mrb[55].mxu0  ;;  %v1481_v49 = vpop.f32.mrb[55].mxu1  ;;  %v1813_v20 = vmul.f32 %v1487_v17, %v1487_v17 }
 0x190   : > { %1674 = vst [vmem:[#allocation2 + $0xa0] sm:$0xff] %v1479_v63  ;;  %v1738_v11 = vadd.f32 %v1737_v0, %v1479_v63  ;;  %v1811_v12 = vmul.f32 %v1479_v63, %v1479_v63  ;;  %v1873_v15 = vadd.f32 %v1872_v60, %v1810_v9  ;;  %v1482_v41 = vadd.f32 %v1481_v49, %v3431_v23 }
 0x191   : > { %1677 = vst [vmem:[#allocation2 + $0xb8] sm:$0xff] %v1490_v4  ;;  %v1814_v31 = vmul.f32 %v1490_v4, %v1490_v4 }
 0x192   : > { %v1874_v44 = vadd.f32 %v1873_v15, %v1811_v12  ;;  %1675 = vst [vmem:[#allocation2 + $0xa8] sm:$0xff] %v1482_v41  ;;  %v1739_v16 = vadd.f32 %v1738_v11, %v1482_v41  ;;  %v1812_v13 = vmul.f32 %v1482_v41, %v1482_v41 }
 0x194   : > { %v1740_v21 = vadd.f32 %v1739_v16, %v1487_v17  ;;  %v1875_v53 = vadd.f32 %v1874_v44, %v1812_v13  ;;  %v1221_v1 = vpop.f32.mrb[56].mxu0  ;;  %v2590_v24 = vpop.f32.mrb[56].mxu1 }
 0x195   : > { %v1503_v27 = vadd.f32 %v2590_v24, %v1213_v52  ;;  %v1223_v29 = vpop.f32.mrb[57].mxu0  ;;  %v1494_v57 = vpop.f32.mrb[57].mxu1 }
 0x196   : > { %v1876_v45 = vadd.f32 %v1875_v53, %v1813_v20  ;;  %v1495_v5 = vadd.f32 %v1494_v57, %v3439_v19  ;;  %v1741_v33 = vadd.f32 %v1740_v21, %v1490_v4  ;;  %v1224_v35 = vpop.f32.mrb[58].mxu0  ;;  %v2591_v23 = vpop.f32.mrb[58].mxu1 }
 0x197   : > { %1680 = vst [vmem:[#allocation2 + $0xd0] sm:$0xff] %v1503_v27  ;;  %v1506_v36 = vadd.f32 %v2591_v23, %v1216_v3  ;;  %v1226_v25 = vpop.f32.mrb[59].mxu0  ;;  %v1497_v39 = vpop.f32.mrb[59].mxu1  ;;  %v1817_v51 = vmul.f32 %v1503_v27, %v1503_v27 }
 0x198   : > { %1678 = vst [vmem:[#allocation2 + $0xc0] sm:$0xff] %v1495_v5  ;;  %v1742_v61 = vadd.f32 %v1741_v33, %v1495_v5  ;;  %v1815_v28 = vmul.f32 %v1495_v5, %v1495_v5  ;;  %v1877_v43 = vadd.f32 %v1876_v45, %v1814_v31  ;;  %v1498_v47 = vadd.f32 %v1497_v39, %v3443_v32 }
 0x199   : > { %1681 = vst [vmem:[#allocation2 + $0xd8] sm:$0xff] %v1506_v36  ;;  %v1818_v60 = vmul.f32 %v1506_v36, %v1506_v36 }
 0x19a   : > { %v1878_v59 = vadd.f32 %v1877_v43, %v1815_v28  ;;  %1679 = vst [vmem:[#allocation2 + $0xc8] sm:$0xff] %v1498_v47  ;;  %v1743_v37 = vadd.f32 %v1742_v61, %v1498_v47  ;;  %v1816_v48 = vmul.f32 %v1498_v47, %v1498_v47 }
 0x19c   : > { %v1744_v19 = vadd.f32 %v1743_v37, %v1503_v27  ;;  %v1879_v52 = vadd.f32 %v1878_v59, %v1816_v48  ;;  %v1229_v55 = vpop.f32.mrb[60].mxu0  ;;  %v2594_v17 = vpop.f32.mrb[60].mxu1 }
 0x19d   : > { %v1519_v40 = vadd.f32 %v2594_v17, %v1229_v55  ;;  %v1231_v56 = vpop.f32.mrb[61].mxu0  ;;  %v1510_v9 = vpop.f32.mrb[61].mxu1 }
 0x19e   : > { %v1880_v63 = vadd.f32 %v1879_v52, %v1817_v51  ;;  %v1511_v0 = vadd.f32 %v1510_v9, %v1221_v1  ;;  %v1745_v3 = vadd.f32 %v1744_v19, %v1506_v36  ;;  %v1232_v7 = vpop.f32.mrb[62].mxu0  ;;  %v2595_v4 = vpop.f32.mrb[62].mxu1 }
 0x19f   : > { %1684 = vst [vmem:[#allocation2 + $0xf0] sm:$0xff] %v1519_v40  ;;  %v1522_v32 = vadd.f32 %v2595_v4, %v1232_v7  ;;  %v1234_v8 = vpop.f32.mrb[63].mxu0  ;;  %v1513_v49 = vpop.f32.mrb[63].mxu1  ;;  %v1821_v20 = vmul.f32 %v1519_v40, %v1519_v40 }
 0x1a0   : > { %1682 = vst [vmem:[#allocation2 + $0xe0] sm:$0xff] %v1511_v0  ;;  %v1746_v11 = vadd.f32 %v1745_v3, %v1511_v0  ;;  %v1819_v12 = vmul.f32 %v1511_v0, %v1511_v0  ;;  %v1881_v15 = vadd.f32 %v1880_v63, %v1818_v60  ;;  %v1514_v41 = vadd.f32 %v1513_v49, %v1224_v35 }
 0x1a1   : > { %1685 = vst [vmem:[#allocation2 + $0xf8] sm:$0xff] %v1522_v32  ;;  %v1822_v57 = vmul.f32 %v1522_v32, %v1522_v32 }
 0x1a2   : > { %v1882_v44 = vadd.f32 %v1881_v15, %v1819_v12  ;;  %1683 = vst [vmem:[#allocation2 + $0xe8] sm:$0xff] %v1514_v41  ;;  %v1747_v16 = vadd.f32 %v1746_v11, %v1514_v41  ;;  %v1820_v13 = vmul.f32 %v1514_v41, %v1514_v41 }
 0x1a4   : > { %v1748_v21 = vadd.f32 %v1747_v16, %v1519_v40  ;;  %v1883_v53 = vadd.f32 %v1882_v44, %v1820_v13  ;;  %v1237_v1 = vpop.f32.mrb[64].mxu0  ;;  %v2598_v24 = vpop.f32.mrb[64].mxu1 }
 0x1a5   : > { %v1239_v27 = vpop.f32.mrb[65].mxu0  ;;  %v1526_v29 = vpop.f32.mrb[65].mxu1 }
 0x1a6   : > { %v1884_v31 = vadd.f32 %v1883_v53, %v1821_v20  ;;  %v1527_v45 = vadd.f32 %v1526_v29, %v1237_v1  ;;  %v1749_v5 = vadd.f32 %v1748_v21, %v1522_v32  ;;  %v1240_v33 = vpop.f32.mrb[66].mxu0  ;;  %v2599_v23 = vpop.f32.mrb[66].mxu1 }
 0x1a7   : > { %v1242_v36 = vpop.f32.mrb[67].mxu0  ;;  %v1529_v35 = vpop.f32.mrb[67].mxu1 }
 0x1a8   : > { %1686 = vst [vmem:[#allocation2 + $0x100] sm:$0xff] %v1527_v45  ;;  %v1750_v25 = vadd.f32 %v1749_v5, %v1527_v45  ;;  %v1823_v39 = vmul.f32 %v1527_v45, %v1527_v45  ;;  %v1885_v61 = vadd.f32 %v1884_v31, %v1822_v57  ;;  %v1530_v28 = vadd.f32 %v1529_v35, %v1240_v33 }
 0x1aa   : > { %v1886_v43 = vadd.f32 %v1885_v61, %v1823_v39  ;;  %1687 = vst [vmem:[#allocation2 + $0x108] sm:$0xff] %v1530_v28  ;;  %v1751_v47 = vadd.f32 %v1750_v25, %v1530_v28  ;;  %v1824_v59 = vmul.f32 %v1530_v28, %v1530_v28 }
 0x1ac   : > { %v1887_v37 = vadd.f32 %v1886_v43, %v1824_v59  ;;  %v1245_v48 = vpop.f32.mrb[68].mxu0  ;;  %v2602_v51 = vpop.f32.mrb[68].mxu1 }
 0x1ad   : > { %v1535_v19 = vadd.f32 %v2598_v24, %v1245_v48  ;;  %v1247_v52 = vpop.f32.mrb[69].mxu0  ;;  %v1542_v55 = vpop.f32.mrb[69].mxu1 }
 0x1ae   : > { %v1248_v17 = vpop.f32.mrb[70].mxu0  ;;  %v2603_v40 = vpop.f32.mrb[70].mxu1 }
 0x1af   : > { %1688 = vst [vmem:[#allocation2 + $0x110] sm:$0xff] %v1535_v19  ;;  %v1752_v56 = vadd.f32 %v1751_v47, %v1535_v19  ;;  %v1825_v9 = vmul.f32 %v1535_v19, %v1535_v19  ;;  %v1538_v60 = vadd.f32 %v2599_v23, %v1248_v17  ;;  %v1250_v63 = vpop.f32.mrb[71].mxu0  ;;  %v1545_v0 = vpop.f32.mrb[71].mxu1 }
 0x1b1   : > { %v1888_v3 = vadd.f32 %v1887_v37, %v1825_v9  ;;  %1689 = vst [vmem:[#allocation2 + $0x118] sm:$0xff] %v1538_v60  ;;  %v1753_v7 = vadd.f32 %v1752_v56, %v1538_v60  ;;  %v1826_v4 = vmul.f32 %v1538_v60, %v1538_v60 }
 0x1b3   : > { %v1889_v32 = vadd.f32 %v1888_v3, %v1826_v4 }
 0x1b4   : > { %v1253_v8 = vpop.f32.mrb[72].mxu0  ;;  %v3451_v49 = vpop.f32.mrb[72].mxu1 }
 0x1b5   : > { %v1543_v11 = vadd.f32 %v1542_v55, %v1253_v8  ;;  %v1255_v12 = vpop.f32.mrb[73].mxu0  ;;  %v1558_v15 = vpop.f32.mrb[73].mxu1 }
 0x1b6   : > { %v1256_v41 = vpop.f32.mrb[74].mxu0  ;;  %v3453_v44 = vpop.f32.mrb[74].mxu1 }
 0x1b7   : > { %1690 = vst [vmem:[#allocation2 + $0x120] sm:$0xff] %v1543_v11  ;;  %v1754_v16 = vadd.f32 %v1753_v7, %v1543_v11  ;;  %v1827_v13 = vmul.f32 %v1543_v11, %v1543_v11  ;;  %v1546_v20 = vadd.f32 %v1545_v0, %v1256_v41  ;;  %v1258_v21 = vpop.f32.mrb[75].mxu0  ;;  %v1561_v53 = vpop.f32.mrb[75].mxu1 }
 0x1b9   : > { %v1890_v1 = vadd.f32 %v1889_v32, %v1827_v13  ;;  %1691 = vst [vmem:[#allocation2 + $0x128] sm:$0xff] %v1546_v20  ;;  %v1755_v24 = vadd.f32 %v1754_v16, %v1546_v20  ;;  %v1828_v27 = vmul.f32 %v1546_v20, %v1546_v20 }
 0x1bb   : > { %v1891_v29 = vadd.f32 %v1890_v1, %v1828_v27 }
 0x1bc   : > { %v1261_v57 = vpop.f32.mrb[76].mxu0  ;;  %v3455_v31 = vpop.f32.mrb[76].mxu1 }
 0x1bd   : > { %v1551_v45 = vadd.f32 %v2602_v51, %v1261_v57  ;;  %v1263_v5 = vpop.f32.mrb[77].mxu0  ;;  %v3457_v33 = vpop.f32.mrb[77].mxu1 }
 0x1be   : > { %v1264_v23 = vpop.f32.mrb[78].mxu0  ;;  %v3459_v36 = vpop.f32.mrb[78].mxu1 }
 0x1bf   : > { %1692 = vst [vmem:[#allocation2 + $0x130] sm:$0xff] %v1551_v45  ;;  %v1756_v35 = vadd.f32 %v1755_v24, %v1551_v45  ;;  %v1829_v25 = vmul.f32 %v1551_v45, %v1551_v45  ;;  %v1554_v39 = vadd.f32 %v2603_v40, %v1264_v23  ;;  %v1266_v61 = vpop.f32.mrb[79].mxu0  ;;  %v3461_v28 = vpop.f32.mrb[79].mxu1 }
 0x1c1   : > { %v1892_v43 = vadd.f32 %v1891_v29, %v1829_v25  ;;  %1693 = vst [vmem:[#allocation2 + $0x138] sm:$0xff] %v1554_v39  ;;  %v1757_v47 = vadd.f32 %v1756_v35, %v1554_v39  ;;  %v1830_v59 = vmul.f32 %v1554_v39, %v1554_v39 }
 0x1c3   : > { %v1893_v37 = vadd.f32 %v1892_v43, %v1830_v59 }
 0x1c4   : > { %v1269_v48 = vpop.f32.mrb[80].mxu0  ;;  %v2614_v51 = vpop.f32.mrb[80].mxu1 }
 0x1c5   : > { %v1559_v19 = vadd.f32 %v1558_v15, %v1269_v48  ;;  %v3464_v52 = vadd.f32 %v2614_v51, %v3361_v2  ;;  %v1271_v55 = vpop.f32.mrb[81].mxu0  ;;  %v1590_v17 = vpop.f32.mrb[81].mxu1 }
 0x1c6   : > { %v3467_v56 = vadd.f32 %v1590_v17, %v3355_v58  ;;  %v1272_v40 = vpop.f32.mrb[82].mxu0  ;;  %v2615_v9 = vpop.f32.mrb[82].mxu1 }
 0x1c7   : > { %1694 = vst [vmem:[#allocation2 + $0x140] sm:$0xff] %v1559_v19  ;;  %v1758_v60 = vadd.f32 %v1757_v47, %v1559_v19  ;;  %v1831_v63 = vmul.f32 %v1559_v19, %v1559_v19  ;;  %1704 = vst [vmem:[#allocation2 + $0x190] sm:$0xff] %v3464_v52  ;;  %v1562_v0 = vadd.f32 %v1561_v53, %v1272_v40  ;;  %v1274_v3 = vpop.f32.mrb[83].mxu0  ;;  %v1593_v7 = vpop.f32.mrb[83].mxu1 }
 0x1c8   : > { %1702 = vst [vmem:[#allocation2 + $0x180] sm:$0xff] %v3467_v56  ;;  %v3472_v2 = vadd.f32 %v2615_v9, %v3363_v6  ;;  %v3475_v4 = vadd.f32 %v1593_v7, %v3359_v62 }
 0x1c9   : > { %v1894_v58 = vadd.f32 %v1893_v37, %v1831_v63  ;;  %1695 = vst [vmem:[#allocation2 + $0x148] sm:$0xff] %v1562_v0  ;;  %v1759_v32 = vadd.f32 %v1758_v60, %v1562_v0  ;;  %v1832_v8 = vmul.f32 %v1562_v0, %v1562_v0 }
 0x1ca   : > { %1705 = vst [vmem:[#allocation2 + $0x198] sm:$0xff] %v3472_v2  ;;  %1703 = vst [vmem:[#allocation2 + $0x188] sm:$0xff] %v3475_v4 }
 0x1cb   : > { %v1895_v11 = vadd.f32 %v1894_v58, %v1832_v8 }
 0x1cc   : > { %v1277_v12 = vpop.f32.mrb[84].mxu0  ;;  %v2618_v15 = vpop.f32.mrb[84].mxu1 }
 0x1cd   : > { %v1567_v41 = vadd.f32 %v3451_v49, %v1277_v12  ;;  %v3481_v16 = vadd.f32 %v2618_v15, %v3375_v18  ;;  %v1279_v6 = vpop.f32.mrb[85].mxu0  ;;  %v1606_v13 = vpop.f32.mrb[85].mxu1 }
 0x1ce   : > { %v3484_v62 = vadd.f32 %v1606_v13, %v3367_v10  ;;  %v1280_v20 = vpop.f32.mrb[86].mxu0  ;;  %v2619_v21 = vpop.f32.mrb[86].mxu1 }
 0x1cf   : > { %1696 = vst [vmem:[#allocation2 + $0x150] sm:$0xff] %v1567_v41  ;;  %v1760_v53 = vadd.f32 %v1759_v32, %v1567_v41  ;;  %v1833_v1 = vmul.f32 %v1567_v41, %v1567_v41  ;;  %1708 = vst [vmem:[#allocation2 + $0x1b0] sm:$0xff] %v3481_v16  ;;  %v1570_v24 = vadd.f32 %v3453_v44, %v1280_v20  ;;  %v1282_v27 = vpop.f32.mrb[87].mxu0  ;;  %v1609_v29 = vpop.f32.mrb[87].mxu1 }
 0x1d0   : > { %1706 = vst [vmem:[#allocation2 + $0x1a0] sm:$0xff] %v3484_v62  ;;  %v3490_v18 = vadd.f32 %v2619_v21, %v3379_v22  ;;  %v3493_v49 = vadd.f32 %v1609_v29, %v3371_v14  ;;  %v1839_v41 = vmul.f32 %v3467_v56, %v3467_v56 }
 0x1d1   : > { %v1896_v10 = vadd.f32 %v1895_v11, %v1833_v1  ;;  %1697 = vst [vmem:[#allocation2 + $0x158] sm:$0xff] %v1570_v24  ;;  %v1761_v57 = vadd.f32 %v1760_v53, %v1570_v24  ;;  %v1834_v45 = vmul.f32 %v1570_v24, %v1570_v24  ;;  %v1842_v1 = vmul.f32 %v3472_v2, %v3472_v2 }
 0x1d2   : > { %1709 = vst [vmem:[#allocation2 + $0x1b8] sm:$0xff] %v3490_v18  ;;  %1707 = vst [vmem:[#allocation2 + $0x1a8] sm:$0xff] %v3493_v49 }
 0x1d3   : > { %v1897_v5 = vadd.f32 %v1896_v10, %v1834_v45 }
 0x1d4   : > { %v1285_v44 = vpop.f32.mrb[88].mxu0  ;;  %v2622_v23 = vpop.f32.mrb[88].mxu1 }
 0x1d5   : > { %v1575_v35 = vadd.f32 %v3457_v33, %v1285_v44  ;;  %v3499_v25 = vadd.f32 %v2622_v23, %v3391_v34  ;;  %v1287_v22 = vpop.f32.mrb[89].mxu0  ;;  %v1622_v39 = vpop.f32.mrb[89].mxu1 }
 0x1d6   : > { %v3502_v14 = vadd.f32 %v1622_v39, %v3383_v26  ;;  %v1288_v61 = vpop.f32.mrb[90].mxu0  ;;  %v2623_v43 = vpop.f32.mrb[90].mxu1 }
 0x1d7   : > { %1698 = vst [vmem:[#allocation2 + $0x160] sm:$0xff] %v1575_v35  ;;  %v1762_v47 = vadd.f32 %v1761_v57, %v1575_v35  ;;  %v1835_v59 = vmul.f32 %v1575_v35, %v1575_v35  ;;  %1712 = vst [vmem:[#allocation2 + $0x1d0] sm:$0xff] %v3499_v25  ;;  %v1578_v37 = vadd.f32 %v3461_v28, %v1288_v61  ;;  %v1290_v48 = vpop.f32.mrb[91].mxu0  ;;  %v1625_v51 = vpop.f32.mrb[91].mxu1 }
 0x1d8   : > { %1710 = vst [vmem:[#allocation2 + $0x1c0] sm:$0xff] %v3502_v14  ;;  %v3508_v34 = vadd.f32 %v2623_v43, %v3395_v38  ;;  %v1626_v33 = vadd.f32 %v1625_v51, %v3387_v30 }
 0x1d9   : > { %v1898_v26 = vadd.f32 %v1897_v5, %v1835_v59  ;;  %1699 = vst [vmem:[#allocation2 + $0x168] sm:$0xff] %v1578_v37  ;;  %v1763_v19 = vadd.f32 %v1762_v47, %v1578_v37  ;;  %v1836_v55 = vmul.f32 %v1578_v37, %v1578_v37  ;;  %v1849_v47 = vmul.f32 %v3499_v25, %v3499_v25 }
 0x1da   : > { %1713 = vst [vmem:[#allocation2 + $0x1d8] sm:$0xff] %v3508_v34  ;;  %1711 = vst [vmem:[#allocation2 + $0x1c8] sm:$0xff] %v1626_v33  ;;  %v1850_v37 = vmul.f32 %v3508_v34, %v3508_v34 }
 0x1db   : > { %v1899_v17 = vadd.f32 %v1898_v26, %v1836_v55 }
 0x1dc   : > { %v1293_v40 = vpop.f32.mrb[92].mxu0  ;;  %v2626_v9 = vpop.f32.mrb[92].mxu1 }
 0x1dd   : > { %v1583_v28 = vadd.f32 %v3455_v31, %v1293_v40  ;;  %v3514_v60 = vadd.f32 %v2626_v9, %v3407_v50  ;;  %v1295_v63 = vpop.f32.mrb[93].mxu0  ;;  %v1638_v38 = vpop.f32.mrb[93].mxu1 }
 0x1de   : > { %v1639_v0 = vadd.f32 %v1638_v38, %v3399_v42  ;;  %v1296_v30 = vpop.f32.mrb[94].mxu0  ;;  %v2627_v3 = vpop.f32.mrb[94].mxu1 }
 0x1df   : > { %1700 = vst [vmem:[#allocation2 + $0x170] sm:$0xff] %v1583_v28  ;;  %v1764_v7 = vadd.f32 %v1763_v19, %v1583_v28  ;;  %v1837_v58 = vmul.f32 %v1583_v28, %v1583_v28  ;;  %1716 = vst [vmem:[#allocation2 + $0x1f0] sm:$0xff] %v3514_v60  ;;  %v1586_v32 = vadd.f32 %v3459_v36, %v1296_v30  ;;  %v1298_v8 = vpop.f32.mrb[95].mxu0  ;;  %v1641_v11 = vpop.f32.mrb[95].mxu1 }
 0x1e0   : > { %1714 = vst [vmem:[#allocation2 + $0x1e0] sm:$0xff] %v1639_v0  ;;  %v1650_v31 = vadd.f32 %v2627_v3, %v3411_v54  ;;  %v1642_v50 = vadd.f32 %v1641_v11, %v3403_v46  ;;  %v1840_v36 = vmul.f32 %v3475_v4, %v3475_v4  ;;  %v1841_v46 = vmul.f32 %v3464_v52, %v3464_v52 }
 0x1e1   : > { %v1900_v12 = vadd.f32 %v1899_v17, %v1837_v58  ;;  %1701 = vst [vmem:[#allocation2 + $0x178] sm:$0xff] %v1586_v32  ;;  %v1765_v15 = vadd.f32 %v1764_v7, %v1586_v32  ;;  %v1838_v42 = vmul.f32 %v1586_v32, %v1586_v32  ;;  %v1851_v51 = vmul.f32 %v1639_v0, %v1639_v0 }
 0x1e2   : > { %1717 = vst [vmem:[#allocation2 + $0x1f8] sm:$0xff] %v1650_v31  ;;  %1715 = vst [vmem:[#allocation2 + $0x1e8] sm:$0xff] %v1642_v50  ;;  %v1852_v55 = vmul.f32 %v1642_v50, %v1642_v50 }
 0x1e3   : > { %v1766_v6 = vadd.f32 %v1765_v15, %v3467_v56  ;;  %v1901_v13 = vadd.f32 %v1900_v12, %v1838_v42  ;;  %v1843_v56 = vmul.f32 %v3484_v62, %v3484_v62  ;;  %v1790_v42 = vld [vmem:[#allocation4] sm:$0x1] }
 0x1e5   : > { %v1767_v20 = vadd.f32 %v1766_v6, %v3475_v4  ;;  %v1902_v54 = vadd.f32 %v1901_v13, %v1839_v41  ;;  %v1844_v4 = vmul.f32 %v3493_v49, %v3493_v49 }
 0x1e7   : > { %v1768_v21 = vadd.f32 %v1767_v20, %v3464_v52  ;;  %v1903_v53 = vadd.f32 %v1902_v54, %v1840_v36  ;;  %v1845_v52 = vmul.f32 %v3481_v16, %v3481_v16 }
 0x1e9   : > { %v1769_v24 = vadd.f32 %v1768_v21, %v3472_v2  ;;  %v1904_v27 = vadd.f32 %v1903_v53, %v1841_v46  ;;  %v1846_v2 = vmul.f32 %v3490_v18, %v3490_v18 }
 0x1eb   : > { %v1770_v29 = vadd.f32 %v1769_v24, %v3484_v62  ;;  %v1905_v10 = vadd.f32 %v1904_v27, %v1842_v1  ;;  %v1847_v62 = vmul.f32 %v3502_v14, %v3502_v14 }
 0x1ed   : > { %v1771_v57 = vadd.f32 %v1770_v29, %v3493_v49  ;;  %v1906_v45 = vadd.f32 %v1905_v10, %v1843_v56  ;;  %v1848_v49 = vmul.f32 %v1626_v33, %v1626_v33 }
 0x1ef   : > { %v1907_v5 = vadd.f32 %v1906_v45, %v1844_v4  ;;  %v1772_v44 = vadd.f32 %v1771_v57, %v3481_v16 }
 0x1f1   : > { %v1773_v23 = vadd.f32 %v1772_v44, %v3490_v18  ;;  %v1908_v35 = vadd.f32 %v1907_v5, %v1845_v52 }
 0x1f3   : > { %v1774_v22 = vadd.f32 %v1773_v23, %v3502_v14  ;;  %v1909_v39 = vadd.f32 %v1908_v35, %v1846_v2 }
 0x1f5   : > { %v1775_v61 = vadd.f32 %v1774_v22, %v1626_v33  ;;  %v1910_v43 = vadd.f32 %v1909_v39, %v1847_v62  ;;  %v1853_v33 = vmul.f32 %v3514_v60, %v3514_v60 }
 0x1f7   : > { %v1776_v16 = vadd.f32 %v1775_v61, %v3499_v25  ;;  %v1911_v59 = vadd.f32 %v1910_v43, %v1848_v49  ;;  %v1854_v25 = vmul.f32 %v1650_v31, %v1650_v31 }
 0x1f9   : > { %v1777_v18 = vadd.f32 %v1776_v16, %v3508_v34  ;;  %v1912_v48 = vadd.f32 %v1911_v59, %v1849_v47 }
 0x1fb   : > { %v1778_v26 = vadd.f32 %v1777_v18, %v1639_v0  ;;  %v1913_v19 = vadd.f32 %v1912_v48, %v1850_v37 }
 0x1fd   : > { %v1779_v14 = vadd.f32 %v1778_v26, %v1642_v50  ;;  %v1914_v17 = vadd.f32 %v1913_v19, %v1851_v51  ;;  %v1718_v50 = vld [vmem:[#allocation3] sm:$0x1] }
 0x1ff   : > { %v1780_v40 = vadd.f32 %v1779_v14, %v3514_v60  ;;  %v1915_v9 = vadd.f32 %v1914_v17, %v1852_v55 }
 0x201   : > { %v1781_v28 = vadd.f32 %v1780_v40, %v1650_v31  ;;  %v1916_v63 = vadd.f32 %v1915_v9, %v1853_v33 }
 0x203   : > { %v1782_v38 = vrot.slane %v1781_v28, 4  ;;  %v1917_v30 = vadd.f32 %v1916_v63, %v1854_v25 }
 0x205   : > { %v1783_v3 = vadd.f32 %v1782_v38, %v1781_v28  ;;  %v1918_v34 = vrot.slane %v1917_v30, 4 }
 0x207   : > { %v1784_v7 = vrot.slane %v1783_v3, 2  ;;  %v1919_v58 = vadd.f32 %v1918_v34, %v1917_v30 }
 0x209   : > { %v1785_v0 = vadd.f32 %v1784_v7, %v1783_v3  ;;  %v1920_v32 = vrot.slane %v1919_v58, 2 }
 0x20b   : > { %v1786_v8 = vrot.slane %v1785_v0, 1  ;;  %v1921_v11 = vadd.f32 %v1920_v32, %v1919_v58 }
 0x20d   : > { %v1787_v12 = vadd.f32 %v1786_v8, %v1785_v0  ;;  %v1922_v15 = vrot.slane %v1921_v11, 1 }
 0x20f   : > { %v1788_v41 = vadd.f32 %v1787_v12, %v1718_v50  ;;  %v1923_v60 = vadd.f32 %v1922_v15, %v1921_v11 }
 0x211   : > { %1789 = vst [vmem:[#allocation3] sm:$0x1] %v1788_v41  ;;  %v1924_v6 = vadd.f32 %v1923_v60, %v1790_v42 }
 0x213   : > { %1925 = vst [vmem:[#allocation4] sm:$0x1] %v1924_v6 }
 0x214 PF: > { %p2501_p5 = scmp.ne.s32.totalorder %s2898_s15, 1 }
 0x215   : > { %v1941_v1 = vld [vmem:[%s3734_s2] sm:$0x1] (!%p2501_p5)  ;;  %v1952_v57 = vld [vmem:[#allocation2 + $0x8] sm:$0xff] (!%p2501_p5)  ;;  %v1953_v45 = vld [vmem:[#allocation2 + $0x10] sm:$0xff] (!%p2501_p5) }
 0x216   : > { %1929 = sbr.rel (%p2501_p5) target bundleno = 626 (0x272), region = 48  ;;  %v1946_v56 = vld [vmem:[%s3735_s3] sm:$0x1] (!%p2501_p5)  ;;  %v1954_v52 = vld [vmem:[#allocation2 + $0x18] sm:$0xff] (!%p2501_p5)  ;;  %v1956_v44 = vld [vmem:[#allocation2 + $0x28] sm:$0xff] (!%p2501_p5) }
 0x217   : > { %v1951_v4 = vld [vmem:[#allocation2] sm:$0xff] (!%p2501_p5)  ;;  %v1957_v2 = vld [vmem:[#allocation2 + $0x30] sm:$0xff] (!%p2501_p5)  ;;  %v1958_v23 = vld [vmem:[#allocation2 + $0x38] sm:$0xff] (!%p2501_p5) }
 0x218   : > { %v1934_v31 = vld [vmem:[#allocation3] sm:$0x1] (!%p2501_p5)  ;;  %v1960_v62 = vld [vmem:[#allocation2 + $0x48] sm:$0xff] (!%p2501_p5)  ;;  %v1961_v22 = vld [vmem:[#allocation2 + $0x50] sm:$0xff] (!%p2501_p5) }
 0x219   : > { %v1935_v36 = vmul.f32 (!%p2501_p5), 0.001953125, %v1934_v31  ;;  %v1955_v5 = vld [vmem:[#allocation2 + $0x20] sm:$0xff] (!%p2501_p5)  ;;  %v1962_v49 = vld [vmem:[#allocation2 + $0x58] sm:$0xff] (!%p2501_p5)  ;;  %v1964_v37 = vld [vmem:[#allocation2 + $0x68] sm:$0xff] (!%p2501_p5) }
 0x21a   : > { %v1936_v13 = vld [vmem:[#allocation4] sm:$0x1] (!%p2501_p5)  ;;  %v1965_v18 = vld [vmem:[#allocation2 + $0x70] sm:$0xff] (!%p2501_p5)  ;;  %v1966_v48 = vld [vmem:[#allocation2 + $0x78] sm:$0xff] (!%p2501_p5) }
 0x21b   : > { %v1937_v20 = vmul.f32 (!%p2501_p5), 0.001953125, %v1936_v13  ;;  %v1938_v54 = vmul.f32 (!%p2501_p5), %v1935_v36, %v1935_v36  ;;  %v1959_v35 = vld [vmem:[#allocation2 + $0x40] sm:$0xff] (!%p2501_p5) }
 0x21c   : > { %v1963_v61 = vld [vmem:[#allocation2 + $0x60] sm:$0xff] (!%p2501_p5) }
 0x21d   : > { %v1939_v46 = vsub.f32 %v1937_v20, %v1938_v54  ;;  %v1967_v54 = vld [vmem:[#allocation2 + $0x80] sm:$0xff] }
 0x21f   : > { %v1940_v21 = vmax.f32 %v1939_v46, 0.0  ;;  %v1968_v46 = vld [vmem:[#allocation2 + $0x88] sm:$0xff] }
 0x221   : > { %v1942_v53 = vadd.f32 1e-05, %v1940_v21  ;;  %v1969_v21 = vld [vmem:[#allocation2 + $0x90] sm:$0xff] }
 0x223   : > { %2852 = vrsqrt.f32 %v1942_v53 }
 0x22d   : > { %v2853_v24 = vpop.eup %2852 }
 0x22e   : > { %v1944_v27 = vmul.f32 %v2853_v24, %v1941_v1 }
 0x230   : > { %1945 = vst [vmem:[#allocation5] sm:$0x1] %v1944_v27  ;;  %v1947_v29 = vmul.f32 %v1944_v27, %v1935_v36 }
 0x232   : > { %v1948_v10 = vsub.f32 %v1946_v56, %v1947_v29  ;;  %v1970_v56 = vld [vmem:[#allocation2 + $0x98] sm:$0xff]  ;;  %v1971_v29 = vld [vmem:[#allocation2 + $0xa0] sm:$0xff] }
 0x234   : > { %1949 = vst [vmem:[#allocation6] sm:$0x1] %v1948_v10  ;;  %v1972_v10 = vld [vmem:[#allocation2 + $0xa8] sm:$0xff] }
 0x237   : > { %v3564_v39 = vld [vmem:[#allocation5] ss:$0 sm:$0xff] }
 0x238   : > { %v2022_v43 = vmul.f32 %v3564_v39, %v1951_v4  ;;  %v2023_v47 = vmul.f32 %v3564_v39, %v1952_v57  ;;  %v2024_v16 = vmul.f32 %v3564_v39, %v1953_v45  ;;  %v2025_v59 = vmul.f32 %v3564_v39, %v1954_v52 }
 0x239   : > { %v2026_v51 = vmul.f32 %v3564_v39, %v1955_v5  ;;  %v2027_v26 = vmul.f32 %v3564_v39, %v1956_v44  ;;  %v2028_v19 = vmul.f32 %v3564_v39, %v1957_v2  ;;  %v2029_v14 = vmul.f32 %v3564_v39, %v1958_v23  ;;  %v1973_v5 = vld [vmem:[#allocation2 + $0xb0] sm:$0xff]  ;;  %v1974_v44 = vld [vmem:[#allocation2 + $0xb8] sm:$0xff] }
 0x23a   : > { %v2030_v55 = vmul.f32 %v3564_v39, %v1959_v35  ;;  %v2031_v17 = vmul.f32 %v3564_v39, %v1960_v62  ;;  %v2032_v33 = vmul.f32 %v3564_v39, %v1961_v22  ;;  %v2033_v40 = vmul.f32 %v3564_v39, %v1962_v49 }
 0x23b   : > { %v3578_v9 = vld [vmem:[#allocation6] ss:$0 sm:$0xff]  ;;  %v2034_v25 = vmul.f32 %v3564_v39, %v1963_v61  ;;  %v2035_v28 = vmul.f32 %v3564_v39, %v1964_v37  ;;  %v2036_v63 = vmul.f32 %v3564_v39, %v1965_v18  ;;  %v2037_v38 = vmul.f32 %v3564_v39, %v1966_v48 }
 0x23c   : > { %v2093_v30 = vadd.f32 %v3578_v9, %v2022_v43  ;;  %v2094_v3 = vadd.f32 %v3578_v9, %v2023_v47  ;;  %v2095_v34 = vadd.f32 %v3578_v9, %v2024_v16  ;;  %v2096_v7 = vadd.f32 %v3578_v9, %v2025_v59 }
 0x23d   : > { %v2097_v58 = vadd.f32 %v3578_v9, %v2026_v51  ;;  %v2098_v0 = vadd.f32 %v3578_v9, %v2027_v26  ;;  %v2099_v32 = vadd.f32 %v3578_v9, %v2028_v19  ;;  %v2100_v8 = vadd.f32 %v3578_v9, %v2029_v14  ;;  %v1975_v19 = vld [vmem:[#allocation2 + $0xc0] sm:$0xff]  ;;  %v1976_v14 = vld [vmem:[#allocation2 + $0xc8] sm:$0xff] }
 0x23e   : > { %v2157_v11 = vmax.f32 %v2093_v30, 0.0  ;;  %v2158_v50 = vmax.f32 %v2094_v3, 0.0  ;;  %v2159_v12 = vmax.f32 %v2095_v34, 0.0  ;;  %v2160_v15 = vmax.f32 %v2096_v7, 0.0 }
 0x23f   : > { %v2161_v42 = vmax.f32 %v2097_v58, 0.0  ;;  %v2162_v41 = vmax.f32 %v2098_v0, 0.0  ;;  %v2163_v60 = vmax.f32 %v2099_v32, 0.0  ;;  %v2164_v6 = vmax.f32 %v2100_v8, 0.0  ;;  %v1981_v58 = vld [vmem:[#allocation2 + $0xf0] sm:$0xff]  ;;  %v1982_v0 = vld [vmem:[#allocation2 + $0xf8] sm:$0xff] }
 0x240   : > { %2221 = vst [vmem:[#allocation7] sm:$0xff] %v2157_v11  ;;  %2222 = vst [vmem:[#allocation7 + $0x8] sm:$0xff] %v2158_v50  ;;  %v2101_v31 = vadd.f32 %v3578_v9, %v2030_v55  ;;  %v2102_v13 = vadd.f32 %v3578_v9, %v2031_v17  ;;  %v2103_v36 = vadd.f32 %v3578_v9, %v2032_v33  ;;  %v1977_v55 = vld [vmem:[#allocation2 + $0xd0] sm:$0xff] }
 0x241   : > { %2223 = vst [vmem:[#allocation7 + $0x10] sm:$0xff] %v2159_v12  ;;  %2224 = vst [vmem:[#allocation7 + $0x18] sm:$0xff] %v2160_v15  ;;  %v2104_v20 = vadd.f32 %v3578_v9, %v2033_v40  ;;  %v2105_v53 = vadd.f32 %v3578_v9, %v2034_v25  ;;  %v2106_v1 = vadd.f32 %v3578_v9, %v2035_v28  ;;  %v1978_v28 = vld [vmem:[#allocation2 + $0xd8] sm:$0xff] }
 0x242   : > { %2225 = vst [vmem:[#allocation7 + $0x20] sm:$0xff] %v2161_v42  ;;  %2226 = vst [vmem:[#allocation7 + $0x28] sm:$0xff] %v2162_v41  ;;  %v2107_v24 = vadd.f32 %v3578_v9, %v2036_v63  ;;  %v2108_v27 = vadd.f32 %v3578_v9, %v2037_v38  ;;  %v2165_v4 = vmax.f32 %v2101_v31, 0.0  ;;  %v2166_v57 = vmax.f32 %v2102_v13, 0.0  ;;  %v1979_v63 = vld [vmem:[#allocation2 + $0xe0] sm:$0xff]  ;;  %v1980_v38 = vld [vmem:[#allocation2 + $0xe8] sm:$0xff] }
 0x243   : > { %2227 = vst [vmem:[#allocation7 + $0x30] sm:$0xff] %v2163_v60  ;;  %2228 = vst [vmem:[#allocation7 + $0x38] sm:$0xff] %v2164_v6  ;;  %v2167_v45 = vmax.f32 %v2103_v36, 0.0  ;;  %v2168_v52 = vmax.f32 %v2104_v20, 0.0  ;;  %v2169_v2 = vmax.f32 %v2105_v53, 0.0  ;;  %v2170_v23 = vmax.f32 %v2106_v1, 0.0 }
 0x244   : > { %v2171_v35 = vmax.f32 %v2107_v24, 0.0  ;;  %v2172_v62 = vmax.f32 %v2108_v27, 0.0  ;;  %2229 = vst [vmem:[#allocation7 + $0x40] sm:$0xff] %v2165_v4  ;;  %2230 = vst [vmem:[#allocation7 + $0x48] sm:$0xff] %v2166_v57  ;;  %v2038_v22 = vmul.f32 %v3564_v39, %v1967_v54  ;;  %v2039_v49 = vmul.f32 %v3564_v39, %v1968_v46  ;;  %v1984_v53 = vld [vmem:[#allocation2 + $0x108] sm:$0xff]  ;;  %v1985_v1 = vld [vmem:[#allocation2 + $0x110] sm:$0xff] }
 0x245   : > { %2231 = vst [vmem:[#allocation7 + $0x50] sm:$0xff] %v2167_v45  ;;  %2232 = vst [vmem:[#allocation7 + $0x58] sm:$0xff] %v2168_v52  ;;  %v2040_v61 = vmul.f32 %v3564_v39, %v1969_v21  ;;  %v2041_v43 = vmul.f32 %v3564_v39, %v1970_v56  ;;  %v2042_v47 = vmul.f32 %v3564_v39, %v1971_v29  ;;  %v1983_v21 = vld [vmem:[#allocation2 + $0x100] sm:$0xff]  ;;  %v1988_v57 = vld [vmem:[#allocation2 + $0x128] sm:$0xff] }
 0x246   : > { %2233 = vst [vmem:[#allocation7 + $0x60] sm:$0xff] %v2169_v2  ;;  %2234 = vst [vmem:[#allocation7 + $0x68] sm:$0xff] %v2170_v23  ;;  %v2043_v16 = vmul.f32 %v3564_v39, %v1972_v10  ;;  %v2044_v59 = vmul.f32 %v3564_v39, %v1973_v5  ;;  %v2045_v37 = vmul.f32 %v3564_v39, %v1974_v44  ;;  %v1986_v10 = vld [vmem:[#allocation2 + $0x118] sm:$0xff]  ;;  %v1987_v4 = vld [vmem:[#allocation2 + $0x120] sm:$0xff] }
 0x247   : > { %2235 = vst [vmem:[#allocation7 + $0x70] sm:$0xff] %v2171_v35  ;;  %2236 = vst [vmem:[#allocation7 + $0x78] sm:$0xff] %v2172_v62  ;;  %v2109_v18 = vadd.f32 %v3578_v9, %v2038_v22  ;;  %v2110_v48 = vadd.f32 %v3578_v9, %v2039_v49  ;;  %v2111_v51 = vadd.f32 %v3578_v9, %v2040_v61  ;;  %v1989_v2 = vld [vmem:[#allocation2 + $0x130] sm:$0xff]  ;;  %v1990_v23 = vld [vmem:[#allocation2 + $0x138] sm:$0xff] }
 0x248   : > { %v2112_v26 = vadd.f32 %v3578_v9, %v2041_v43  ;;  %v2113_v17 = vadd.f32 %v3578_v9, %v2042_v47  ;;  %v2114_v33 = vadd.f32 %v3578_v9, %v2043_v16  ;;  %v2115_v40 = vadd.f32 %v3578_v9, %v2044_v59 }
 0x249   : > { %v2116_v25 = vadd.f32 %v3578_v9, %v2045_v37  ;;  %v2173_v30 = vmax.f32 %v2109_v18, 0.0  ;;  %v2174_v3 = vmax.f32 %v2110_v48, 0.0  ;;  %v2175_v34 = vmax.f32 %v2111_v51, 0.0 }
 0x24a   : > { %v2176_v7 = vmax.f32 %v2112_v26, 0.0  ;;  %v2177_v32 = vmax.f32 %v2113_v17, 0.0  ;;  %v2178_v8 = vmax.f32 %v2114_v33, 0.0  ;;  %v2179_v11 = vmax.f32 %v2115_v40, 0.0  ;;  %v1992_v17 = vld [vmem:[#allocation2 + $0x148] sm:$0xff]  ;;  %v1993_v33 = vld [vmem:[#allocation2 + $0x150] sm:$0xff] }
 0x24b   : > { %v2180_v50 = vmax.f32 %v2116_v25, 0.0  ;;  %2237 = vst [vmem:[#allocation7 + $0x80] sm:$0xff] %v2173_v30  ;;  %2238 = vst [vmem:[#allocation7 + $0x88] sm:$0xff] %v2174_v3  ;;  %v2046_v12 = vmul.f32 %v3564_v39, %v1975_v19  ;;  %v2047_v15 = vmul.f32 %v3564_v39, %v1976_v14  ;;  %v2048_v42 = vmul.f32 %v3564_v39, %v1977_v55  ;;  %v1991_v55 = vld [vmem:[#allocation2 + $0x140] sm:$0xff]  ;;  %v1996_v3 = vld [vmem:[#allocation2 + $0x168] sm:$0xff] }
 0x24c   : > { %2239 = vst [vmem:[#allocation7 + $0x90] sm:$0xff] %v2175_v34  ;;  %2240 = vst [vmem:[#allocation7 + $0x98] sm:$0xff] %v2176_v7  ;;  %v2049_v41 = vmul.f32 %v3564_v39, %v1978_v28  ;;  %v2050_v60 = vmul.f32 %v3564_v39, %v1979_v63  ;;  %v2051_v6 = vmul.f32 %v3564_v39, %v1980_v38  ;;  %v1994_v38 = vld [vmem:[#allocation2 + $0x158] sm:$0xff]  ;;  %v1995_v30 = vld [vmem:[#allocation2 + $0x160] sm:$0xff] }
 0x24d   : > { %2241 = vst [vmem:[#allocation7 + $0xa0] sm:$0xff] %v2177_v32  ;;  %2242 = vst [vmem:[#allocation7 + $0xa8] sm:$0xff] %v2178_v8  ;;  %v2052_v31 = vmul.f32 %v3564_v39, %v1981_v58  ;;  %v2053_v13 = vmul.f32 %v3564_v39, %v1982_v0  ;;  %v2117_v36 = vadd.f32 %v3578_v9, %v2046_v12  ;;  %v1997_v32 = vld [vmem:[#allocation2 + $0x170] sm:$0xff]  ;;  %v1998_v8 = vld [vmem:[#allocation2 + $0x178] sm:$0xff] }
 0x24e   : > { %2243 = vst [vmem:[#allocation7 + $0xb0] sm:$0xff] %v2179_v11  ;;  %2244 = vst [vmem:[#allocation7 + $0xb8] sm:$0xff] %v2180_v50  ;;  %v2118_v20 = vadd.f32 %v3578_v9, %v2047_v15  ;;  %v2119_v54 = vadd.f32 %v3578_v9, %v2048_v42  ;;  %v2120_v46 = vadd.f32 %v3578_v9, %v2049_v41 }
 0x24f   : > { %v2121_v24 = vadd.f32 %v3578_v9, %v2050_v60  ;;  %v2122_v27 = vadd.f32 %v3578_v9, %v2051_v6  ;;  %v2123_v56 = vadd.f32 %v3578_v9, %v2052_v31  ;;  %v2124_v29 = vadd.f32 %v3578_v9, %v2053_v13 }
 0x250   : > { %v2181_v45 = vmax.f32 %v2117_v36, 0.0  ;;  %v2182_v52 = vmax.f32 %v2118_v20, 0.0  ;;  %v2183_v5 = vmax.f32 %v2119_v54, 0.0  ;;  %v2184_v44 = vmax.f32 %v2120_v46, 0.0 }
 0x251   : > { %v2185_v35 = vmax.f32 %v2121_v24, 0.0  ;;  %v2186_v62 = vmax.f32 %v2122_v27, 0.0  ;;  %v2187_v22 = vmax.f32 %v2123_v56, 0.0  ;;  %v2188_v49 = vmax.f32 %v2124_v29, 0.0  ;;  %v2000_v24 = vld [vmem:[#allocation2 + $0x188] sm:$0xff]  ;;  %v2001_v27 = vld [vmem:[#allocation2 + $0x190] sm:$0xff] }
 0x252   : > { %2245 = vst [vmem:[#allocation7 + $0xc0] sm:$0xff] %v2181_v45  ;;  %2246 = vst [vmem:[#allocation7 + $0xc8] sm:$0xff] %v2182_v52  ;;  %v2054_v61 = vmul.f32 %v3564_v39, %v1983_v21  ;;  %v2055_v43 = vmul.f32 %v3564_v39, %v1984_v53  ;;  %v2056_v47 = vmul.f32 %v3564_v39, %v1985_v1  ;;  %v1999_v1 = vld [vmem:[#allocation2 + $0x180] sm:$0xff]  ;;  %v2004_v52 = vld [vmem:[#allocation2 + $0x1a8] sm:$0xff] }
 0x253   : > { %2247 = vst [vmem:[#allocation7 + $0xd0] sm:$0xff] %v2183_v5  ;;  %2248 = vst [vmem:[#allocation7 + $0xd8] sm:$0xff] %v2184_v44  ;;  %v2057_v16 = vmul.f32 %v3564_v39, %v1986_v10  ;;  %v2058_v59 = vmul.f32 %v3564_v39, %v1987_v4  ;;  %v2059_v37 = vmul.f32 %v3564_v39, %v1988_v57  ;;  %v2002_v57 = vld [vmem:[#allocation2 + $0x198] sm:$0xff]  ;;  %v2003_v45 = vld [vmem:[#allocation2 + $0x1a0] sm:$0xff] }
 0x254   : > { %2249 = vst [vmem:[#allocation7 + $0xe0] sm:$0xff] %v2185_v35  ;;  %2250 = vst [vmem:[#allocation7 + $0xe8] sm:$0xff] %v2186_v62  ;;  %v2060_v18 = vmul.f32 %v3564_v39, %v1989_v2  ;;  %v2061_v48 = vmul.f32 %v3564_v39, %v1990_v23  ;;  %v2125_v51 = vadd.f32 %v3578_v9, %v2054_v61  ;;  %v2005_v35 = vld [vmem:[#allocation2 + $0x1b0] sm:$0xff]  ;;  %v2006_v62 = vld [vmem:[#allocation2 + $0x1b8] sm:$0xff] }
 0x255   : > { %2251 = vst [vmem:[#allocation7 + $0xf0] sm:$0xff] %v2187_v22  ;;  %2252 = vst [vmem:[#allocation7 + $0xf8] sm:$0xff] %v2188_v49  ;;  %v2126_v26 = vadd.f32 %v3578_v9, %v2055_v43  ;;  %v2127_v19 = vadd.f32 %v3578_v9, %v2056_v47  ;;  %v2128_v14 = vadd.f32 %v3578_v9, %v2057_v16 }
 0x256   : > { %v2129_v40 = vadd.f32 %v3578_v9, %v2058_v59  ;;  %v2130_v25 = vadd.f32 %v3578_v9, %v2059_v37  ;;  %v2131_v28 = vadd.f32 %v3578_v9, %v2060_v18  ;;  %v2132_v63 = vadd.f32 %v3578_v9, %v2061_v48 }
 0x257   : > { %v2189_v34 = vmax.f32 %v2125_v51, 0.0  ;;  %v2190_v7 = vmax.f32 %v2126_v26, 0.0  ;;  %v2191_v58 = vmax.f32 %v2127_v19, 0.0  ;;  %v2192_v0 = vmax.f32 %v2128_v14, 0.0 }
 0x258   : > { %v2193_v11 = vmax.f32 %v2129_v40, 0.0  ;;  %v2194_v50 = vmax.f32 %v2130_v25, 0.0  ;;  %v2195_v12 = vmax.f32 %v2131_v28, 0.0  ;;  %v2196_v15 = vmax.f32 %v2132_v63, 0.0  ;;  %v2008_v40 = vld [vmem:[#allocation2 + $0x1c8] sm:$0xff]  ;;  %v2009_v25 = vld [vmem:[#allocation2 + $0x1d0] sm:$0xff] }
 0x259   : > { %2253 = vst [vmem:[#allocation7 + $0x100] sm:$0xff] %v2189_v34  ;;  %2254 = vst [vmem:[#allocation7 + $0x108] sm:$0xff] %v2190_v7  ;;  %v2062_v42 = vmul.f32 %v3564_v39, %v1991_v55  ;;  %v2063_v41 = vmul.f32 %v3564_v39, %v1992_v17  ;;  %v2064_v60 = vmul.f32 %v3564_v39, %v1993_v33  ;;  %v2007_v33 = vld [vmem:[#allocation2 + $0x1c0] sm:$0xff]  ;;  %v2012_v7 = vld [vmem:[#allocation2 + $0x1e8] sm:$0xff] }
 0x25a   : > { %2255 = vst [vmem:[#allocation7 + $0x110] sm:$0xff] %v2191_v58  ;;  %2256 = vst [vmem:[#allocation7 + $0x118] sm:$0xff] %v2192_v0  ;;  %v2065_v6 = vmul.f32 %v3564_v39, %v1994_v38  ;;  %v2066_v31 = vmul.f32 %v3564_v39, %v1995_v30  ;;  %v2067_v13 = vmul.f32 %v3564_v39, %v1996_v3  ;;  %v2010_v3 = vld [vmem:[#allocation2 + $0x1d8] sm:$0xff]  ;;  %v2011_v34 = vld [vmem:[#allocation2 + $0x1e0] sm:$0xff] }
 0x25b   : > { %2257 = vst [vmem:[#allocation7 + $0x120] sm:$0xff] %v2193_v11  ;;  %2258 = vst [vmem:[#allocation7 + $0x128] sm:$0xff] %v2194_v50  ;;  %v2068_v36 = vmul.f32 %v3564_v39, %v1997_v32  ;;  %v2069_v20 = vmul.f32 %v3564_v39, %v1998_v8  ;;  %v2133_v54 = vadd.f32 %v3578_v9, %v2062_v42  ;;  %v2013_v11 = vld [vmem:[#allocation2 + $0x1f0] sm:$0xff]  ;;  %v2014_v50 = vld [vmem:[#allocation2 + $0x1f8] sm:$0xff] }
 0x25c   : > { %2259 = vst [vmem:[#allocation7 + $0x130] sm:$0xff] %v2195_v12  ;;  %2260 = vst [vmem:[#allocation7 + $0x138] sm:$0xff] %v2196_v15  ;;  %v2134_v46 = vadd.f32 %v3578_v9, %v2063_v41  ;;  %v2135_v21 = vadd.f32 %v3578_v9, %v2064_v60  ;;  %v2136_v53 = vadd.f32 %v3578_v9, %v2065_v6 }
 0x25d   : > { %v2137_v56 = vadd.f32 %v3578_v9, %v2066_v31  ;;  %v2138_v29 = vadd.f32 %v3578_v9, %v2067_v13  ;;  %v2139_v10 = vadd.f32 %v3578_v9, %v2068_v36  ;;  %v2140_v4 = vadd.f32 %v3578_v9, %v2069_v20 }
 0x25e   : > { %v2197_v5 = vmax.f32 %v2133_v54, 0.0  ;;  %v2198_v44 = vmax.f32 %v2134_v46, 0.0  ;;  %v2199_v2 = vmax.f32 %v2135_v21, 0.0  ;;  %v2200_v23 = vmax.f32 %v2136_v53, 0.0 }
 0x25f   : > { %v2201_v22 = vmax.f32 %v2137_v56, 0.0  ;;  %v2202_v49 = vmax.f32 %v2138_v29, 0.0  ;;  %v2203_v61 = vmax.f32 %v2139_v10, 0.0  ;;  %v2204_v43 = vmax.f32 %v2140_v4, 0.0 }
 0x260   : > { %2261 = vst [vmem:[#allocation7 + $0x140] sm:$0xff] %v2197_v5  ;;  %2262 = vst [vmem:[#allocation7 + $0x148] sm:$0xff] %v2198_v44  ;;  %v2070_v47 = vmul.f32 %v3564_v39, %v1999_v1  ;;  %v2071_v16 = vmul.f32 %v3564_v39, %v2000_v24  ;;  %v2072_v59 = vmul.f32 %v3564_v39, %v2001_v27 }
 0x261   : > { %2263 = vst [vmem:[#allocation7 + $0x150] sm:$0xff] %v2199_v2  ;;  %2264 = vst [vmem:[#allocation7 + $0x158] sm:$0xff] %v2200_v23  ;;  %v2073_v37 = vmul.f32 %v3564_v39, %v2002_v57  ;;  %v2074_v18 = vmul.f32 %v3564_v39, %v2003_v45  ;;  %v2075_v48 = vmul.f32 %v3564_v39, %v2004_v52 }
 0x262   : > { %2265 = vst [vmem:[#allocation7 + $0x160] sm:$0xff] %v2201_v22  ;;  %2266 = vst [vmem:[#allocation7 + $0x168] sm:$0xff] %v2202_v49  ;;  %v2076_v51 = vmul.f32 %v3564_v39, %v2005_v35  ;;  %v2077_v26 = vmul.f32 %v3564_v39, %v2006_v62  ;;  %v2141_v19 = vadd.f32 %v3578_v9, %v2070_v47 }
 0x263   : > { %2267 = vst [vmem:[#allocation7 + $0x170] sm:$0xff] %v2203_v61  ;;  %2268 = vst [vmem:[#allocation7 + $0x178] sm:$0xff] %v2204_v43  ;;  %v2142_v14 = vadd.f32 %v3578_v9, %v2071_v16  ;;  %v2143_v55 = vadd.f32 %v3578_v9, %v2072_v59  ;;  %v2144_v17 = vadd.f32 %v3578_v9, %v2073_v37 }
 0x264   : > { %v2145_v28 = vadd.f32 %v3578_v9, %v2074_v18  ;;  %v2146_v63 = vadd.f32 %v3578_v9, %v2075_v48  ;;  %v2147_v38 = vadd.f32 %v3578_v9, %v2076_v51  ;;  %v2148_v30 = vadd.f32 %v3578_v9, %v2077_v26 }
 0x265   : > { %v2205_v58 = vmax.f32 %v2141_v19, 0.0  ;;  %v2206_v0 = vmax.f32 %v2142_v14, 0.0  ;;  %v2207_v32 = vmax.f32 %v2143_v55, 0.0  ;;  %v2208_v8 = vmax.f32 %v2144_v17, 0.0 }
 0x266   : > { %v2209_v12 = vmax.f32 %v2145_v28, 0.0  ;;  %v2210_v15 = vmax.f32 %v2146_v63, 0.0  ;;  %v2211_v42 = vmax.f32 %v2147_v38, 0.0  ;;  %v2212_v41 = vmax.f32 %v2148_v30, 0.0 }
 0x267   : > { %2269 = vst [vmem:[#allocation7 + $0x180] sm:$0xff] %v2205_v58  ;;  %2270 = vst [vmem:[#allocation7 + $0x188] sm:$0xff] %v2206_v0  ;;  %v2078_v60 = vmul.f32 %v3564_v39, %v2007_v33  ;;  %v2079_v6 = vmul.f32 %v3564_v39, %v2008_v40  ;;  %v2080_v31 = vmul.f32 %v3564_v39, %v2009_v25 }
 0x268   : > { %2271 = vst [vmem:[#allocation7 + $0x190] sm:$0xff] %v2207_v32  ;;  %2272 = vst [vmem:[#allocation7 + $0x198] sm:$0xff] %v2208_v8  ;;  %v2081_v13 = vmul.f32 %v3564_v39, %v2010_v3  ;;  %v2082_v36 = vmul.f32 %v3564_v39, %v2011_v34  ;;  %v2083_v20 = vmul.f32 %v3564_v39, %v2012_v7 }
 0x269   : > { %2273 = vst [vmem:[#allocation7 + $0x1a0] sm:$0xff] %v2209_v12  ;;  %2274 = vst [vmem:[#allocation7 + $0x1a8] sm:$0xff] %v2210_v15  ;;  %v2084_v54 = vmul.f32 %v3564_v39, %v2013_v11  ;;  %v2085_v46 = vmul.f32 %v3564_v39, %v2014_v50  ;;  %v2149_v21 = vadd.f32 %v3578_v9, %v2078_v60 }
 0x26a   : > { %2275 = vst [vmem:[#allocation7 + $0x1b0] sm:$0xff] %v2211_v42  ;;  %2276 = vst [vmem:[#allocation7 + $0x1b8] sm:$0xff] %v2212_v41  ;;  %v2150_v53 = vadd.f32 %v3578_v9, %v2079_v6  ;;  %v2151_v1 = vadd.f32 %v3578_v9, %v2080_v31  ;;  %v2152_v24 = vadd.f32 %v3578_v9, %v2081_v13 }
 0x26b   : > { %v2153_v27 = vadd.f32 %v3578_v9, %v2082_v36  ;;  %v2154_v56 = vadd.f32 %v3578_v9, %v2083_v20  ;;  %v2155_v29 = vadd.f32 %v3578_v9, %v2084_v54  ;;  %v2156_v10 = vadd.f32 %v3578_v9, %v2085_v46 }
 0x26c   : > { %v2213_v4 = vmax.f32 %v2149_v21, 0.0  ;;  %v2214_v57 = vmax.f32 %v2150_v53, 0.0  ;;  %v2215_v45 = vmax.f32 %v2151_v1, 0.0  ;;  %v2216_v39 = vmax.f32 %v2152_v24, 0.0 }
 0x26d   : > { %v2217_v52 = vmax.f32 %v2153_v27, 0.0  ;;  %v2218_v5 = vmax.f32 %v2154_v56, 0.0  ;;  %v2219_v44 = vmax.f32 %v2155_v29, 0.0  ;;  %v2220_v2 = vmax.f32 %v2156_v10, 0.0 }
 0x26e   : > { %2277 = vst [vmem:[#allocation7 + $0x1c0] sm:$0xff] %v2213_v4  ;;  %2278 = vst [vmem:[#allocation7 + $0x1c8] sm:$0xff] %v2214_v57 }
 0x26f   : > { %2279 = vst [vmem:[#allocation7 + $0x1d0] sm:$0xff] %v2215_v45  ;;  %2280 = vst [vmem:[#allocation7 + $0x1d8] sm:$0xff] %v2216_v39 }
 0x270   : > { %2281 = vst [vmem:[#allocation7 + $0x1e0] sm:$0xff] %v2217_v52  ;;  %2282 = vst [vmem:[#allocation7 + $0x1e8] sm:$0xff] %v2218_v5 }
 0x271   : > { %2283 = vst [vmem:[#allocation7 + $0x1f0] sm:$0xff] %v2219_v44  ;;  %2284 = vst [vmem:[#allocation7 + $0x1f8] sm:$0xff] %v2220_v2 }
 0x272 PF: > { %p3698_p6 = scmp.eq.s32.totalorder %s2374_s18, 1  ;;  %s2910_s25 = smov [#allocation7]  }
 0x273   : > { %s2300_s26 = sshll.u32 %s2910_s25, 4  ;;  %s2301_s26 = int_to_ptr.vmem [resolvable:$true] %s2300_s26 }
 0x274   : > { %s2854_s27 = scalar_lea.vmem %s2301_s26, 8192  ;;  %s2860_s28 = scalar_lea.vmem %s2301_s26, 16384 }
 0x275   : > { %p2855_p7 = scmp.ne.s32.totalorder %s2301_s26, %s2854_s27  ;;  %p2861_p10 = scmp.lt.s32.totalorder %s2301_s26, %s2301_s26 }
 0x276   : > { %p2862_p11 = scmp.lt.s32.totalorder %s2860_s28, %s2854_s27 }
 0x277   : > { %p2856_p8 = pnand %p2855_p7, %p3698_p6 }
 0x278   : > { %p2863_p12 = por %p2862_p11, %p2861_p10 }
 0x279   : > { %p2857_p9 = pneg %p2856_p8 }
 0x27b   : > { %p2864_p13 = pnand %p2863_p12, %p2857_p9 }
 0x27d   : > { %2867 = shalt.err (!%p2864_p13)
}
 0x27e   : > { %s2868_s30 = scalar_lea.hbm %s3736_s4, 8192 }
 0x27f   : > { %p2869_p0 = scmp.ne.s32.totalorder %s3736_s4, %s2868_s30  ;;  %p2874_p3 = scmp.lt.u32.totalorder %s2868_s30, %s3736_s4 }
 0x281   : > { %p2870_p1 = pnand %p2869_p0, %p3698_p6 }
 0x283   : > { %p2871_p2 = pneg %p2870_p1 }
 0x285   : > { %p2876_p4 = pnand %p2874_p3, %p2871_p2 }
 0x287   : > { %2879 = shalt.err (!%p2876_p4)
}
 0x288   : > { %s2911_s9 = smov 128   ;;  %s2912_s10 = smov 8  }
 0x289   : > { %2661 = dma.vmem_to_hbm [thread:$0]  (%p3698_p6), %s2301_s26, 8192, %s3736_s4, [#allocation8], %s2911_s9, %s2911_s9, %s2912_s10  }
 0x28a PF: > { %p2669_p5 = scmp.ge.s32.totalorder %s2906_s17, 2  ;;  %p2670_p7 = scmp.eq.s32.totalorder %s2375_s19, 1 }
 0x28c   : > { %p2665_p8 = pnand %p2670_p7, %p2669_p5 }
 0x28e   : > { %2893 = dma.done.wait (!%p2665_p8), [#allocation8], 8192  }
 0x28f   : > { %2895 = vsyncadd (!%p2665_p8), [#allocation8], 4294959104  ;;  %s17_s17 = sadd.s32 1, %s2906_s17   ;;  %s3738_s15 = smov %s2902_s16 }
 0x290   : > { %p14_p9 = scmp.ge.s32.totalorder %s17_s17, 4   ;;  %s3739_s16 = smov %s3741_s20 }
 0x292   :  { %16 = sbr.rel (!%p14_p9) target bundleno = 3 (0x3), region = 89 }
 0x299   :  { %2321 = vsyncpa [#allocation8], 1 }
 0x29a   :  { %2323 = vsyncpa [#allocation8 + $0x1], 1 }

</bundles_post_ra>
